<compile_context>
chip_gen: v6e
topology: v6e:2x2x1
jax: 0.10.0
libtpu: 0.0.40
codegen_flags: <defaults>
</compile_context>

<pallas_src>
import functools

import jax
import jax.numpy as jnp
from jax.experimental import pallas as pl
from jax.experimental.pallas import tpu as pltpu


def _round_up(x, m):
    return (x + m - 1) // m * m


def _vmem_limit_bytes():
    """Per-generation VMEM budget (v5e/v6e: 128 MiB physical, v7x: 64 MiB)."""
    cap = 64 * 1024 * 1024
    try:
        cap = int(getattr(pltpu.get_tpu_info(), "vmem_capacity_bytes", cap))
    except Exception:
        pass
    return max(32 * 1024 * 1024, min(cap - 16 * 1024 * 1024, 96 * 1024 * 1024))


# ----------------------------- Pallas kernels ------------------------------ #

def _make_conv_kernel(mode, taps, hpp, ho, wo, bb, cin_p, tn, n_phase, sc_tap):
    """Conv-as-one-matmul kernel over a K-concatenated im2col slab.

    The slab (bb*ho*wo, n_taps*Cin_p) lives in VMEM scratch and is (re)built
    only when the Cout-tile index j wraps to 0, i.e. once per batch block.
    modes:
      "bn_relu"       : out = relu(slab @ W + shift)           (bf16 out)
      "bn_relu_short" : + res = centre_tap_cols(slab) @ W_sc   (bf16, bf16)
      "add"           : out = slab @ W + res                   (f32 out)
    """
    ktot = len(taps)
    m = bb * ho * wo

    def build_slab(ph_ref, slab_ref):
        # bb * n_taps static-sliced relayout copies, amortised over Cout tiles.
        for b in range(bb):
            for t, (p, dh, dw) in enumerate(taps):
                r0 = (b * n_phase + p) * hpp + dh
                a = ph_ref[r0:r0 + ho, dw:dw + wo, :]
                slab_ref[b * ho * wo:(b + 1) * ho * wo,
                         t * cin_p:(t + 1) * cin_p] = a.reshape(ho * wo, cin_p)

    if mode == "bn_relu":
        def kernel(ph_ref, w_ref, shift_ref, out_ref, slab_ref):
            j = pl.program_id(1)

            @pl.when(j == 0)
            def _():
                build_slab(ph_ref, slab_ref)

            acc = jnp.dot(slab_ref[...], w_ref[j],
                          preferred_element_type=jnp.float32)
            y = jnp.maximum(acc + shift_ref[j], 0.0)
            out_ref[...] = y.reshape(out_ref.shape).astype(out_ref.dtype)

    elif mode == "bn_relu_short":
        def kernel(ph_ref, w_ref, wsc_ref, shift_ref, out_ref, res_ref,
                   slab_ref):
            j = pl.program_id(1)

            @pl.when(j == 0)
            def _():
                build_slab(ph_ref, slab_ref)

            acc = jnp.dot(slab_ref[...], w_ref[j],
                          preferred_element_type=jnp.float32)
            y = jnp.maximum(acc + shift_ref[j], 0.0)
            out_ref[...] = y.reshape(out_ref.shape).astype(out_ref.dtype)
            # 1x1/stride shortcut == the centre-tap columns of the same slab.
            a_c = slab_ref[:, sc_tap * cin_p:(sc_tap + 1) * cin_p]
            r = jnp.dot(a_c, wsc_ref[j], preferred_element_type=jnp.float32)
            res_ref[...] = r.reshape(res_ref.shape).astype(res_ref.dtype)

    elif mode == "add":
        def kernel(ph_ref, w_ref, res_ref, out_ref, slab_ref):
            j = pl.program_id(1)

            @pl.when(j == 0)
            def _():
                build_slab(ph_ref, slab_ref)

            acc = jnp.dot(slab_ref[...], w_ref[j],
                          preferred_element_type=jnp.float32)
            res = res_ref[...].reshape(m, tn).astype(jnp.float32)
            out_ref[...] = (acc + res).reshape(out_ref.shape).astype(
                out_ref.dtype)

    else:
        raise ValueError(mode)
    return kernel


def _conv_pallas(ph, w_t, *, taps, hpp, ho, wo, n_phase, mode, tn,
                 shift=None, w_sc=None, res=None, sc_tap=4):
    """Tiled conv-as-one-matmul pallas_call.

    ph   : (N, n_phase*hpp, wpp, Cin_p) bf16 phase-stacked padded activations.
    w_t  : (n_tiles, n_taps*Cin_p, tn)  bf16 K-major weights (grid-resident).
    shift: (n_tiles, 1, tn) f32   -- bn2 shift (scale already folded into w_t).
    w_sc : (n_tiles, Cin_p, tn) bf16 -- 1x1 shortcut weights.
    res  : (N, ho, wo, Cout_p) bf16  -- residual (mode 'add').
    Returns (N, ho, wo, Cout_p) array(s).
    """
    n, ph_h, wpp, cin_p = ph.shape
    assert ph_h == n_phase * hpp
    nt, kdim, tn_ = w_t.shape
    assert tn_ == tn and kdim == len(taps) * cin_p
    cout_p = nt * tn
    ktot = len(taps)

    vmem_limit = _vmem_limit_bytes()

    # --- batch block size bb (raises matmul M; bounded by a VMEM estimate) ---
    out_isz = 4 if mode == "add" else 2
    n_out = 2 if mode == "bn_relu_short" else 1
    per_img = (2 * n_phase * hpp * wpp * cin_p * 2            # ph block (2 bufs)
               + ho * wo * ktot * cin_p * 2                   # slab scratch
               + 2 * ho * wo * tn * out_isz * n_out           # out block(s)
               + (2 * ho * wo * tn * 2 if mode == "add" else 0))  # res block
    fixed = 2 * w_t.size * w_t.dtype.itemsize
    if shift is not None:
        fixed += 2 * shift.size * shift.dtype.itemsize
    if w_sc is not None:
        fixed += 2 * w_sc.size * w_sc.dtype.itemsize
    budget = vmem_limit // 2
    bb = 1
    for cand in range(1, min(n, 8) + 1):
        if n % cand == 0 and fixed + cand * per_img <= budget:
            bb = cand
    nb = n // bb

    ph_r = ph.reshape(nb, bb * n_phase * hpp, wpp, cin_p)

    in_specs = [
        # whole phase-stacked batch block; re-used across all Cout tiles.
        pl.BlockSpec((None, bb * n_phase * hpp, wpp, cin_p),
                     lambda i, j: (i, 0, 0, 0)),
        # grid-resident full weight slab (constant block index -> one HBM DMA).
        pl.BlockSpec((nt, kdim, tn), lambda i, j: (0, 0, 0)),
    ]
    operands = [ph_r, w_t]
    if mode == "bn_relu_short":
        in_specs.append(pl.BlockSpec((nt, cin_p, tn), lambda i, j: (0, 0, 0)))
        operands.append(w_sc)
    if mode in ("bn_relu", "bn_relu_short"):
        in_specs.append(pl.BlockSpec((nt, 1, tn), lambda i, j: (0, 0, 0)))
        operands.append(shift)
    if mode == "add":
        in_specs.append(pl.BlockSpec((None, bb * ho, wo, tn),
                                     lambda i, j: (i, 0, 0, j)))
        operands.append(res.reshape(nb, bb * ho, wo, cout_p))

    out_block = pl.BlockSpec((None, bb * ho, wo, tn), lambda i, j: (i, 0, 0, j))
    if mode == "bn_relu_short":
        out_shape = (jax.ShapeDtypeStruct((nb, bb * ho, wo, cout_p), jnp.bfloat16),
                     jax.ShapeDtypeStruct((nb, bb * ho, wo, cout_p), jnp.bfloat16))
        out_specs = (out_block, out_block)
    else:
        odt = jnp.float32 if mode == "add" else jnp.bfloat16
        out_shape = jax.ShapeDtypeStruct((nb, bb * ho, wo, cout_p), odt)
        out_specs = out_block

    flops = 2 * n * ho * wo * cout_p * ktot * cin_p
    if mode == "bn_relu_short":
        flops += 2 * n * ho * wo * cout_p * cin_p
    bytes_accessed = sum(int(o.size) * o.dtype.itemsize for o in operands)
    bytes_accessed += n * ho * wo * cout_p * out_isz * n_out

    out = pl.pallas_call(
        _make_conv_kernel(mode, taps, hpp, ho, wo, bb, cin_p, tn, n_phase,
                          sc_tap),
        out_shape=out_shape,
        grid=(nb, nt),
        in_specs=in_specs,
        out_specs=out_specs,
        scratch_shapes=[pltpu.VMEM((bb * ho * wo, ktot * cin_p), jnp.bfloat16)],
        compiler_params=pltpu.CompilerParams(
            dimension_semantics=("parallel", "arbitrary"),
            vmem_limit_bytes=int(vmem_limit)),
        cost_estimate=pl.CostEstimate(flops=int(flops), transcendentals=0,
                                      bytes_accessed=int(bytes_accessed)),
    )(*operands)

    if mode == "bn_relu_short":
        o, r = out
        return o.reshape(n, ho, wo, cout_p), r.reshape(n, ho, wo, cout_p)
    return out.reshape(n, ho, wo, cout_p)


# ------------------------------- JAX glue ---------------------------------- #

def _bn_scale_shift(bn, eps, cpad):
    # BatchNorm2d (eval): y = (x - mean)/sqrt(var+eps)*gamma + beta
    scale = bn["gamma"] * jax.lax.rsqrt(bn["var"] + eps)
    shift = bn["beta"] - bn["mean"] * scale
    scale = jnp.pad(scale, (0, cpad - scale.shape[0])).astype(jnp.float32)
    shift = jnp.pad(shift, (0, cpad - shift.shape[0])).astype(jnp.float32)
    return scale, shift


def _phase_stack(act, stride):
    """Spatial pad by 1; for stride>1, split into stride^2 phases stacked along
    H so every 3x3/pad=1 tap is a contiguous static slice of one phase."""
    n, h, w, c = act.shape
    xp = jnp.pad(act, ((0, 0), (1, 1), (1, 1), (0, 0)))
    s = stride
    ho = (h - 1) // s + 1
    wo = (w - 1) // s + 1
    if s == 1:
        ph, hpp, wpp, nph = xp, h + 2, w + 2, 1
    else:
        hpp, wpp, nph = ho + 1, wo + 1, s * s
        phases = []
        for a in range(s):
            for b in range(s):
                pab = xp[:, a::s, b::s, :][:, :hpp, :wpp, :]
                pab = jnp.pad(pab, ((0, 0), (0, hpp - pab.shape[1]),
                                    (0, wpp - pab.shape[2]), (0, 0)))
                phases.append(pab)
        ph = jnp.concatenate(phases, axis=1)      # (N, P*hpp, wpp, C)
    taps = [((kh % s) * s + (kw % s), kh // s, kw // s)
            for kh in range(3) for kw in range(3)]
    return ph, taps, ho, wo, hpp, nph


def _conv_w_k(w, cin_p, cout_p, tn, scale=None):
    """(Cout,Cin,kh,kw) -> (n_tiles, kh*kw*Cin_p, tn) bf16, K-major (tap, Cin),
    optionally folding a per-Cout scale (bn2 gamma/sigma) into the weights."""
    cout, cin, kh, kw = w.shape
    wt = jnp.transpose(w, (2, 3, 1, 0)).reshape(kh * kw, cin, cout)
    wt = jnp.pad(wt, ((0, 0), (0, cin_p - cin), (0, cout_p - cout)))
    if scale is not None:
        wt = wt * scale.reshape(1, 1, cout_p)
    nt = cout_p // tn
    wt = wt.reshape(kh * kw * cin_p, nt, tn)
    return jnp.transpose(wt, (1, 0, 2)).astype(jnp.bfloat16)


def wrn_basic_block(x_nchw, params, *, stride, equal_in_out, eps=1e-3):
    """Forward pass of WRNBasicBlock (eval-mode BN; module default eps=1e-3)."""
    # TODO(synk): dropout path (droprate > 0) not implemented (module default 0.0).
    if equal_in_out:
        assert stride == 1, "identity shortcut requires stride == 1"
    x = jnp.transpose(x_nchw, (0, 2, 3, 1)).astype(jnp.float32)      # NHWC
    n, h, w, cin = x.shape
    cout = params["conv1_w"].shape[0]
    cin_p, cout_p = _round_up(cin, 128), _round_up(cout, 128)
    tn = 256 if cout_p % 256 == 0 else 128
    nt = cout_p // tn

    # relu1(bn1(x)) producer (plain JAX; XLA fuses it with pad / phase split).
    s1, b1 = _bn_scale_shift(params["bn1"], eps, cin_p)
    x_c = jnp.pad(x, ((0, 0), (0, 0), (0, 0), (0, cin_p - cin)))
    act = jnp.maximum(x_c * s1.reshape(1, 1, 1, cin_p)
                      + b1.reshape(1, 1, 1, cin_p), 0.0).astype(jnp.bfloat16)

    ph1, taps1, ho, wo, hpp1, nph1 = _phase_stack(act, stride)

    # conv1 weights with bn2's scale folded in (epilogue = shift + ReLU only).
    s2, b2 = _bn_scale_shift(params["bn2"], eps, cout_p)
    w1 = _conv_w_k(params["conv1_w"], cin_p, cout_p, tn, scale=s2)
    shift2 = b2.reshape(nt, 1, tn)

    if equal_in_out:
        out1 = _conv_pallas(ph1, w1, taps=taps1, hpp=hpp1, ho=ho, wo=wo,
                            n_phase=nph1, mode="bn_relu", tn=tn, shift=shift2)
        res = jnp.pad(x, ((0, 0), (0, 0), (0, 0), (0, cout_p - cin))
                      ).astype(jnp.bfloat16)                 # identity residual
    else:
        # 1x1/stride shortcut fused into conv1 (centre tap of the same slab).
        w_sc = _conv_w_k(params["shortcut_w"], cin_p, cout_p, tn)
        out1, res = _conv_pallas(ph1, w1, taps=taps1, hpp=hpp1, ho=ho, wo=wo,
                                 n_phase=nph1, mode="bn_relu_short", tn=tn,
                                 shift=shift2, w_sc=w_sc, sc_tap=4)

    # conv2 (3x3, stride 1) fused with the residual add.
    ph2, taps2, ho2, wo2, hpp2, nph2 = _phase_stack(out1, 1)
    w2 = _conv_w_k(params["conv2_w"], cout_p, cout_p, tn)
    y = _conv_pallas(ph2, w2, taps=taps2, hpp=hpp2, ho=ho2, wo=wo2,
                     n_phase=nph2, mode="add", tn=tn, res=res)

    return jnp.transpose(y[:, :, :, :cout], (0, 3, 1, 2))    # back to NCHW


# ------------------------- pure-JAX reference ------------------------------ #

def _reference(x, params, *, stride, equal_in_out, eps=1e-3):
    def bn(t, p):
        scale = p["gamma"] * jax.lax.rsqrt(p["var"] + eps)
        shift = p["beta"] - p["mean"] * scale
        return t * scale[None, :, None, None] + shift[None, :, None, None]

    def conv(t, w, s, pad):
        return jax.lax.conv_general_dilated(
            t, w, (s, s), [(pad, pad), (pad, pad)],
            dimension_numbers=("NCHW", "OIHW", "NCHW"))

    act = jax.nn.relu(bn(x, params["bn1"]))
    out = jax.nn.relu(bn(conv(act, params["conv1_w"], stride, 1), params["bn2"]))
    out = conv(out, params["conv2_w"], 1, 1)
    res = x if equal_in_out else conv(act, params["shortcut_w"], stride, 0)
    return res + out


# --------------------------------- main ------------------------------------ #

def _make_params(key, in_planes, out_planes):
    ks = jax.random.split(key, 9)

    def kaiming(k, shape):
        fan_in = shape[1] * shape[2] * shape[3]
        return jax.random.normal(k, shape, jnp.float32) * jnp.sqrt(2.0 / fan_in)

    return {
        "conv1_w": kaiming(ks[0], (out_planes, in_planes, 3, 3)),
        "conv2_w": kaiming(ks[1], (out_planes, out_planes, 3, 3)),
        "shortcut_w": kaiming(ks[2], (out_planes, in_planes, 1, 1)),
        "bn1": {
            "gamma": jax.random.uniform(ks[3], (in_planes,), jnp.float32, 0.5, 1.5),
            "beta": 0.1 * jax.random.normal(ks[4], (in_planes,), jnp.float32),
            "mean": 0.1 * jax.random.normal(ks[5], (in_planes,), jnp.float32),
            "var": jax.random.uniform(ks[6], (in_planes,), jnp.float32, 0.5, 1.5),
        },
        "bn2": {
            "gamma": jax.random.uniform(ks[7], (out_planes,), jnp.float32, 0.5, 1.5),
            "beta": 0.1 * jax.random.normal(ks[8], (out_planes,), jnp.float32),
            "mean": jnp.zeros((out_planes,), jnp.float32),
            "var": jnp.ones((out_planes,), jnp.float32),
        },
    }


if __name__ == "__main__":
    key = jax.random.PRNGKey(0)
    # (in_planes, out_planes, stride): downsampling block w/ 1x1 shortcut,
    # and identity-shortcut block.
    configs = [(4, 8, 2), (8, 8, 1)]
    for cin, cout, stride in configs:
        key, kx, kp = jax.random.split(key, 3)
        x = jax.random.normal(kx, (2, cin, 16, 16), jnp.float32)
        params = _make_params(kp, cin, cout)
        equal = (cin == cout)

        fwd = jax.jit(functools.partial(
            wrn_basic_block, stride=stride, equal_in_out=equal))
        y = fwd(x, params)
        jax.block_until_ready(y)

        y_ref = _reference(x, params, stride=stride, equal_in_out=equal)
        assert y.shape == y_ref.shape, (y.shape, y_ref.shape)
        max_err = float(jnp.max(jnp.abs(y - y_ref)))
        assert jnp.allclose(y, y_ref, atol=8e-2, rtol=8e-2), \
            (cin, cout, stride, max_err)

    print("KERNEL_OK")
</pallas_src>

<mosaic_0001>
module attributes {stable_mosaic.version = 11 : i64} {
  func.func @kernel(%arg0: i32, %arg1: i32, %arg2: memref<1x72x9x128xbf16, #tpu.memory_space<vmem>>, %arg3: memref<1x1152x128xbf16, #tpu.memory_space<vmem>>, %arg4: memref<1x128x128xbf16, #tpu.memory_space<vmem>>, %arg5: memref<1x1x128xf32, #tpu.memory_space<vmem>>, %arg6: memref<1x16x8x128xbf16, #tpu.memory_space<vmem>>, %arg7: memref<1x16x8x128xbf16, #tpu.memory_space<vmem>>, %arg8: memref<128x1152xbf16, #tpu.memory_space<vmem>>) attributes {dimension_semantics = [#tpu.dimension_semantics<parallel>, #tpu.dimension_semantics<arbitrary>], iteration_bounds = array<i64: 1, 1>, scalar_prefetch = 0 : i64, scratch_operands = 1 : i64, tpu.core_type = #tpu.core_type<tc>, window_params = [{transform_indices = @transform_0, window_bounds = array<i64: 1, 72, 9, 128>}, {pipeline_mode = #tpu.pipeline_mode<synchronous>, transform_indices = @transform_1, window_bounds = array<i64: 1, 1152, 128>}, {pipeline_mode = #tpu.pipeline_mode<synchronous>, transform_indices = @transform_2, window_bounds = array<i64: 1, 128, 128>}, {pipeline_mode = #tpu.pipeline_mode<synchronous>, transform_indices = @transform_3, window_bounds = array<i64: 1, 1, 128>}, {transform_indices = @transform_4, window_bounds = array<i64: 1, 16, 8, 128>}, {transform_indices = @transform_5, window_bounds = array<i64: 1, 16, 8, 128>}]} {
    %c0_i32 = arith.constant 0 : i32
    %0 = arith.cmpi eq, %arg1, %c0_i32 : i32
    %1 = arith.extui %0 : i1 to i32
    %c0_i32_0 = arith.constant 0 : i32
    %2 = arith.cmpi ne, %1, %c0_i32_0 : i32
    scf.if %2 {
      %c0_19 = arith.constant 0 : index
      %c0_20 = arith.constant 0 : index
      %c0_21 = arith.constant 0 : index
      %c0_22 = arith.constant 0 : index
      %30 = vector.load %arg2[%c0_19, %c0_20, %c0_21, %c0_22] : memref<1x72x9x128xbf16, #tpu.memory_space<vmem>>, vector<1x8x8x128xbf16>
      %31 = vector.shape_cast %30 : vector<1x8x8x128xbf16> to vector<8x8x128xbf16>
      %32 = vector.shape_cast %31 : vector<8x8x128xbf16> to vector<64x128xbf16>
      %c0_23 = arith.constant 0 : index
      %c0_24 = arith.constant 0 : index
      %33 = vector.load %arg8[%c0_23, %c0_24] : memref<128x1152xbf16, #tpu.memory_space<vmem>>, vector<64x128xbf16>
      tpu.vector_store %arg8[%c0_23, %c0_24], %32 {strides = array<i32>} : memref<128x1152xbf16, #tpu.memory_space<vmem>>, vector<64x128xbf16>,
      %c0_25 = arith.constant 0 : index
      %c9 = arith.constant 9 : index
      %c0_26 = arith.constant 0 : index
      %c0_27 = arith.constant 0 : index
      %34 = vector.load %arg2[%c0_25, %c9, %c0_26, %c0_27] : memref<1x72x9x128xbf16, #tpu.memory_space<vmem>>, vector<1x8x8x128xbf16>
      %35 = vector.shape_cast %34 : vector<1x8x8x128xbf16> to vector<8x8x128xbf16>
      %36 = vector.shape_cast %35 : vector<8x8x128xbf16> to vector<64x128xbf16>
      %c0_28 = arith.constant 0 : index
      %c128 = arith.constant 128 : index
      %37 = vector.load %arg8[%c0_28, %c128] : memref<128x1152xbf16, #tpu.memory_space<vmem>>, vector<64x128xbf16>
      tpu.vector_store %arg8[%c0_28, %c128], %36 {strides = array<i32>} : memref<128x1152xbf16, #tpu.memory_space<vmem>>, vector<64x128xbf16>,
      %c0_29 = arith.constant 0 : index
      %c0_30 = arith.constant 0 : index
      %c1 = arith.constant 1 : index
      %c0_31 = arith.constant 0 : index
      %38 = vector.load %arg2[%c0_29, %c0_30, %c1, %c0_31] : memref<1x72x9x128xbf16, #tpu.memory_space<vmem>>, vector<1x8x8x128xbf16>
      %39 = vector.shape_cast %38 : vector<1x8x8x128xbf16> to vector<8x8x128xbf16>
      %40 = vector.shape_cast %39 : vector<8x8x128xbf16> to vector<64x128xbf16>
      %c0_32 = arith.constant 0 : index
      %c256 = arith.constant 256 : index
      %41 = vector.load %arg8[%c0_32, %c256] : memref<128x1152xbf16, #tpu.memory_space<vmem>>, vector<64x128xbf16>
      tpu.vector_store %arg8[%c0_32, %c256], %40 {strides = array<i32>} : memref<128x1152xbf16, #tpu.memory_space<vmem>>, vector<64x128xbf16>,
      %c0_33 = arith.constant 0 : index
      %c18 = arith.constant 18 : index
      %c0_34 = arith.constant 0 : index
      %c0_35 = arith.constant 0 : index
      %42 = vector.load %arg2[%c0_33, %c18, %c0_34, %c0_35] : memref<1x72x9x128xbf16, #tpu.memory_space<vmem>>, vector<1x8x8x128xbf16>
      %43 = vector.shape_cast %42 : vector<1x8x8x128xbf16> to vector<8x8x128xbf16>
      %44 = vector.shape_cast %43 : vector<8x8x128xbf16> to vector<64x128xbf16>
      %c0_36 = arith.constant 0 : index
      %c384 = arith.constant 384 : index
      %45 = vector.load %arg8[%c0_36, %c384] : memref<128x1152xbf16, #tpu.memory_space<vmem>>, vector<64x128xbf16>
      tpu.vector_store %arg8[%c0_36, %c384], %44 {strides = array<i32>} : memref<128x1152xbf16, #tpu.memory_space<vmem>>, vector<64x128xbf16>,
      %c0_37 = arith.constant 0 : index
      %c27 = arith.constant 27 : index
      %c0_38 = arith.constant 0 : index
      %c0_39 = arith.constant 0 : index
      %46 = vector.load %arg2[%c0_37, %c27, %c0_38, %c0_39] : memref<1x72x9x128xbf16, #tpu.memory_space<vmem>>, vector<1x8x8x128xbf16>
      %47 = vector.shape_cast %46 : vector<1x8x8x128xbf16> to vector<8x8x128xbf16>
      %48 = vector.shape_cast %47 : vector<8x8x128xbf16> to vector<64x128xbf16>
      %c0_40 = arith.constant 0 : index
      %c512_41 = arith.constant 512 : index
      %49 = vector.load %arg8[%c0_40, %c512_41] : memref<128x1152xbf16, #tpu.memory_space<vmem>>, vector<64x128xbf16>
      tpu.vector_store %arg8[%c0_40, %c512_41], %48 {strides = array<i32>} : memref<128x1152xbf16, #tpu.memory_space<vmem>>, vector<64x128xbf16>,
      %c0_42 = arith.constant 0 : index
      %c18_43 = arith.constant 18 : index
      %c1_44 = arith.constant 1 : index
      %c0_45 = arith.constant 0 : index
      %50 = vector.load %arg2[%c0_42, %c18_43, %c1_44, %c0_45] : memref<1x72x9x128xbf16, #tpu.memory_space<vmem>>, vector<1x8x8x128xbf16>
      %51 = vector.shape_cast %50 : vector<1x8x8x128xbf16> to vector<8x8x128xbf16>
      %52 = vector.shape_cast %51 : vector<8x8x128xbf16> to vector<64x128xbf16>
      %c0_46 = arith.constant 0 : index
      %c640 = arith.constant 640 : index
      %53 = vector.load %arg8[%c0_46, %c640] : memref<128x1152xbf16, #tpu.memory_space<vmem>>, vector<64x128xbf16>
      tpu.vector_store %arg8[%c0_46, %c640], %52 {strides = array<i32>} : memref<128x1152xbf16, #tpu.memory_space<vmem>>, vector<64x128xbf16>,
      %c0_47 = arith.constant 0 : index
      %c1_48 = arith.constant 1 : index
      %c0_49 = arith.constant 0 : index
      %c0_50 = arith.constant 0 : index
      %54 = vector.load %arg2[%c0_47, %c1_48, %c0_49, %c0_50] : memref<1x72x9x128xbf16, #tpu.memory_space<vmem>>, vector<1x8x8x128xbf16>
      %55 = vector.shape_cast %54 : vector<1x8x8x128xbf16> to vector<8x8x128xbf16>
      %56 = vector.shape_cast %55 : vector<8x8x128xbf16> to vector<64x128xbf16>
      %c0_51 = arith.constant 0 : index
      %c768 = arith.constant 768 : index
      %57 = vector.load %arg8[%c0_51, %c768] : memref<128x1152xbf16, #tpu.memory_space<vmem>>, vector<64x128xbf16>
      tpu.vector_store %arg8[%c0_51, %c768], %56 {strides = array<i32>} : memref<128x1152xbf16, #tpu.memory_space<vmem>>, vector<64x128xbf16>,
      %c0_52 = arith.constant 0 : index
      %c10 = arith.constant 10 : index
      %c0_53 = arith.constant 0 : index
      %c0_54 = arith.constant 0 : index
      %58 = vector.load %arg2[%c0_52, %c10, %c0_53, %c0_54] : memref<1x72x9x128xbf16, #tpu.memory_space<vmem>>, vector<1x8x8x128xbf16>
      %59 = vector.shape_cast %58 : vector<1x8x8x128xbf16> to vector<8x8x128xbf16>
      %60 = vector.shape_cast %59 : vector<8x8x128xbf16> to vector<64x128xbf16>
      %c0_55 = arith.constant 0 : index
      %c896 = arith.constant 896 : index
      %61 = vector.load %arg8[%c0_55, %c896] : memref<128x1152xbf16, #tpu.memory_space<vmem>>, vector<64x128xbf16>
      tpu.vector_store %arg8[%c0_55, %c896], %60 {strides = array<i32>} : memref<128x1152xbf16, #tpu.memory_space<vmem>>, vector<64x128xbf16>,
      %c0_56 = arith.constant 0 : index
      %c1_57 = arith.constant 1 : index
      %c1_58 = arith.constant 1 : index
      %c0_59 = arith.constant 0 : index
      %62 = vector.load %arg2[%c0_56, %c1_57, %c1_58, %c0_59] : memref<1x72x9x128xbf16, #tpu.memory_space<vmem>>, vector<1x8x8x128xbf16>
      %63 = vector.shape_cast %62 : vector<1x8x8x128xbf16> to vector<8x8x128xbf16>
      %64 = vector.shape_cast %63 : vector<8x8x128xbf16> to vector<64x128xbf16>
      %c0_60 = arith.constant 0 : index
      %c1024 = arith.constant 1024 : index
      %65 = vector.load %arg8[%c0_60, %c1024] : memref<128x1152xbf16, #tpu.memory_space<vmem>>, vector<64x128xbf16>
      tpu.vector_store %arg8[%c0_60, %c1024], %64 {strides = array<i32>} : memref<128x1152xbf16, #tpu.memory_space<vmem>>, vector<64x128xbf16>,
      %c0_61 = arith.constant 0 : index
      %c36 = arith.constant 36 : index
      %c0_62 = arith.constant 0 : index
      %c0_63 = arith.constant 0 : index
      %66 = vector.load %arg2[%c0_61, %c36, %c0_62, %c0_63] : memref<1x72x9x128xbf16, #tpu.memory_space<vmem>>, vector<1x8x8x128xbf16>
      %67 = vector.shape_cast %66 : vector<1x8x8x128xbf16> to vector<8x8x128xbf16>
      %68 = vector.shape_cast %67 : vector<8x8x128xbf16> to vector<64x128xbf16>
      %c64 = arith.constant 64 : index
      %c0_64 = arith.constant 0 : index
      %69 = vector.load %arg8[%c64, %c0_64] : memref<128x1152xbf16, #tpu.memory_space<vmem>>, vector<64x128xbf16>
      tpu.vector_store %arg8[%c64, %c0_64], %68 {strides = array<i32>} : memref<128x1152xbf16, #tpu.memory_space<vmem>>, vector<64x128xbf16>,
      %c0_65 = arith.constant 0 : index
      %c45 = arith.constant 45 : index
      %c0_66 = arith.constant 0 : index
      %c0_67 = arith.constant 0 : index
      %70 = vector.load %arg2[%c0_65, %c45, %c0_66, %c0_67] : memref<1x72x9x128xbf16, #tpu.memory_space<vmem>>, vector<1x8x8x128xbf16>
      %71 = vector.shape_cast %70 : vector<1x8x8x128xbf16> to vector<8x8x128xbf16>
      %72 = vector.shape_cast %71 : vector<8x8x128xbf16> to vector<64x128xbf16>
      %c64_68 = arith.constant 64 : index
      %c128_69 = arith.constant 128 : index
      %73 = vector.load %arg8[%c64_68, %c128_69] : memref<128x1152xbf16, #tpu.memory_space<vmem>>, vector<64x128xbf16>
      tpu.vector_store %arg8[%c64_68, %c128_69], %72 {strides = array<i32>} : memref<128x1152xbf16, #tpu.memory_space<vmem>>, vector<64x128xbf16>,
      %c0_70 = arith.constant 0 : index
      %c36_71 = arith.constant 36 : index
      %c1_72 = arith.constant 1 : index
      %c0_73 = arith.constant 0 : index
      %74 = vector.load %arg2[%c0_70, %c36_71, %c1_72, %c0_73] : memref<1x72x9x128xbf16, #tpu.memory_space<vmem>>, vector<1x8x8x128xbf16>
      %75 = vector.shape_cast %74 : vector<1x8x8x128xbf16> to vector<8x8x128xbf16>
      %76 = vector.shape_cast %75 : vector<8x8x128xbf16> to vector<64x128xbf16>
      %c64_74 = arith.constant 64 : index
      %c256_75 = arith.constant 256 : index
      %77 = vector.load %arg8[%c64_74, %c256_75] : memref<128x1152xbf16, #tpu.memory_space<vmem>>, vector<64x128xbf16>
      tpu.vector_store %arg8[%c64_74, %c256_75], %76 {strides = array<i32>} : memref<128x1152xbf16, #tpu.memory_space<vmem>>, vector<64x128xbf16>,
      %c0_76 = arith.constant 0 : index
      %c54 = arith.constant 54 : index
      %c0_77 = arith.constant 0 : index
      %c0_78 = arith.constant 0 : index
      %78 = vector.load %arg2[%c0_76, %c54, %c0_77, %c0_78] : memref<1x72x9x128xbf16, #tpu.memory_space<vmem>>, vector<1x8x8x128xbf16>
      %79 = vector.shape_cast %78 : vector<1x8x8x128xbf16> to vector<8x8x128xbf16>
      %80 = vector.shape_cast %79 : vector<8x8x128xbf16> to vector<64x128xbf16>
      %c64_79 = arith.constant 64 : index
      %c384_80 = arith.constant 384 : index
      %81 = vector.load %arg8[%c64_79, %c384_80] : memref<128x1152xbf16, #tpu.memory_space<vmem>>, vector<64x128xbf16>
      tpu.vector_store %arg8[%c64_79, %c384_80], %80 {strides = array<i32>} : memref<128x1152xbf16, #tpu.memory_space<vmem>>, vector<64x128xbf16>,
      %c0_81 = arith.constant 0 : index
      %c63 = arith.constant 63 : index
      %c0_82 = arith.constant 0 : index
      %c0_83 = arith.constant 0 : index
      %82 = vector.load %arg2[%c0_81, %c63, %c0_82, %c0_83] : memref<1x72x9x128xbf16, #tpu.memory_space<vmem>>, vector<1x8x8x128xbf16>
      %83 = vector.shape_cast %82 : vector<1x8x8x128xbf16> to vector<8x8x128xbf16>
      %84 = vector.shape_cast %83 : vector<8x8x128xbf16> to vector<64x128xbf16>
      %c64_84 = arith.constant 64 : index
      %c512_85 = arith.constant 512 : index
      %85 = vector.load %arg8[%c64_84, %c512_85] : memref<128x1152xbf16, #tpu.memory_space<vmem>>, vector<64x128xbf16>
      tpu.vector_store %arg8[%c64_84, %c512_85], %84 {strides = array<i32>} : memref<128x1152xbf16, #tpu.memory_space<vmem>>, vector<64x128xbf16>,
      %c0_86 = arith.constant 0 : index
      %c54_87 = arith.constant 54 : index
      %c1_88 = arith.constant 1 : index
      %c0_89 = arith.constant 0 : index
      %86 = vector.load %arg2[%c0_86, %c54_87, %c1_88, %c0_89] : memref<1x72x9x128xbf16, #tpu.memory_space<vmem>>, vector<1x8x8x128xbf16>
      %87 = vector.shape_cast %86 : vector<1x8x8x128xbf16> to vector<8x8x128xbf16>
      %88 = vector.shape_cast %87 : vector<8x8x128xbf16> to vector<64x128xbf16>
      %c64_90 = arith.constant 64 : index
      %c640_91 = arith.constant 640 : index
      %89 = vector.load %arg8[%c64_90, %c640_91] : memref<128x1152xbf16, #tpu.memory_space<vmem>>, vector<64x128xbf16>
      tpu.vector_store %arg8[%c64_90, %c640_91], %88 {strides = array<i32>} : memref<128x1152xbf16, #tpu.memory_space<vmem>>, vector<64x128xbf16>,
      %c0_92 = arith.constant 0 : index
      %c37 = arith.constant 37 : index
      %c0_93 = arith.constant 0 : index
      %c0_94 = arith.constant 0 : index
      %90 = vector.load %arg2[%c0_92, %c37, %c0_93, %c0_94] : memref<1x72x9x128xbf16, #tpu.memory_space<vmem>>, vector<1x8x8x128xbf16>
      %91 = vector.shape_cast %90 : vector<1x8x8x128xbf16> to vector<8x8x128xbf16>
      %92 = vector.shape_cast %91 : vector<8x8x128xbf16> to vector<64x128xbf16>
      %c64_95 = arith.constant 64 : index
      %c768_96 = arith.constant 768 : index
      %93 = vector.load %arg8[%c64_95, %c768_96] : memref<128x1152xbf16, #tpu.memory_space<vmem>>, vector<64x128xbf16>
      tpu.vector_store %arg8[%c64_95, %c768_96], %92 {strides = array<i32>} : memref<128x1152xbf16, #tpu.memory_space<vmem>>, vector<64x128xbf16>,
      %c0_97 = arith.constant 0 : index
      %c46 = arith.constant 46 : index
      %c0_98 = arith.constant 0 : index
      %c0_99 = arith.constant 0 : index
      %94 = vector.load %arg2[%c0_97, %c46, %c0_98, %c0_99] : memref<1x72x9x128xbf16, #tpu.memory_space<vmem>>, vector<1x8x8x128xbf16>
      %95 = vector.shape_cast %94 : vector<1x8x8x128xbf16> to vector<8x8x128xbf16>
      %96 = vector.shape_cast %95 : vector<8x8x128xbf16> to vector<64x128xbf16>
      %c64_100 = arith.constant 64 : index
      %c896_101 = arith.constant 896 : index
      %97 = vector.load %arg8[%c64_100, %c896_101] : memref<128x1152xbf16, #tpu.memory_space<vmem>>, vector<64x128xbf16>
      tpu.vector_store %arg8[%c64_100, %c896_101], %96 {strides = array<i32>} : memref<128x1152xbf16, #tpu.memory_space<vmem>>, vector<64x128xbf16>,
      %c0_102 = arith.constant 0 : index
      %c37_103 = arith.constant 37 : index
      %c1_104 = arith.constant 1 : index
      %c0_105 = arith.constant 0 : index
      %98 = vector.load %arg2[%c0_102, %c37_103, %c1_104, %c0_105] : memref<1x72x9x128xbf16, #tpu.memory_space<vmem>>, vector<1x8x8x128xbf16>
      %99 = vector.shape_cast %98 : vector<1x8x8x128xbf16> to vector<8x8x128xbf16>
      %100 = vector.shape_cast %99 : vector<8x8x128xbf16> to vector<64x128xbf16>
      %c64_106 = arith.constant 64 : index
      %c1024_107 = arith.constant 1024 : index
      %101 = vector.load %arg8[%c64_106, %c1024_107] : memref<128x1152xbf16, #tpu.memory_space<vmem>>, vector<64x128xbf16>
      tpu.vector_store %arg8[%c64_106, %c1024_107], %100 {strides = array<i32>} : memref<128x1152xbf16, #tpu.memory_space<vmem>>, vector<64x128xbf16>,
    } else {
    }
    %c0 = arith.constant 0 : index
    %c0_1 = arith.constant 0 : index
    %3 = vector.load %arg8[%c0, %c0_1] : memref<128x1152xbf16, #tpu.memory_space<vmem>>, vector<128x1152xbf16>
    %4 = arith.index_cast %arg1 : i32 to index
    %c0_2 = arith.constant 0 : index
    %c0_3 = arith.constant 0 : index
    %5 = vector.load %arg3[%4, %c0_2, %c0_3] : memref<1x1152x128xbf16, #tpu.memory_space<vmem>>, vector<1x1152x128xbf16>
    %6 = vector.shape_cast %5 : vector<1x1152x128xbf16> to vector<1152x128xbf16>
    %cst = arith.constant dense<0.000000e+00> : vector<128x128xf32>
    %7 = tpu.matmul %3, %6, %cst {dimension_numbers = #tpu.dot_dimension_numbers<[1], [0], [0], [1], [0, 0, 1, 1], [], []>} : vector<128x1152xbf16>, vector<1152x128xbf16>, vector<128x128xf32> -> vector<128x128xf32>
    %8 = arith.index_cast %arg1 : i32 to index
    %c0_4 = arith.constant 0 : index
    %c0_5 = arith.constant 0 : index
    %9 = vector.load %arg5[%8, %c0_4, %c0_5] : memref<1x1x128xf32, #tpu.memory_space<vmem>>, vector<1x1x128xf32>
    %10 = vector.shape_cast %9 : vector<1x1x128xf32> to vector<1x128xf32>
    %11 = vector.broadcast %10 : vector<1x128xf32> to vector<128x128xf32>
    %12 = arith.addf %7, %11 : vector<128x128xf32>
    %cst_6 = arith.constant 0.000000e+00 : f32
    %13 = vector.broadcast %cst_6 : f32 to vector<128x128xf32>
    %14 = arith.maximumf %12, %13 : vector<128x128xf32>
    %15 = vector.shape_cast %14 : vector<128x128xf32> to vector<16x8x128xf32>
    %16 = arith.truncf %15 : vector<16x8x128xf32> to vector<16x8x128xbf16>
    %c0_7 = arith.constant 0 : index
    %c0_8 = arith.constant 0 : index
    %c0_9 = arith.constant 0 : index
    %c0_10 = arith.constant 0 : index
    %17 = vector.load %arg6[%c0_7, %c0_8, %c0_9, %c0_10] : memref<1x16x8x128xbf16, #tpu.memory_space<vmem>>, vector<1x16x8x128xbf16>
    %18 = vector.shape_cast %17 : vector<1x16x8x128xbf16> to vector<16x8x128xbf16>
    %19 = vector.shape_cast %16 : vector<16x8x128xbf16> to vector<1x16x8x128xbf16>
    tpu.vector_store %arg6[%c0_7, %c0_8, %c0_9, %c0_10], %19 {strides = array<i32>} : memref<1x16x8x128xbf16, #tpu.memory_space<vmem>>, vector<1x16x8x128xbf16>,
    %c0_11 = arith.constant 0 : index
    %c512 = arith.constant 512 : index
    %20 = vector.load %arg8[%c0_11, %c512] : memref<128x1152xbf16, #tpu.memory_space<vmem>>, vector<128x128xbf16>
    %21 = arith.index_cast %arg1 : i32 to index
    %c0_12 = arith.constant 0 : index
    %c0_13 = arith.constant 0 : index
    %22 = vector.load %arg4[%21, %c0_12, %c0_13] : memref<1x128x128xbf16, #tpu.memory_space<vmem>>, vector<1x128x128xbf16>
    %23 = vector.shape_cast %22 : vector<1x128x128xbf16> to vector<128x128xbf16>
    %cst_14 = arith.constant dense<0.000000e+00> : vector<128x128xf32>
    %24 = tpu.matmul %20, %23, %cst_14 {dimension_numbers = #tpu.dot_dimension_numbers<[1], [0], [0], [1], [0, 0, 1, 1], [], []>} : vector<128x128xbf16>, vector<128x128xbf16>, vector<128x128xf32> -> vector<128x128xf32>
    %25 = vector.shape_cast %24 : vector<128x128xf32> to vector<16x8x128xf32>
    %26 = arith.truncf %25 : vector<16x8x128xf32> to vector<16x8x128xbf16>
    %c0_15 = arith.constant 0 : index
    %c0_16 = arith.constant 0 : index
    %c0_17 = arith.constant 0 : index
    %c0_18 = arith.constant 0 : index
    %27 = vector.load %arg7[%c0_15, %c0_16, %c0_17, %c0_18] : memref<1x16x8x128xbf16, #tpu.memory_space<vmem>>, vector<1x16x8x128xbf16>
    %28 = vector.shape_cast %27 : vector<1x16x8x128xbf16> to vector<16x8x128xbf16>
    %29 = vector.shape_cast %26 : vector<16x8x128xbf16> to vector<1x16x8x128xbf16>
    tpu.vector_store %arg7[%c0_15, %c0_16, %c0_17, %c0_18], %29 {strides = array<i32>} : memref<1x16x8x128xbf16, #tpu.memory_space<vmem>>, vector<1x16x8x128xbf16>,
    return
  }
  func.func @transform_0(%arg0: i32, %arg1: i32) -> (i32, i32, i32, i32) {
    %c0_i32 = arith.constant 0 : i32
    %c0_i32_0 = arith.constant 0 : i32
    %c0_i32_1 = arith.constant 0 : i32
    %c0_i32_2 = arith.constant 0 : i32
    return %arg0, %c0_i32, %c0_i32_0, %c0_i32_1 : i32, i32, i32, i32
  }
  func.func @transform_1(%arg0: i32, %arg1: i32) -> (i32, i32, i32) {
    %c0_i32 = arith.constant 0 : i32
    %c0_i32_0 = arith.constant 0 : i32
    %c0_i32_1 = arith.constant 0 : i32
    %c0_i32_2 = arith.constant 0 : i32
    return %c0_i32, %c0_i32_0, %c0_i32_1 : i32, i32, i32
  }
  func.func @transform_2(%arg0: i32, %arg1: i32) -> (i32, i32, i32) {
    %c0_i32 = arith.constant 0 : i32
    %c0_i32_0 = arith.constant 0 : i32
    %c0_i32_1 = arith.constant 0 : i32
    %c0_i32_2 = arith.constant 0 : i32
    return %c0_i32, %c0_i32_0, %c0_i32_1 : i32, i32, i32
  }
  func.func @transform_3(%arg0: i32, %arg1: i32) -> (i32, i32, i32) {
    %c0_i32 = arith.constant 0 : i32
    %c0_i32_0 = arith.constant 0 : i32
    %c0_i32_1 = arith.constant 0 : i32
    %c0_i32_2 = arith.constant 0 : i32
    return %c0_i32, %c0_i32_0, %c0_i32_1 : i32, i32, i32
  }
  func.func @transform_4(%arg0: i32, %arg1: i32) -> (i32, i32, i32, i32) {
    %c0_i32 = arith.constant 0 : i32
    %c0_i32_0 = arith.constant 0 : i32
    %c0_i32_1 = arith.constant 0 : i32
    return %arg0, %c0_i32, %c0_i32_0, %arg1 : i32, i32, i32, i32
  }
  func.func @transform_5(%arg0: i32, %arg1: i32) -> (i32, i32, i32, i32) {
    %c0_i32 = arith.constant 0 : i32
    %c0_i32_0 = arith.constant 0 : i32
    %c0_i32_1 = arith.constant 0 : i32
    return %arg0, %c0_i32, %c0_i32_0, %arg1 : i32, i32, i32, i32
  }
}

module attributes {stable_mosaic.version = 11 : i64} {
  func.func @kernel(%arg0: i32, %arg1: i32, %arg2: memref<1x20x10x128xbf16, #tpu.memory_space<vmem>>, %arg3: memref<1x1152x128xbf16, #tpu.memory_space<vmem>>, %arg4: memref<1x16x8x128xbf16, #tpu.memory_space<vmem>>, %arg5: memref<1x16x8x128xf32, #tpu.memory_space<vmem>>, %arg6: memref<128x1152xbf16, #tpu.memory_space<vmem>>) attributes {dimension_semantics = [#tpu.dimension_semantics<parallel>, #tpu.dimension_semantics<arbitrary>], iteration_bounds = array<i64: 1, 1>, scalar_prefetch = 0 : i64, scratch_operands = 1 : i64, tpu.core_type = #tpu.core_type<tc>, window_params = [{transform_indices = @transform_0, window_bounds = array<i64: 1, 20, 10, 128>}, {pipeline_mode = #tpu.pipeline_mode<synchronous>, transform_indices = @transform_1, window_bounds = array<i64: 1, 1152, 128>}, {transform_indices = @transform_2, window_bounds = array<i64: 1, 16, 8, 128>}, {transform_indices = @transform_3, window_bounds = array<i64: 1, 16, 8, 128>}]} {
    %c0_i32 = arith.constant 0 : i32
    %0 = arith.cmpi eq, %arg1, %c0_i32 : i32
    %1 = arith.extui %0 : i1 to i32
    %c0_i32_0 = arith.constant 0 : i32
    %2 = arith.cmpi ne, %1, %c0_i32_0 : i32
    scf.if %2 {
      %c0_12 = arith.constant 0 : index
      %c0_13 = arith.constant 0 : index
      %c0_14 = arith.constant 0 : index
      %c0_15 = arith.constant 0 : index
      %17 = vector.load %arg2[%c0_12, %c0_13, %c0_14, %c0_15] : memref<1x20x10x128xbf16, #tpu.memory_space<vmem>>, vector<1x8x8x128xbf16>
      %18 = vector.shape_cast %17 : vector<1x8x8x128xbf16> to vector<8x8x128xbf16>
      %19 = vector.shape_cast %18 : vector<8x8x128xbf16> to vector<64x128xbf16>
      %c0_16 = arith.constant 0 : index
      %c0_17 = arith.constant 0 : index
      %20 = vector.load %arg6[%c0_16, %c0_17] : memref<128x1152xbf16, #tpu.memory_space<vmem>>, vector<64x128xbf16>
      tpu.vector_store %arg6[%c0_16, %c0_17], %19 {strides = array<i32>} : memref<128x1152xbf16, #tpu.memory_space<vmem>>, vector<64x128xbf16>,
      %c0_18 = arith.constant 0 : index
      %c0_19 = arith.constant 0 : index
      %c1 = arith.constant 1 : index
      %c0_20 = arith.constant 0 : index
      %21 = vector.load %arg2[%c0_18, %c0_19, %c1, %c0_20] : memref<1x20x10x128xbf16, #tpu.memory_space<vmem>>, vector<1x8x8x128xbf16>
      %22 = vector.shape_cast %21 : vector<1x8x8x128xbf16> to vector<8x8x128xbf16>
      %23 = vector.shape_cast %22 : vector<8x8x128xbf16> to vector<64x128xbf16>
      %c0_21 = arith.constant 0 : index
      %c128 = arith.constant 128 : index
      %24 = vector.load %arg6[%c0_21, %c128] : memref<128x1152xbf16, #tpu.memory_space<vmem>>, vector<64x128xbf16>
      tpu.vector_store %arg6[%c0_21, %c128], %23 {strides = array<i32>} : memref<128x1152xbf16, #tpu.memory_space<vmem>>, vector<64x128xbf16>,
      %c0_22 = arith.constant 0 : index
      %c0_23 = arith.constant 0 : index
      %c2 = arith.constant 2 : index
      %c0_24 = arith.constant 0 : index
      %25 = vector.load %arg2[%c0_22, %c0_23, %c2, %c0_24] : memref<1x20x10x128xbf16, #tpu.memory_space<vmem>>, vector<1x8x8x128xbf16>
      %26 = vector.shape_cast %25 : vector<1x8x8x128xbf16> to vector<8x8x128xbf16>
      %27 = vector.shape_cast %26 : vector<8x8x128xbf16> to vector<64x128xbf16>
      %c0_25 = arith.constant 0 : index
      %c256 = arith.constant 256 : index
      %28 = vector.load %arg6[%c0_25, %c256] : memref<128x1152xbf16, #tpu.memory_space<vmem>>, vector<64x128xbf16>
      tpu.vector_store %arg6[%c0_25, %c256], %27 {strides = array<i32>} : memref<128x1152xbf16, #tpu.memory_space<vmem>>, vector<64x128xbf16>,
      %c0_26 = arith.constant 0 : index
      %c1_27 = arith.constant 1 : index
      %c0_28 = arith.constant 0 : index
      %c0_29 = arith.constant 0 : index
      %29 = vector.load %arg2[%c0_26, %c1_27, %c0_28, %c0_29] : memref<1x20x10x128xbf16, #tpu.memory_space<vmem>>, vector<1x8x8x128xbf16>
      %30 = vector.shape_cast %29 : vector<1x8x8x128xbf16> to vector<8x8x128xbf16>
      %31 = vector.shape_cast %30 : vector<8x8x128xbf16> to vector<64x128xbf16>
      %c0_30 = arith.constant 0 : index
      %c384 = arith.constant 384 : index
      %32 = vector.load %arg6[%c0_30, %c384] : memref<128x1152xbf16, #tpu.memory_space<vmem>>, vector<64x128xbf16>
      tpu.vector_store %arg6[%c0_30, %c384], %31 {strides = array<i32>} : memref<128x1152xbf16, #tpu.memory_space<vmem>>, vector<64x128xbf16>,
      %c0_31 = arith.constant 0 : index
      %c1_32 = arith.constant 1 : index
      %c1_33 = arith.constant 1 : index
      %c0_34 = arith.constant 0 : index
      %33 = vector.load %arg2[%c0_31, %c1_32, %c1_33, %c0_34] : memref<1x20x10x128xbf16, #tpu.memory_space<vmem>>, vector<1x8x8x128xbf16>
      %34 = vector.shape_cast %33 : vector<1x8x8x128xbf16> to vector<8x8x128xbf16>
      %35 = vector.shape_cast %34 : vector<8x8x128xbf16> to vector<64x128xbf16>
      %c0_35 = arith.constant 0 : index
      %c512 = arith.constant 512 : index
      %36 = vector.load %arg6[%c0_35, %c512] : memref<128x1152xbf16, #tpu.memory_space<vmem>>, vector<64x128xbf16>
      tpu.vector_store %arg6[%c0_35, %c512], %35 {strides = array<i32>} : memref<128x1152xbf16, #tpu.memory_space<vmem>>, vector<64x128xbf16>,
      %c0_36 = arith.constant 0 : index
      %c1_37 = arith.constant 1 : index
      %c2_38 = arith.constant 2 : index
      %c0_39 = arith.constant 0 : index
      %37 = vector.load %arg2[%c0_36, %c1_37, %c2_38, %c0_39] : memref<1x20x10x128xbf16, #tpu.memory_space<vmem>>, vector<1x8x8x128xbf16>
      %38 = vector.shape_cast %37 : vector<1x8x8x128xbf16> to vector<8x8x128xbf16>
      %39 = vector.shape_cast %38 : vector<8x8x128xbf16> to vector<64x128xbf16>
      %c0_40 = arith.constant 0 : index
      %c640 = arith.constant 640 : index
      %40 = vector.load %arg6[%c0_40, %c640] : memref<128x1152xbf16, #tpu.memory_space<vmem>>, vector<64x128xbf16>
      tpu.vector_store %arg6[%c0_40, %c640], %39 {strides = array<i32>} : memref<128x1152xbf16, #tpu.memory_space<vmem>>, vector<64x128xbf16>,
      %c0_41 = arith.constant 0 : index
      %c2_42 = arith.constant 2 : index
      %c0_43 = arith.constant 0 : index
      %c0_44 = arith.constant 0 : index
      %41 = vector.load %arg2[%c0_41, %c2_42, %c0_43, %c0_44] : memref<1x20x10x128xbf16, #tpu.memory_space<vmem>>, vector<1x8x8x128xbf16>
      %42 = vector.shape_cast %41 : vector<1x8x8x128xbf16> to vector<8x8x128xbf16>
      %43 = vector.shape_cast %42 : vector<8x8x128xbf16> to vector<64x128xbf16>
      %c0_45 = arith.constant 0 : index
      %c768 = arith.constant 768 : index
      %44 = vector.load %arg6[%c0_45, %c768] : memref<128x1152xbf16, #tpu.memory_space<vmem>>, vector<64x128xbf16>
      tpu.vector_store %arg6[%c0_45, %c768], %43 {strides = array<i32>} : memref<128x1152xbf16, #tpu.memory_space<vmem>>, vector<64x128xbf16>,
      %c0_46 = arith.constant 0 : index
      %c2_47 = arith.constant 2 : index
      %c1_48 = arith.constant 1 : index
      %c0_49 = arith.constant 0 : index
      %45 = vector.load %arg2[%c0_46, %c2_47, %c1_48, %c0_49] : memref<1x20x10x128xbf16, #tpu.memory_space<vmem>>, vector<1x8x8x128xbf16>
      %46 = vector.shape_cast %45 : vector<1x8x8x128xbf16> to vector<8x8x128xbf16>
      %47 = vector.shape_cast %46 : vector<8x8x128xbf16> to vector<64x128xbf16>
      %c0_50 = arith.constant 0 : index
      %c896 = arith.constant 896 : index
      %48 = vector.load %arg6[%c0_50, %c896] : memref<128x1152xbf16, #tpu.memory_space<vmem>>, vector<64x128xbf16>
      tpu.vector_store %arg6[%c0_50, %c896], %47 {strides = array<i32>} : memref<128x1152xbf16, #tpu.memory_space<vmem>>, vector<64x128xbf16>,
      %c0_51 = arith.constant 0 : index
      %c2_52 = arith.constant 2 : index
      %c2_53 = arith.constant 2 : index
      %c0_54 = arith.constant 0 : index
      %49 = vector.load %arg2[%c0_51, %c2_52, %c2_53, %c0_54] : memref<1x20x10x128xbf16, #tpu.memory_space<vmem>>, vector<1x8x8x128xbf16>
      %50 = vector.shape_cast %49 : vector<1x8x8x128xbf16> to vector<8x8x128xbf16>
      %51 = vector.shape_cast %50 : vector<8x8x128xbf16> to vector<64x128xbf16>
      %c0_55 = arith.constant 0 : index
      %c1024 = arith.constant 1024 : index
      %52 = vector.load %arg6[%c0_55, %c1024] : memref<128x1152xbf16, #tpu.memory_space<vmem>>, vector<64x128xbf16>
      tpu.vector_store %arg6[%c0_55, %c1024], %51 {strides = array<i32>} : memref<128x1152xbf16, #tpu.memory_space<vmem>>, vector<64x128xbf16>,
      %c0_56 = arith.constant 0 : index
      %c10 = arith.constant 10 : index
      %c0_57 = arith.constant 0 : index
      %c0_58 = arith.constant 0 : index
      %53 = vector.load %arg2[%c0_56, %c10, %c0_57, %c0_58] : memref<1x20x10x128xbf16, #tpu.memory_space<vmem>>, vector<1x8x8x128xbf16>
      %54 = vector.shape_cast %53 : vector<1x8x8x128xbf16> to vector<8x8x128xbf16>
      %55 = vector.shape_cast %54 : vector<8x8x128xbf16> to vector<64x128xbf16>
      %c64 = arith.constant 64 : index
      %c0_59 = arith.constant 0 : index
      %56 = vector.load %arg6[%c64, %c0_59] : memref<128x1152xbf16, #tpu.memory_space<vmem>>, vector<64x128xbf16>
      tpu.vector_store %arg6[%c64, %c0_59], %55 {strides = array<i32>} : memref<128x1152xbf16, #tpu.memory_space<vmem>>, vector<64x128xbf16>,
      %c0_60 = arith.constant 0 : index
      %c10_61 = arith.constant 10 : index
      %c1_62 = arith.constant 1 : index
      %c0_63 = arith.constant 0 : index
      %57 = vector.load %arg2[%c0_60, %c10_61, %c1_62, %c0_63] : memref<1x20x10x128xbf16, #tpu.memory_space<vmem>>, vector<1x8x8x128xbf16>
      %58 = vector.shape_cast %57 : vector<1x8x8x128xbf16> to vector<8x8x128xbf16>
      %59 = vector.shape_cast %58 : vector<8x8x128xbf16> to vector<64x128xbf16>
      %c64_64 = arith.constant 64 : index
      %c128_65 = arith.constant 128 : index
      %60 = vector.load %arg6[%c64_64, %c128_65] : memref<128x1152xbf16, #tpu.memory_space<vmem>>, vector<64x128xbf16>
      tpu.vector_store %arg6[%c64_64, %c128_65], %59 {strides = array<i32>} : memref<128x1152xbf16, #tpu.memory_space<vmem>>, vector<64x128xbf16>,
      %c0_66 = arith.constant 0 : index
      %c10_67 = arith.constant 10 : index
      %c2_68 = arith.constant 2 : index
      %c0_69 = arith.constant 0 : index
      %61 = vector.load %arg2[%c0_66, %c10_67, %c2_68, %c0_69] : memref<1x20x10x128xbf16, #tpu.memory_space<vmem>>, vector<1x8x8x128xbf16>
      %62 = vector.shape_cast %61 : vector<1x8x8x128xbf16> to vector<8x8x128xbf16>
      %63 = vector.shape_cast %62 : vector<8x8x128xbf16> to vector<64x128xbf16>
      %c64_70 = arith.constant 64 : index
      %c256_71 = arith.constant 256 : index
      %64 = vector.load %arg6[%c64_70, %c256_71] : memref<128x1152xbf16, #tpu.memory_space<vmem>>, vector<64x128xbf16>
      tpu.vector_store %arg6[%c64_70, %c256_71], %63 {strides = array<i32>} : memref<128x1152xbf16, #tpu.memory_space<vmem>>, vector<64x128xbf16>,
      %c0_72 = arith.constant 0 : index
      %c11 = arith.constant 11 : index
      %c0_73 = arith.constant 0 : index
      %c0_74 = arith.constant 0 : index
      %65 = vector.load %arg2[%c0_72, %c11, %c0_73, %c0_74] : memref<1x20x10x128xbf16, #tpu.memory_space<vmem>>, vector<1x8x8x128xbf16>
      %66 = vector.shape_cast %65 : vector<1x8x8x128xbf16> to vector<8x8x128xbf16>
      %67 = vector.shape_cast %66 : vector<8x8x128xbf16> to vector<64x128xbf16>
      %c64_75 = arith.constant 64 : index
      %c384_76 = arith.constant 384 : index
      %68 = vector.load %arg6[%c64_75, %c384_76] : memref<128x1152xbf16, #tpu.memory_space<vmem>>, vector<64x128xbf16>
      tpu.vector_store %arg6[%c64_75, %c384_76], %67 {strides = array<i32>} : memref<128x1152xbf16, #tpu.memory_space<vmem>>, vector<64x128xbf16>,
      %c0_77 = arith.constant 0 : index
      %c11_78 = arith.constant 11 : index
      %c1_79 = arith.constant 1 : index
      %c0_80 = arith.constant 0 : index
      %69 = vector.load %arg2[%c0_77, %c11_78, %c1_79, %c0_80] : memref<1x20x10x128xbf16, #tpu.memory_space<vmem>>, vector<1x8x8x128xbf16>
      %70 = vector.shape_cast %69 : vector<1x8x8x128xbf16> to vector<8x8x128xbf16>
      %71 = vector.shape_cast %70 : vector<8x8x128xbf16> to vector<64x128xbf16>
      %c64_81 = arith.constant 64 : index
      %c512_82 = arith.constant 512 : index
      %72 = vector.load %arg6[%c64_81, %c512_82] : memref<128x1152xbf16, #tpu.memory_space<vmem>>, vector<64x128xbf16>
      tpu.vector_store %arg6[%c64_81, %c512_82], %71 {strides = array<i32>} : memref<128x1152xbf16, #tpu.memory_space<vmem>>, vector<64x128xbf16>,
      %c0_83 = arith.constant 0 : index
      %c11_84 = arith.constant 11 : index
      %c2_85 = arith.constant 2 : index
      %c0_86 = arith.constant 0 : index
      %73 = vector.load %arg2[%c0_83, %c11_84, %c2_85, %c0_86] : memref<1x20x10x128xbf16, #tpu.memory_space<vmem>>, vector<1x8x8x128xbf16>
      %74 = vector.shape_cast %73 : vector<1x8x8x128xbf16> to vector<8x8x128xbf16>
      %75 = vector.shape_cast %74 : vector<8x8x128xbf16> to vector<64x128xbf16>
      %c64_87 = arith.constant 64 : index
      %c640_88 = arith.constant 640 : index
      %76 = vector.load %arg6[%c64_87, %c640_88] : memref<128x1152xbf16, #tpu.memory_space<vmem>>, vector<64x128xbf16>
      tpu.vector_store %arg6[%c64_87, %c640_88], %75 {strides = array<i32>} : memref<128x1152xbf16, #tpu.memory_space<vmem>>, vector<64x128xbf16>,
      %c0_89 = arith.constant 0 : index
      %c12 = arith.constant 12 : index
      %c0_90 = arith.constant 0 : index
      %c0_91 = arith.constant 0 : index
      %77 = vector.load %arg2[%c0_89, %c12, %c0_90, %c0_91] : memref<1x20x10x128xbf16, #tpu.memory_space<vmem>>, vector<1x8x8x128xbf16>
      %78 = vector.shape_cast %77 : vector<1x8x8x128xbf16> to vector<8x8x128xbf16>
      %79 = vector.shape_cast %78 : vector<8x8x128xbf16> to vector<64x128xbf16>
      %c64_92 = arith.constant 64 : index
      %c768_93 = arith.constant 768 : index
      %80 = vector.load %arg6[%c64_92, %c768_93] : memref<128x1152xbf16, #tpu.memory_space<vmem>>, vector<64x128xbf16>
      tpu.vector_store %arg6[%c64_92, %c768_93], %79 {strides = array<i32>} : memref<128x1152xbf16, #tpu.memory_space<vmem>>, vector<64x128xbf16>,
      %c0_94 = arith.constant 0 : index
      %c12_95 = arith.constant 12 : index
      %c1_96 = arith.constant 1 : index
      %c0_97 = arith.constant 0 : index
      %81 = vector.load %arg2[%c0_94, %c12_95, %c1_96, %c0_97] : memref<1x20x10x128xbf16, #tpu.memory_space<vmem>>, vector<1x8x8x128xbf16>
      %82 = vector.shape_cast %81 : vector<1x8x8x128xbf16> to vector<8x8x128xbf16>
      %83 = vector.shape_cast %82 : vector<8x8x128xbf16> to vector<64x128xbf16>
      %c64_98 = arith.constant 64 : index
      %c896_99 = arith.constant 896 : index
      %84 = vector.load %arg6[%c64_98, %c896_99] : memref<128x1152xbf16, #tpu.memory_space<vmem>>, vector<64x128xbf16>
      tpu.vector_store %arg6[%c64_98, %c896_99], %83 {strides = array<i32>} : memref<128x1152xbf16, #tpu.memory_space<vmem>>, vector<64x128xbf16>,
      %c0_100 = arith.constant 0 : index
      %c12_101 = arith.constant 12 : index
      %c2_102 = arith.constant 2 : index
      %c0_103 = arith.constant 0 : index
      %85 = vector.load %arg2[%c0_100, %c12_101, %c2_102, %c0_103] : memref<1x20x10x128xbf16, #tpu.memory_space<vmem>>, vector<1x8x8x128xbf16>
      %86 = vector.shape_cast %85 : vector<1x8x8x128xbf16> to vector<8x8x128xbf16>
      %87 = vector.shape_cast %86 : vector<8x8x128xbf16> to vector<64x128xbf16>
      %c64_104 = arith.constant 64 : index
      %c1024_105 = arith.constant 1024 : index
      %88 = vector.load %arg6[%c64_104, %c1024_105] : memref<128x1152xbf16, #tpu.memory_space<vmem>>, vector<64x128xbf16>
      tpu.vector_store %arg6[%c64_104, %c1024_105], %87 {strides = array<i32>} : memref<128x1152xbf16, #tpu.memory_space<vmem>>, vector<64x128xbf16>,
    } else {
    }
    %c0 = arith.constant 0 : index
    %c0_1 = arith.constant 0 : index
    %3 = vector.load %arg6[%c0, %c0_1] : memref<128x1152xbf16, #tpu.memory_space<vmem>>, vector<128x1152xbf16>
    %4 = arith.index_cast %arg1 : i32 to index
    %c0_2 = arith.constant 0 : index
    %c0_3 = arith.constant 0 : index
    %5 = vector.load %arg3[%4, %c0_2, %c0_3] : memref<1x1152x128xbf16, #tpu.memory_space<vmem>>, vector<1x1152x128xbf16>
    %6 = vector.shape_cast %5 : vector<1x1152x128xbf16> to vector<1152x128xbf16>
    %cst = arith.constant dense<0.000000e+00> : vector<128x128xf32>
    %7 = tpu.matmul %3, %6, %cst {dimension_numbers = #tpu.dot_dimension_numbers<[1], [0], [0], [1], [0, 0, 1, 1], [], []>} : vector<128x1152xbf16>, vector<1152x128xbf16>, vector<128x128xf32> -> vector<128x128xf32>
    %c0_4 = arith.constant 0 : index
    %c0_5 = arith.constant 0 : index
    %c0_6 = arith.constant 0 : index
    %c0_7 = arith.constant 0 : index
    %8 = vector.load %arg4[%c0_4, %c0_5, %c0_6, %c0_7] : memref<1x16x8x128xbf16, #tpu.memory_space<vmem>>, vector<1x16x8x128xbf16>
    %9 = vector.shape_cast %8 : vector<1x16x8x128xbf16> to vector<16x8x128xbf16>
    %10 = vector.shape_cast %9 : vector<16x8x128xbf16> to vector<128x128xbf16>
    %11 = arith.extf %10 : vector<128x128xbf16> to vector<128x128xf32>
    %12 = arith.addf %7, %11 : vector<128x128xf32>
    %13 = vector.shape_cast %12 : vector<128x128xf32> to vector<16x8x128xf32>
    %c0_8 = arith.constant 0 : index
    %c0_9 = arith.constant 0 : index
    %c0_10 = arith.constant 0 : index
    %c0_11 = arith.constant 0 : index
    %14 = vector.load %arg5[%c0_8, %c0_9, %c0_10, %c0_11] : memref<1x16x8x128xf32, #tpu.memory_space<vmem>>, vector<1x16x8x128xf32>
    %15 = vector.shape_cast %14 : vector<1x16x8x128xf32> to vector<16x8x128xf32>
    %16 = vector.shape_cast %13 : vector<16x8x128xf32> to vector<1x16x8x128xf32>
    tpu.vector_store %arg5[%c0_8, %c0_9, %c0_10, %c0_11], %16 {strides = array<i32>} : memref<1x16x8x128xf32, #tpu.memory_space<vmem>>, vector<1x16x8x128xf32>,
    return
  }
  func.func @transform_0(%arg0: i32, %arg1: i32) -> (i32, i32, i32, i32) {
    %c0_i32 = arith.constant 0 : i32
    %c0_i32_0 = arith.constant 0 : i32
    %c0_i32_1 = arith.constant 0 : i32
    %c0_i32_2 = arith.constant 0 : i32
    return %arg0, %c0_i32, %c0_i32_0, %c0_i32_1 : i32, i32, i32, i32
  }
  func.func @transform_1(%arg0: i32, %arg1: i32) -> (i32, i32, i32) {
    %c0_i32 = arith.constant 0 : i32
    %c0_i32_0 = arith.constant 0 : i32
    %c0_i32_1 = arith.constant 0 : i32
    %c0_i32_2 = arith.constant 0 : i32
    return %c0_i32, %c0_i32_0, %c0_i32_1 : i32, i32, i32
  }
  func.func @transform_2(%arg0: i32, %arg1: i32) -> (i32, i32, i32, i32) {
    %c0_i32 = arith.constant 0 : i32
    %c0_i32_0 = arith.constant 0 : i32
    %c0_i32_1 = arith.constant 0 : i32
    return %arg0, %c0_i32, %c0_i32_0, %arg1 : i32, i32, i32, i32
  }
  func.func @transform_3(%arg0: i32, %arg1: i32) -> (i32, i32, i32, i32) {
    %c0_i32 = arith.constant 0 : i32
    %c0_i32_0 = arith.constant 0 : i32
    %c0_i32_1 = arith.constant 0 : i32
    return %arg0, %c0_i32, %c0_i32_0, %arg1 : i32, i32, i32, i32
  }
}

</mosaic_0001>

<bundles_post_ra>
// kernel: wrn_basic_block.2
= control target key start
LH: loop header
LB: loop body
LE: loop exit
PB: predicated region body
PF: predicated region fallthrough
CT: control target
= control target key end

     0   :  { %vm73_vm0 = vsmask.f32 3328  ;;  %vm74_vm1 = vsmask.f32 7440  ;;  %s5083_s1 = inlined_call_operand.vmem [shape: bf16[1,1152,128], index: 1, kind: input, shape index: {}]   ;;  %s5084_s0 = inlined_call_operand.vmem [shape: bf16[1,72,9,128], index: 0, kind: input, shape index: {}]   ;;  %s5085_s2 = inlined_call_operand.vmem [shape: bf16[1,128,128], index: 2, kind: input, shape index: {}]   ;;  %s5086_s3 = inlined_call_operand.vmem [shape: f32[1,1,128], index: 3, kind: input, shape index: {}]   ;;  %s5087_s5 = inlined_call_operand.vmem [shape: bf16[1,16,8,128], index: 5, kind: output, shape index: {1}]   ;;  %s5088_s4 = inlined_call_operand.vmem [shape: bf16[1,16,8,128], index: 4, kind: output, shape index: {0}]  }
   0x1   :  { %v3704_v0 = vld [vmem:[%s5083_s1 + $0x78] sm:$0xff]   ;;  %v3708_v4 = vld [vmem:[%s5083_s1 + $0x70] sm:$0xff]   ;;  %v3712_v8 = vld [vmem:[%s5083_s1 + $0x68] sm:$0xff]  }
   0x2   :  { %v3705_v1 = vld [vmem:[%s5083_s1 + $0xf8] sm:$0xff]   ;;  %3352 = vmatprep.subr.bf16.mxu0 %v3704_v0  ;;  %v3709_v5 = vld [vmem:[%s5083_s1 + $0xf0] sm:$0xff]   ;;  %v3713_v9 = vld [vmem:[%s5083_s1 + $0xe8] sm:$0xff]  }
   0x3   :  { %v3706_v2 = vld [vmem:[%s5083_s1 + $0x38] sm:$0xff]   ;;  %3416 = vmatprep.subr.bf16.mxu1 %v3705_v1  ;;  %v3710_v6 = vld [vmem:[%s5083_s1 + $0x30] sm:$0xff]   ;;  %v3714_v10 = vld [vmem:[%s5083_s1 + $0x28] sm:$0xff]  }
   0x4   :  { %v3707_v3 = vld [vmem:[%s5083_s1 + $0xb8] sm:$0xff]   ;;  %3353 = vmatpush3.bf16.msra.mxu0 %v3706_v2  ;;  %v3711_v7 = vld [vmem:[%s5083_s1 + $0xb0] sm:$0xff]   ;;  %v3715_v11 = vld [vmem:[%s5083_s1 + $0xa8] sm:$0xff]  }
   0x5   :  { %3417 = vmatpush3.bf16.msra.mxu1 %v3707_v3  ;;  %3354 = vmatprep.subr.bf16.mxu0 %v3708_v4  ;;  %v3716_v12 = vld [vmem:[%s5083_s1 + $0x60] sm:$0xff]   ;;  %v3720_v16 = vld [vmem:[%s5083_s1 + $0x58] sm:$0xff]   ;;  %v3724_v20 = vld [vmem:[%s5083_s1 + $0x50] sm:$0xff]  }
   0x6   :  { %3418 = vmatprep.subr.bf16.mxu1 %v3709_v5  ;;  %v3717_v13 = vld [vmem:[%s5083_s1 + $0xe0] sm:$0xff]   ;;  %v3721_v17 = vld [vmem:[%s5083_s1 + $0xd8] sm:$0xff]   ;;  %v3725_v21 = vld [vmem:[%s5083_s1 + $0xd0] sm:$0xff]  }
   0x7   :  { %v3718_v14 = vld [vmem:[%s5083_s1 + $0x20] sm:$0xff]   ;;  %v3722_v18 = vld [vmem:[%s5083_s1 + $0x18] sm:$0xff]   ;;  %v3726_v22 = vld [vmem:[%s5083_s1 + $0x10] sm:$0xff]  }
   0x8   :  { %3355 = vmatpush3.bf16.msra.mxu0 %v3710_v6  ;;  %v3719_v15 = vld [vmem:[%s5083_s1 + $0xa0] sm:$0xff]   ;;  %v3723_v19 = vld [vmem:[%s5083_s1 + $0x98] sm:$0xff]   ;;  %v3727_v23 = vld [vmem:[%s5083_s1 + $0x90] sm:$0xff]  }
   0x9   :  { %3419 = vmatpush3.bf16.msra.mxu1 %v3711_v7  ;;  %3356 = vmatprep.subr.bf16.mxu0 %v3712_v8  ;;  %v3728_v24 = vld [vmem:[%s5083_s1 + $0x48] sm:$0xff]   ;;  %v3732_v28 = vld [vmem:[%s5083_s1 + $0x40] sm:$0xff]   ;;  %v2930_v35 = vld [vmem:[%s5084_s0 + $0x50] sm:$0xf] }
   0xa   :  { %3420 = vmatprep.subr.bf16.mxu1 %v3713_v9  ;;  %v3729_v25 = vld [vmem:[%s5083_s1 + $0xc8] sm:$0xff]   ;;  %v3733_v29 = vld [vmem:[%s5083_s1 + $0xc0] sm:$0xff]   ;;  %50 = vst [vmem:[#allocation2 + $0x28] sm:$0xf] %v2930_v35  ;;  %v2937_v46 = vld [vmem:[%s5084_s0 + $0x90] sm:$0xf] }
   0xb   :  { %v3730_v26 = vld [vmem:[%s5083_s1 + $0x8] sm:$0xff]   ;;  %v3734_v30 = vld [vmem:[%s5083_s1] sm:$0xff]   ;;  %v2938_v49 = vld [vmem:[%s5084_s0 + $0x98] sm:$0xf]  ;;  %213 = vst [vmem:[#allocation2 + $0xc] sm:$0xf] %v2937_v46 }
   0xc   :  { %3357 = vmatpush3.bf16.msra.mxu0 %v3714_v10  ;;  %v3731_v27 = vld [vmem:[%s5083_s1 + $0x88] sm:$0xff]   ;;  %v3735_v31 = vld [vmem:[%s5083_s1 + $0x80] sm:$0xff]   ;;  %vm4040_vm2 = vmor %vm73_vm0, %vm74_vm1  ;;  %214 = vst [vmem:[#allocation2 + $0x30] sm:$0xf] %v2938_v49 }
   0xd   :  { %3421 = vmatpush3.bf16.msra.mxu1 %v3715_v11  ;;  %3358 = vmatprep.subr.bf16.mxu0 %v3716_v12  ;;  %v24_v32 = vld [vmem:[%s5084_s0] sm:$0xf]  ;;  %v25_v33 = vld [vmem:[%s5084_s0 + $0x8] sm:$0xf]  ;;  %v58_v37 = vld [vmem:[%s5084_s0 + $0x4] sm:$0x1] }
   0xe   :  { %3422 = vmatprep.subr.bf16.mxu1 %v3717_v13  ;;  %v2929_v34 = vld [vmem:[%s5084_s0 + $0x48] sm:$0xf]  ;;  %32 = vst [vmem:[#allocation2] sm:$0xf] %v24_v32  ;;  %33 = vst [vmem:[#allocation2 + $0x24] sm:$0xf] %v25_v33 }
   0xf   :  { %49 = vst [vmem:[#allocation2 + $0x4] sm:$0xf] %v2929_v34  ;;  %v57_v36 = vld [vmem:[%s5084_s0] sm:$0xf]  ;;  %v59_v38 = vld [vmem:[%s5084_s0 + $0x8] sm:$0xf] }
  0x10   :  { %3359 = vmatpush3.bf16.msra.mxu0 %v3718_v14  ;;  %v60_v39 = vld [vmem:[%s5084_s0 + $0xc] sm:$0x1]  ;;  %v77_v40 = vshrl.u32 %v57_v36, 16  ;;  %v80_v41 = vshll.u32 %v57_v36, 16  ;;  %v86_v42 = vshll.u32 %v58_v37, 16  ;;  %v91_v43 = vshrl.u32 %v59_v38, 16 }
  0x11   :  { %3423 = vmatpush3.bf16.msra.mxu1 %v3719_v15  ;;  %3360 = vmatprep.subr.bf16.mxu0 %v3720_v16  ;;  %v94_v44 = vshll.u32 %v59_v38, 16  ;;  %v100_v45 = vshll.u32 %v60_v39, 16  ;;  %v3742_v55 = vld [vmem:[%s5083_s1 + $0x178] sm:$0xff]   ;;  %v26_v1 = vld [vmem:[%s5084_s0 + $0x10] sm:$0xf] }
  0x12   :  { %3424 = vmatprep.subr.bf16.mxu1 %v3721_v17  ;;  %v79_v47 = vrot.slane %v77_v40, 4  ;;  %v82_v48 = vrot.slane %v80_v41, 5  ;;  %v93_v51 = vrot.slane %v91_v43, 4  ;;  %v88_v54 = vrot.slane %v86_v42, 5  ;;  %v3743_v58 = vld [vmem:[%s5083_s1 + $0x138] sm:$0xff]   ;;  %v3754_v39 = vld [vmem:[%s5083_s1 + $0x1b0] sm:$0xff]  }
  0x13   :  { %v96_v52 = vrot.slane %v94_v44, 5  ;;  %v102_v57 = vrot.slane %v100_v45, 5  ;;  %v3744_v60 = vld [vmem:[%s5083_s1 + $0x1f8] sm:$0xff]   ;;  %34 = vst [vmem:[#allocation2 + $0x48] sm:$0xf] %v26_v1 }
  0x14   :  { %3361 = vmatpush3.bf16.msra.mxu0 %v3722_v18  ;;  %v83_v53 = vor.u32 %v82_v48, %v79_v47  ;;  %v27_v3 = vld [vmem:[%s5084_s0 + $0x18] sm:$0xf]  ;;  %v2932_v5 = vld [vmem:[%s5084_s0 + $0x60] sm:$0xf]  ;;  %v61_v6 = vld [vmem:[%s5084_s0 + $0x10] sm:$0xf] }
  0x15   :  { %3425 = vmatpush3.bf16.msra.mxu1 %v3723_v19  ;;  %3362 = vmatprep.subr.bf16.mxu0 %v3724_v20  ;;  %v97_v56 = vor.u32 %v96_v52, %v93_v51  ;;  %v3736_v61 = vld [vmem:[#allocation2] ss:$36 sps:$4 sm:$0xff]   ;;  %v2931_v4 = vld [vmem:[%s5084_s0 + $0x58] sm:$0xf]  ;;  %35 = vst [vmem:[#allocation2 + $0x6c] sm:$0xf] %v27_v3 }
  0x16   :  { %3426 = vmatprep.subr.bf16.mxu1 %v3725_v21  ;;  %v84_v59 = vrot.slane %v83_v53, 4  ;;  %v3738_v62 = vld [vmem:[#allocation2 + $0x4] ss:$36 sps:$4 sm:$0xff]   ;;  %51 = vst [vmem:[#allocation2 + $0x4c] sm:$0xf] %v2931_v4  ;;  %v105_v10 = vshrl.u32 %v61_v6, 16 }
  0x17   :  { %v98_v63 = vrot.slane %v97_v56, 4  ;;  %2160 = vmatprep.mubr.bf16.mxu0 %v3738_v62  ;;  %52 = vst [vmem:[#allocation2 + $0x70] sm:$0xf] %v2932_v5  ;;  %v62_v7 = vld [vmem:[%s5084_s0 + $0x14] sm:$0x1]  ;;  %v108_v11 = vshll.u32 %v61_v6, 16 }
  0x18   :  { %3363 = vmatpush3.bf16.msra.mxu0 %v3726_v22  ;;  %v89_v0 = vsel %vm4040_vm2, %v84_v59, %v88_v54  ;;  %v63_v8 = vld [vmem:[%s5084_s0 + $0x18] sm:$0xf]  ;;  %v64_v9 = vld [vmem:[%s5084_s0 + $0x1c] sm:$0x1]  ;;  %v114_v12 = vshll.u32 %v62_v7, 16  ;;  %v107_v18 = vrot.slane %v105_v10, 4 }
  0x19   :  { %3427 = vmatpush3.bf16.msra.mxu1 %v3727_v23  ;;  %3364 = vmatprep.subr.bf16.mxu0 %v3728_v24  ;;  %v103_v2 = vsel %vm4040_vm2, %v98_v63, %v102_v57  ;;  %196 = vst [vmem:[#allocation2 + $0x8] sm:$0xf] %v89_v0  ;;  %v119_v13 = vshrl.u32 %v63_v8, 16  ;;  %v122_v14 = vshll.u32 %v63_v8, 16  ;;  %v128_v15 = vshll.u32 %v64_v9, 16  ;;  %v3751_v23 = vld [vmem:[%s5083_s1 + $0x170] sm:$0xff]  }
  0x1a   :  { %3428 = vmatprep.subr.bf16.mxu1 %v3729_v25  ;;  %197 = vst [vmem:[#allocation2 + $0x2c] sm:$0xf] %v103_v2  ;;  %v2939_v16 = vld [vmem:[%s5084_s0 + $0xa0] sm:$0xf]  ;;  %v2940_v17 = vld [vmem:[%s5084_s0 + $0xa8] sm:$0xf] }
  0x1b   :  { %v110_v19 = vrot.slane %v108_v11, 5  ;;  %v121_v20 = vrot.slane %v119_v13, 4  ;;  %215 = vst [vmem:[#allocation2 + $0x54] sm:$0xf] %v2939_v16  ;;  %216 = vst [vmem:[#allocation2 + $0x78] sm:$0xf] %v2940_v17 }
  0x1c   :  { %3365 = vmatpush3.bf16.msra.mxu0 %v3730_v26  ;;  %v116_v21 = vrot.slane %v114_v12, 5  ;;  %v124_v22 = vrot.slane %v122_v14, 5  ;;  %v3752_v24 = vld [vmem:[%s5083_s1 + $0x130] sm:$0xff]   ;;  %v3745_v25 = vld [vmem:[%s5083_s1 + $0x1b8] sm:$0xff]   ;;  %v28_v41 = vld [vmem:[%s5084_s0 + $0x20] sm:$0xf] }
  0x1d   :  { %3429 = vmatpush3.bf16.msra.mxu1 %v3731_v27  ;;  %3366 = vmatprep.subr.bf16.mxu0 %v3732_v28  ;;  %v111_v26 = vor.u32 %v110_v19, %v107_v18  ;;  %v130_v28 = vrot.slane %v128_v15, 5  ;;  %v1104_v33 = vld [vmem:[#allocation2 + $0x48] sm:$0xff]  ;;  %36 = vst [vmem:[#allocation2 + $0x90] sm:$0xf] %v28_v41  ;;  %v2934_v44 = vld [vmem:[%s5084_s0 + $0x70] sm:$0xf] }
  0x1e   :  { %3430 = vmatprep.subr.bf16.mxu1 %v3733_v29  ;;  %v125_v27 = vor.u32 %v124_v22, %v121_v20  ;;  %v3753_v29 = vld [vmem:[%s5083_s1 + $0x1f0] sm:$0xff]   ;;  %v29_v42 = vld [vmem:[%s5084_s0 + $0x28] sm:$0xf]  ;;  %v65_v45 = vld [vmem:[%s5084_s0 + $0x20] sm:$0xf] }
  0x1f   :  { %v112_v32 = vrot.slane %v111_v26, 4  ;;  %v1109_v34 = vld [vmem:[#allocation2 + $0x6c] sm:$0xff]  ;;  %v2933_v43 = vld [vmem:[%s5084_s0 + $0x68] sm:$0xf]  ;;  %37 = vst [vmem:[#allocation2 + $0xb4] sm:$0xf] %v29_v42 }
  0x20   :  { %3367 = vmatpush3.bf16.msra.mxu0 %v3734_v30  ;;  %v3746_v35 = vld [vmem:[#allocation2 + $0x4c] ss:$36 sps:$4 sm:$0xff]   ;;  %v126_v36 = vrot.slane %v125_v27, 4  ;;  %v3107_v38 = vcombine.low %v1104_v33, %v1109_v34  ;;  %53 = vst [vmem:[#allocation2 + $0x94] sm:$0xf] %v2933_v43  ;;  %v133_v49 = vshrl.u32 %v65_v45, 16 }
  0x21   :  { %3431 = vmatpush3.bf16.msra.mxu1 %v3735_v31  ;;  %3480 = vmatprep.subr.bf16.mxu0 %v3742_v55  ;;  %v3739_v30 = vld [vmem:[#allocation2 + $0x8] ss:$36 sps:$4 sm:$0xff]   ;;  %v117_v37 = vsel %vm4040_vm2, %v112_v32, %v116_v21  ;;  %v66_v46 = vld [vmem:[%s5084_s0 + $0x24] sm:$0x1]  ;;  %54 = vst [vmem:[#allocation2 + $0xb8] sm:$0xf] %v2934_v44 }
  0x22   :  { %3544 = vmatprep.subr.bf16.mxu1 %v3744_v60  ;;  %v3741_v31 = vld [vmem:[#allocation2 + $0xc] ss:$36 sps:$4 sm:$0xff]   ;;  %v131_v40 = vsel %vm4040_vm2, %v126_v36, %v130_v28  ;;  %198 = vst [vmem:[#allocation2 + $0x50] sm:$0xf] %v117_v37  ;;  %v67_v47 = vld [vmem:[%s5084_s0 + $0x28] sm:$0xf] }
  0x23   :  { %2161 = vmatmul.mubr.bf16.vlgmr.msra.gmra.mxu0 %v3736_v61  ;;  %2257 = vmatprep.mubr.bf16.mxu1 %v3741_v31  ;;  %199 = vst [vmem:[#allocation2 + $0x74] sm:$0xf] %v131_v40  ;;  %v68_v48 = vld [vmem:[%s5084_s0 + $0x2c] sm:$0x1]  ;;  %v136_v51 = vshll.u32 %v65_v45, 16  ;;  %v142_v52 = vshll.u32 %v66_v46, 16 }
  0x24   :  { %3481 = vmatpush3.bf16.msra.mxu0 %v3743_v58  ;;  %2258 = vmatmul.mubr.bf16.vlgmr.msra.gmra.mxu1 %v3739_v30  ;;  %v147_v53 = vshrl.u32 %v67_v47, 16  ;;  %v150_v54 = vshll.u32 %v67_v47, 16  ;;  %v156_v55 = vshll.u32 %v68_v48, 16  ;;  %v2941_v56 = vld [vmem:[%s5084_s0 + $0xb0] sm:$0xf]  ;;  %v135_v57 = vrot.slane %v133_v49, 4 }
  0x25   :  { %3482 = vmatprep.subr.bf16.mxu0 %v3751_v23  ;;  %2168 = vmatprep.mubr.bf16.mxu0 %v3746_v35  ;;  %v138_v58 = vrot.slane %v136_v51, 5  ;;  %v2942_v59 = vld [vmem:[%s5084_s0 + $0xb8] sm:$0xf]  ;;  %217 = vst [vmem:[#allocation2 + $0x9c] sm:$0xf] %v2941_v56  ;;  %v144_v63 = vrot.slane %v142_v52, 5 }
  0x26   :  { %3545 = vmatpush3.bf16.msra.mxu1 %v3745_v25  ;;  %v149_v60 = vrot.slane %v147_v53, 4  ;;  %v152_v61 = vrot.slane %v150_v54, 5  ;;  %218 = vst [vmem:[#allocation2 + $0xc0] sm:$0xf] %v2942_v59  ;;  %v3760_v0 = vld [vmem:[%s5083_s1 + $0x168] sm:$0xff]   ;;  %v158_v2 = vrot.slane %v156_v55, 5 }
  0x27   :  { %3546 = vmatprep.subr.bf16.mxu1 %v3753_v29  ;;  %v139_v62 = vor.u32 %v138_v58, %v135_v57  ;;  %v3761_v3 = vld [vmem:[%s5083_s1 + $0x128] sm:$0xff]   ;;  %v3748_v4 = vld [vmem:[#allocation2 + $0x54] ss:$36 sps:$4 sm:$0xff]   ;;  %v30_v16 = vld [vmem:[%s5084_s0 + $0x30] sm:$0xf] }
  0x28   :  { %3483 = vmatpush3.bf16.msra.mxu0 %v3752_v24  ;;  %v153_v1 = vor.u32 %v152_v61, %v149_v60  ;;  %v1114_v7 = vld [vmem:[#allocation2 + $0x90] sm:$0xff]  ;;  %2265 = vmatprep.mubr.bf16.mxu1 %v3748_v4  ;;  %v3762_v13 = vld [vmem:[%s5083_s1 + $0x1e8] sm:$0xff]   ;;  %v31_v17 = vld [vmem:[%s5084_s0 + $0x38] sm:$0xf]  ;;  %38 = vst [vmem:[#allocation2 + $0xd8] sm:$0xf] %v30_v16 }
  0x29   :  { %v140_v6 = vrot.slane %v139_v62, 4  ;;  %3484 = vmatprep.subr.bf16.mxu0 %v3760_v0  ;;  %v1119_v8 = vld [vmem:[#allocation2 + $0xb4] sm:$0xff]  ;;  %v3763_v15 = vld [vmem:[%s5083_s1 + $0x1a8] sm:$0xff]   ;;  %v2936_v19 = vld [vmem:[%s5084_s0 + $0x80] sm:$0xf] }
  0x2a   :  { %3547 = vmatpush3.bf16.msra.mxu1 %v3754_v39  ;;  %v3750_v5 = vld [vmem:[#allocation2 + $0x50] ss:$36 sps:$4 sm:$0xff]   ;;  %v154_v10 = vrot.slane %v153_v1, 4  ;;  %v3116_v12 = vcombine.low %v1114_v7, %v1119_v8  ;;  %v2935_v18 = vld [vmem:[%s5084_s0 + $0x78] sm:$0xf]  ;;  %v3769_v36 = vld [vmem:[%s5083_s1 + $0x160] sm:$0xff]  }
  0x2b   :  { %2169 = vmatmul.mubr.bf16.gmra.mxu0 %v3107_v38  ;;  %v3755_v9 = vld [vmem:[#allocation2 + $0x94] ss:$36 sps:$4 sm:$0xff]   ;;  %v145_v11 = vsel %vm4040_vm2, %v140_v6, %v144_v63  ;;  %3548 = vmatprep.subr.bf16.mxu1 %v3762_v13  ;;  %39 = vst [vmem:[#allocation2 + $0xfc] sm:$0xf] %v31_v17  ;;  %55 = vst [vmem:[#allocation2 + $0xdc] sm:$0xf] %v2935_v18 }
  0x2c   :  { %3485 = vmatpush3.bf16.msra.mxu0 %v3761_v3  ;;  %2266 = vmatmul.mubr.bf16.gmra.mxu1 %v3750_v5  ;;  %v159_v14 = vsel %vm4040_vm2, %v154_v10, %v158_v2  ;;  %200 = vst [vmem:[#allocation2 + $0x98] sm:$0xf] %v145_v11  ;;  %56 = vst [vmem:[#allocation2 + $0x100] sm:$0xf] %v2936_v19  ;;  %v69_v20 = vld [vmem:[%s5084_s0 + $0x30] sm:$0xf] }
  0x2d   :  { %2176 = vmatprep.mubr.bf16.mxu0 %v3755_v9  ;;  %201 = vst [vmem:[#allocation2 + $0xbc] sm:$0xf] %v159_v14  ;;  %v70_v21 = vld [vmem:[%s5084_s0 + $0x34] sm:$0x1]  ;;  %v71_v22 = vld [vmem:[%s5084_s0 + $0x38] sm:$0xf]  ;;  %3486 = vmatprep.subr.bf16.mxu0 %v3769_v36 }
  0x2e   :  { %3549 = vmatpush3.bf16.msra.mxu1 %v3763_v15  ;;  %v72_v23 = vld [vmem:[%s5084_s0 + $0x3c] sm:$0x1]  ;;  %v161_v24 = vshrl.u32 %v69_v20, 16  ;;  %v164_v25 = vshll.u32 %v69_v20, 16  ;;  %v170_v26 = vshll.u32 %v70_v21, 16  ;;  %v175_v27 = vshrl.u32 %v71_v22, 16 }
  0x2f   :  { %v178_v28 = vshll.u32 %v71_v22, 16  ;;  %v184_v29 = vshll.u32 %v72_v23, 16  ;;  %v2943_v30 = vld [vmem:[%s5084_s0 + $0xc0] sm:$0xf]  ;;  %v2944_v31 = vld [vmem:[%s5084_s0 + $0xc8] sm:$0xf] }
  0x30   :  { %v163_v32 = vrot.slane %v161_v24, 4  ;;  %v166_v33 = vrot.slane %v164_v25, 5  ;;  %v177_v34 = vrot.slane %v175_v27, 4  ;;  %219 = vst [vmem:[#allocation2 + $0xe4] sm:$0xf] %v2943_v30  ;;  %v3770_v37 = vld [vmem:[%s5083_s1 + $0x120] sm:$0xff]  }
  0x31   :  { %220 = vst [vmem:[#allocation2 + $0x108] sm:$0xf] %v2944_v31  ;;  %v180_v35 = vrot.slane %v178_v28, 5  ;;  %v172_v39 = vrot.slane %v170_v26, 5  ;;  %v3757_v40 = vld [vmem:[#allocation2 + $0x9c] ss:$36 sps:$4 sm:$0xff]   ;;  %3487 = vmatpush3.bf16.msra.mxu0 %v3770_v37 }
  0x32   :  { %v167_v38 = vor.u32 %v166_v33, %v163_v32  ;;  %v186_v43 = vrot.slane %v184_v29, 5  ;;  %v1124_v44 = vld [vmem:[#allocation2 + $0xd8] sm:$0xff]  ;;  %2273 = vmatprep.mubr.bf16.mxu1 %v3757_v40  ;;  %v3771_v51 = vld [vmem:[%s5083_s1 + $0x1e0] sm:$0xff]   ;;  %v3002_v56 = vld [vmem:[%s5084_s0 + $0x128] sm:$0xf] }
  0x33   :  { %2177 = vmatmul.mubr.bf16.gmra.mxu0 %v3116_v12  ;;  %v181_v42 = vor.u32 %v180_v35, %v177_v34  ;;  %v1129_v45 = vld [vmem:[#allocation2 + $0xfc] sm:$0xff]  ;;  %3550 = vmatprep.subr.bf16.mxu1 %v3771_v51  ;;  %v3009_v57 = vld [vmem:[%s5084_s0 + $0x168] sm:$0xf]  ;;  %570 = vst [vmem:[#allocation2 + $0x144] sm:$0xf] %v3002_v56  ;;  %v3788_v51 = vld [vmem:[%s5083_s1 + $0x110] sm:$0xff]  }
  0x34   :  { %v3759_v41 = vld [vmem:[#allocation2 + $0x98] ss:$36 sps:$4 sm:$0xff]   ;;  %v168_v47 = vrot.slane %v167_v38, 4  ;;  %v3125_v49 = vcombine.low %v1124_v44, %v1129_v45  ;;  %v3772_v53 = vld [vmem:[%s5083_s1 + $0x1a0] sm:$0xff]   ;;  %v3010_v58 = vld [vmem:[%s5084_s0 + $0x170] sm:$0xf] }
  0x35   :  { %v3764_v46 = vld [vmem:[#allocation2 + $0xdc] ss:$36 sps:$4 sm:$0xff]   ;;  %v182_v48 = vrot.slane %v181_v42, 4  ;;  %2274 = vmatmul.mubr.bf16.gmra.mxu1 %v3759_v41  ;;  %586 = vst [vmem:[#allocation2 + $0x124] sm:$0xf] %v3009_v57 }
  0x36   :  { %2184 = vmatprep.mubr.bf16.mxu0 %v3764_v46  ;;  %v173_v52 = vsel %vm4040_vm2, %v168_v47, %v172_v39  ;;  %v3001_v55 = vld [vmem:[%s5084_s0 + $0x120] sm:$0xf]  ;;  %3551 = vmatpush3.bf16.msra.mxu1 %v3772_v53  ;;  %v3018_v60 = vld [vmem:[%s5084_s0 + $0x124] sm:$0x1]  ;;  %587 = vst [vmem:[#allocation2 + $0x148] sm:$0xf] %v3010_v58 }
  0x37   :  { %v187_v54 = vsel %vm4040_vm2, %v182_v48, %v186_v43  ;;  %202 = vst [vmem:[#allocation2 + $0xe0] sm:$0xf] %v173_v52  ;;  %569 = vst [vmem:[#allocation2 + $0x120] sm:$0xf] %v3001_v55  ;;  %v3017_v59 = vld [vmem:[%s5084_s0 + $0x120] sm:$0xf] }
  0x38   :  { %203 = vst [vmem:[#allocation2 + $0x104] sm:$0xf] %v187_v54  ;;  %v3019_v61 = vld [vmem:[%s5084_s0 + $0x128] sm:$0xf]  ;;  %v3020_v62 = vld [vmem:[%s5084_s0 + $0x12c] sm:$0x1] }
  0x39   :  { %v611_v63 = vshrl.u32 %v3017_v59, 16  ;;  %v614_v0 = vshll.u32 %v3017_v59, 16  ;;  %v620_v1 = vshll.u32 %v3018_v60, 16  ;;  %v625_v2 = vshrl.u32 %v3019_v61, 16  ;;  %v3033_v5 = vld [vmem:[%s5084_s0 + $0x1b0] sm:$0xf] }
  0x3a   :  { %v628_v3 = vshll.u32 %v3019_v61, 16  ;;  %v634_v4 = vshll.u32 %v3020_v62, 16  ;;  %v3034_v8 = vld [vmem:[%s5084_s0 + $0x1b8] sm:$0xf]  ;;  %747 = vst [vmem:[#allocation2 + $0x12c] sm:$0xf] %v3033_v5 }
  0x3b   :  { %2185 = vmatmul.mubr.bf16.gmra.mxu0 %v3125_v49  ;;  %v613_v6 = vrot.slane %v611_v63, 4  ;;  %v616_v7 = vrot.slane %v614_v0, 5  ;;  %v627_v9 = vrot.slane %v625_v2, 4  ;;  %748 = vst [vmem:[#allocation2 + $0x150] sm:$0xf] %v3034_v8  ;;  %v622_v12 = vrot.slane %v620_v1, 5 }
  0x3c   :  { %v630_v10 = vrot.slane %v628_v3, 5  ;;  %v3778_v13 = vld [vmem:[%s5083_s1 + $0x158] sm:$0xff]   ;;  %v636_v15 = vrot.slane %v634_v4, 5  ;;  %v3766_v17 = vld [vmem:[#allocation2 + $0xe4] ss:$36 sps:$4 sm:$0xff]   ;;  %v3787_v49 = vld [vmem:[%s5083_s1 + $0x150] sm:$0xff]  }
  0x3d   :  { %v617_v11 = vor.u32 %v616_v7, %v613_v6  ;;  %v3779_v16 = vld [vmem:[%s5083_s1 + $0x118] sm:$0xff]   ;;  %3488 = vmatprep.subr.bf16.mxu0 %v3778_v13  ;;  %v1139_v21 = vld [vmem:[#allocation2 + $0x144] sm:$0xff]  ;;  %2281 = vmatprep.mubr.bf16.mxu1 %v3766_v17  ;;  %v3003_v29 = vld [vmem:[%s5084_s0 + $0x130] sm:$0xf] }
  0x3e   :  { %v631_v14 = vor.u32 %v630_v10, %v627_v9  ;;  %v1134_v20 = vld [vmem:[#allocation2 + $0x120] sm:$0xff]  ;;  %3489 = vmatpush3.bf16.msra.mxu0 %v3779_v16  ;;  %v3780_v26 = vld [vmem:[%s5083_s1 + $0x1d8] sm:$0xff]   ;;  %571 = vst [vmem:[#allocation2 + $0x168] sm:$0xf] %v3003_v29  ;;  %v3021_v33 = vld [vmem:[%s5084_s0 + $0x130] sm:$0xf] }
  0x3f   :  { %v3768_v18 = vld [vmem:[#allocation2 + $0xe0] ss:$36 sps:$4 sm:$0xff]   ;;  %v618_v19 = vrot.slane %v617_v11, 4  ;;  %v3134_v25 = vcombine.low %v1134_v20, %v1139_v21  ;;  %v3781_v28 = vld [vmem:[%s5083_s1 + $0x198] sm:$0xff]   ;;  %3552 = vmatprep.subr.bf16.mxu1 %v3780_v26  ;;  %v3022_v34 = vld [vmem:[%s5084_s0 + $0x134] sm:$0x1]  ;;  %3490 = vmatprep.subr.bf16.mxu0 %v3787_v49 }
  0x40   :  { %v3773_v22 = vld [vmem:[#allocation2 + $0x124] ss:$36 sps:$4 sm:$0xff]   ;;  %v632_v23 = vrot.slane %v631_v14, 4  ;;  %2282 = vmatmul.mubr.bf16.gmra.mxu1 %v3768_v18  ;;  %v3004_v30 = vld [vmem:[%s5084_s0 + $0x138] sm:$0xf]  ;;  %v639_v37 = vshrl.u32 %v3021_v33, 16 }
  0x41   :  { %v623_v24 = vsel %vm4040_vm2, %v618_v19, %v622_v12  ;;  %2192 = vmatprep.mubr.bf16.mxu0 %v3773_v22  ;;  %v3011_v31 = vld [vmem:[%s5084_s0 + $0x178] sm:$0xf]  ;;  %v3012_v32 = vld [vmem:[%s5084_s0 + $0x180] sm:$0xf]  ;;  %3553 = vmatpush3.bf16.msra.mxu1 %v3781_v28  ;;  %572 = vst [vmem:[#allocation2 + $0x18c] sm:$0xf] %v3004_v30 }
  0x42   :  { %v637_v27 = vsel %vm4040_vm2, %v632_v23, %v636_v15  ;;  %730 = vst [vmem:[#allocation2 + $0x128] sm:$0xf] %v623_v24  ;;  %588 = vst [vmem:[#allocation2 + $0x16c] sm:$0xf] %v3011_v31  ;;  %v3023_v35 = vld [vmem:[%s5084_s0 + $0x138] sm:$0xf]  ;;  %3491 = vmatpush3.bf16.msra.mxu0 %v3788_v51 }
  0x43   :  { %731 = vst [vmem:[#allocation2 + $0x14c] sm:$0xf] %v637_v27  ;;  %2193 = vmatmul.mubr.bf16.gmra.mxu0 %v3134_v25  ;;  %589 = vst [vmem:[#allocation2 + $0x190] sm:$0xf] %v3012_v32  ;;  %v3024_v36 = vld [vmem:[%s5084_s0 + $0x13c] sm:$0x1] }
  0x44   :  { %v642_v38 = vshll.u32 %v3021_v33, 16  ;;  %v648_v39 = vshll.u32 %v3022_v34, 16  ;;  %v653_v40 = vshrl.u32 %v3023_v35, 16  ;;  %v656_v41 = vshll.u32 %v3023_v35, 16  ;;  %v3035_v43 = vld [vmem:[%s5084_s0 + $0x1c0] sm:$0xf] }
  0x45   :  { %v662_v42 = vshll.u32 %v3024_v36, 16  ;;  %v3036_v44 = vld [vmem:[%s5084_s0 + $0x1c8] sm:$0xf]  ;;  %v641_v45 = vrot.slane %v639_v37, 4  ;;  %749 = vst [vmem:[#allocation2 + $0x174] sm:$0xf] %v3035_v43 }
  0x46   :  { %v644_v46 = vrot.slane %v642_v38, 5  ;;  %v655_v47 = vrot.slane %v653_v40, 4  ;;  %750 = vst [vmem:[#allocation2 + $0x198] sm:$0xf] %v3036_v44  ;;  %v658_v48 = vrot.slane %v656_v41, 5  ;;  %v650_v53 = vrot.slane %v648_v39, 5 }
  0x47   :  { %v3775_v54 = vld [vmem:[#allocation2 + $0x12c] ss:$36 sps:$4 sm:$0xff]   ;;  %v664_v57 = vrot.slane %v662_v42, 5  ;;  %v3005_v4 = vld [vmem:[%s5084_s0 + $0x140] sm:$0xf] }
  0x48   :  { %v645_v52 = vor.u32 %v644_v46, %v641_v45  ;;  %v659_v56 = vor.u32 %v658_v48, %v655_v47  ;;  %2289 = vmatprep.mubr.bf16.mxu1 %v3775_v54  ;;  %v3789_v0 = vld [vmem:[%s5083_s1 + $0x1d0] sm:$0xff]   ;;  %v3006_v5 = vld [vmem:[%s5084_s0 + $0x148] sm:$0xf]  ;;  %573 = vst [vmem:[#allocation2 + $0x1b0] sm:$0xf] %v3005_v4 }
  0x49   :  { %v1144_v58 = vld [vmem:[#allocation2 + $0x168] sm:$0xff]  ;;  %v3790_v2 = vld [vmem:[%s5083_s1 + $0x190] sm:$0xff]   ;;  %3554 = vmatprep.subr.bf16.mxu1 %v3789_v0  ;;  %574 = vst [vmem:[#allocation2 + $0x1d4] sm:$0xf] %v3006_v5  ;;  %v3025_v8 = vld [vmem:[%s5084_s0 + $0x140] sm:$0xf] }
  0x4a   :  { %v3777_v55 = vld [vmem:[#allocation2 + $0x128] ss:$36 sps:$4 sm:$0xff]   ;;  %v646_v61 = vrot.slane %v645_v52, 4  ;;  %v660_v62 = vrot.slane %v659_v56, 4  ;;  %3555 = vmatpush3.bf16.msra.mxu1 %v3790_v2  ;;  %v3014_v7 = vld [vmem:[%s5084_s0 + $0x190] sm:$0xf] }
  0x4b   :  { %v1149_v59 = vld [vmem:[#allocation2 + $0x18c] sm:$0xff]  ;;  %2290 = vmatmul.mubr.bf16.gmra.mxu1 %v3777_v55  ;;  %v3013_v6 = vld [vmem:[%s5084_s0 + $0x188] sm:$0xf]  ;;  %v3026_v9 = vld [vmem:[%s5084_s0 + $0x144] sm:$0x1]  ;;  %v667_v12 = vshrl.u32 %v3025_v8, 16 }
  0x4c   :  { %v3782_v60 = vld [vmem:[#allocation2 + $0x16c] ss:$36 sps:$4 sm:$0xff]   ;;  %v3143_v63 = vcombine.low %v1144_v58, %v1149_v59  ;;  %v651_v1 = vsel %vm4040_vm2, %v646_v61, %v650_v53  ;;  %v665_v3 = vsel %vm4040_vm2, %v660_v62, %v664_v57  ;;  %590 = vst [vmem:[#allocation2 + $0x1b4] sm:$0xf] %v3013_v6  ;;  %591 = vst [vmem:[#allocation2 + $0x1d8] sm:$0xf] %v3014_v7 }
  0x4d   :  { %2200 = vmatprep.mubr.bf16.mxu0 %v3782_v60  ;;  %732 = vst [vmem:[#allocation2 + $0x170] sm:$0xf] %v651_v1  ;;  %733 = vst [vmem:[#allocation2 + $0x194] sm:$0xf] %v665_v3  ;;  %v3027_v10 = vld [vmem:[%s5084_s0 + $0x148] sm:$0xf] }
  0x4e   :  { %2201 = vmatmul.mubr.bf16.gmra.mxu0 %v3143_v63  ;;  %v3028_v11 = vld [vmem:[%s5084_s0 + $0x14c] sm:$0x1]  ;;  %v670_v13 = vshll.u32 %v3025_v8, 16  ;;  %v676_v14 = vshll.u32 %v3026_v9, 16  ;;  %v681_v15 = vshrl.u32 %v3027_v10, 16  ;;  %v684_v16 = vshll.u32 %v3027_v10, 16 }
  0x4f   :  { %v690_v17 = vshll.u32 %v3028_v11, 16  ;;  %v3037_v18 = vld [vmem:[%s5084_s0 + $0x1d0] sm:$0xf]  ;;  %v669_v19 = vrot.slane %v667_v12, 4  ;;  %v3038_v21 = vld [vmem:[%s5084_s0 + $0x1d8] sm:$0xf] }
  0x50   :  { %v672_v20 = vrot.slane %v670_v13, 5  ;;  %751 = vst [vmem:[#allocation2 + $0x1bc] sm:$0xf] %v3037_v18  ;;  %v683_v22 = vrot.slane %v681_v15, 4  ;;  %v686_v23 = vrot.slane %v684_v16, 5  ;;  %v678_v25 = vrot.slane %v676_v14, 5 }
  0x51   :  { %752 = vst [vmem:[#allocation2 + $0x1e0] sm:$0xf] %v3038_v21  ;;  %v3796_v26 = vld [vmem:[%s5083_s1 + $0x148] sm:$0xff]   ;;  %v692_v28 = vrot.slane %v690_v17, 5  ;;  %v3784_v30 = vld [vmem:[#allocation2 + $0x174] ss:$36 sps:$4 sm:$0xff]  }
  0x52   :  { %v673_v24 = vor.u32 %v672_v20, %v669_v19  ;;  %v687_v27 = vor.u32 %v686_v23, %v683_v22  ;;  %v3797_v29 = vld [vmem:[%s5083_s1 + $0x108] sm:$0xff]   ;;  %3492 = vmatprep.subr.bf16.mxu0 %v3796_v26  ;;  %2297 = vmatprep.mubr.bf16.mxu1 %v3784_v30  ;;  %v3007_v42 = vld [vmem:[%s5084_s0 + $0x150] sm:$0xf]  ;;  %v3008_v43 = vld [vmem:[%s5084_s0 + $0x158] sm:$0xf] }
  0x53   :  { %v1154_v33 = vld [vmem:[#allocation2 + $0x1b0] sm:$0xff]  ;;  %3493 = vmatpush3.bf16.msra.mxu0 %v3797_v29  ;;  %v3798_v39 = vld [vmem:[%s5083_s1 + $0x1c8] sm:$0xff]   ;;  %575 = vst [vmem:[#allocation2 + $0x1f8] sm:$0xf] %v3007_v42  ;;  %v3015_v44 = vld [vmem:[%s5084_s0 + $0x198] sm:$0xf] }
  0x54   :  { %v3786_v31 = vld [vmem:[#allocation2 + $0x170] ss:$36 sps:$4 sm:$0xff]   ;;  %v674_v32 = vrot.slane %v673_v24, 4  ;;  %v688_v36 = vrot.slane %v687_v27, 4  ;;  %v3799_v41 = vld [vmem:[%s5083_s1 + $0x188] sm:$0xff]   ;;  %3556 = vmatprep.subr.bf16.mxu1 %v3798_v39  ;;  %v3805_v63 = vld [vmem:[%s5083_s1 + $0x140] sm:$0xff]  }
  0x55   :  { %v1159_v34 = vld [vmem:[#allocation2 + $0x1d4] sm:$0xff]  ;;  %2298 = vmatmul.mubr.bf16.gmra.mxu1 %v3786_v31  ;;  %v3016_v45 = vld [vmem:[%s5084_s0 + $0x1a0] sm:$0xf]  ;;  %576 = vst [vmem:[#allocation2 + $0x21c] sm:$0xf] %v3008_v43  ;;  %3494 = vmatprep.subr.bf16.mxu0 %v3805_v63 }
  0x56   :  { %v3791_v35 = vld [vmem:[#allocation2 + $0x1b4] ss:$36 sps:$4 sm:$0xff]   ;;  %v679_v37 = vsel %vm4040_vm2, %v674_v32, %v678_v25  ;;  %v3152_v38 = vcombine.low %v1154_v33, %v1159_v34  ;;  %v693_v40 = vsel %vm4040_vm2, %v688_v36, %v692_v28  ;;  %3557 = vmatpush3.bf16.msra.mxu1 %v3799_v41  ;;  %592 = vst [vmem:[#allocation2 + $0x1fc] sm:$0xf] %v3015_v44  ;;  %593 = vst [vmem:[#allocation2 + $0x220] sm:$0xf] %v3016_v45 }
  0x57   :  { %2208 = vmatprep.mubr.bf16.mxu0 %v3791_v35  ;;  %734 = vst [vmem:[#allocation2 + $0x1b8] sm:$0xf] %v679_v37  ;;  %735 = vst [vmem:[#allocation2 + $0x1dc] sm:$0xf] %v693_v40  ;;  %v3029_v46 = vld [vmem:[%s5084_s0 + $0x150] sm:$0xf] }
  0x58   :  { %2209 = vmatmul.mubr.bf16.gmra.mxu0 %v3152_v38  ;;  %v3030_v47 = vld [vmem:[%s5084_s0 + $0x154] sm:$0x1]  ;;  %v3031_v48 = vld [vmem:[%s5084_s0 + $0x158] sm:$0xf]  ;;  %v3032_v49 = vld [vmem:[%s5084_s0 + $0x15c] sm:$0x1] }
  0x59   :  { %v695_v51 = vshrl.u32 %v3029_v46, 16  ;;  %v698_v52 = vshll.u32 %v3029_v46, 16  ;;  %v704_v53 = vshll.u32 %v3030_v47, 16  ;;  %v709_v54 = vshrl.u32 %v3031_v48, 16  ;;  %v3039_v57 = vld [vmem:[%s5084_s0 + $0x1e0] sm:$0xf] }
  0x5a   :  { %v712_v55 = vshll.u32 %v3031_v48, 16  ;;  %v718_v56 = vshll.u32 %v3032_v49, 16  ;;  %v3040_v58 = vld [vmem:[%s5084_s0 + $0x1e8] sm:$0xf]  ;;  %753 = vst [vmem:[#allocation2 + $0x204] sm:$0xf] %v3039_v57 }
  0x5b   :  { %v697_v59 = vrot.slane %v695_v51, 4  ;;  %v700_v60 = vrot.slane %v698_v52, 5  ;;  %v711_v61 = vrot.slane %v709_v54, 4  ;;  %754 = vst [vmem:[#allocation2 + $0x228] sm:$0xf] %v3040_v58  ;;  %v3806_v0 = vld [vmem:[%s5083_s1 + $0x100] sm:$0xff]  }
  0x5c   :  { %v714_v62 = vrot.slane %v712_v55, 5  ;;  %v706_v2 = vrot.slane %v704_v53, 5  ;;  %v3793_v3 = vld [vmem:[#allocation2 + $0x1bc] ss:$36 sps:$4 sm:$0xff]   ;;  %v720_v6 = vrot.slane %v718_v56, 5  ;;  %3495 = vmatpush3.bf16.msra.mxu0 %v3806_v0 }
  0x5d   :  { %v701_v1 = vor.u32 %v700_v60, %v697_v59  ;;  %v1164_v7 = vld [vmem:[#allocation2 + $0x1f8] sm:$0xff]  ;;  %2305 = vmatprep.mubr.bf16.mxu1 %v3793_v3  ;;  %v3807_v13 = vld [vmem:[%s5083_s1 + $0x1c0] sm:$0xff]   ;;  %v2953_v19 = vld [vmem:[%s5084_s0 + $0x90] sm:$0xf] }
  0x5e   :  { %v3795_v4 = vld [vmem:[#allocation2 + $0x1b8] ss:$36 sps:$4 sm:$0xff]   ;;  %v715_v5 = vor.u32 %v714_v62, %v711_v61  ;;  %v3808_v15 = vld [vmem:[%s5083_s1 + $0x180] sm:$0xff]   ;;  %3558 = vmatprep.subr.bf16.mxu1 %v3807_v13  ;;  %v2954_v20 = vld [vmem:[%s5084_s0 + $0x94] sm:$0x1]  ;;  %v255_v23 = vshrl.u32 %v2953_v19, 16 }
  0x5f   :  { %v1169_v8 = vld [vmem:[#allocation2 + $0x21c] sm:$0xff]  ;;  %v702_v10 = vrot.slane %v701_v1, 4  ;;  %2306 = vmatmul.mubr.bf16.gmra.mxu1 %v3795_v4  ;;  %v2945_v17 = vld [vmem:[%s5084_s0 + $0xd8] sm:$0xf]  ;;  %v258_v24 = vshll.u32 %v2953_v19, 16  ;;  %v264_v25 = vshll.u32 %v2954_v20, 16 }
  0x60   :  { %v3800_v9 = vld [vmem:[#allocation2 + $0x1fc] ss:$36 sps:$4 sm:$0xff]   ;;  %v716_v11 = vrot.slane %v715_v5, 4  ;;  %v3161_v12 = vcombine.low %v1164_v7, %v1169_v8  ;;  %3559 = vmatpush3.bf16.msra.mxu1 %v3808_v15  ;;  %230 = vst [vmem:[#allocation2 + $0x10] sm:$0xf] %v2945_v17  ;;  %v257_v32 = vrot.slane %v255_v23, 4 }
  0x61   :  { %2216 = vmatprep.mubr.bf16.mxu0 %v3800_v9  ;;  %v707_v14 = vsel %vm4040_vm2, %v702_v10, %v706_v2  ;;  %v2946_v18 = vld [vmem:[%s5084_s0 + $0xe0] sm:$0xf]  ;;  %v2955_v21 = vld [vmem:[%s5084_s0 + $0x98] sm:$0xf]  ;;  %v2956_v22 = vld [vmem:[%s5084_s0 + $0x9c] sm:$0x1] }
  0x62   :  { %v721_v16 = vsel %vm4040_vm2, %v716_v11, %v720_v6  ;;  %736 = vst [vmem:[#allocation2 + $0x200] sm:$0xf] %v707_v14  ;;  %2217 = vmatmul.mubr.bf16.gmra.mxu0 %v3161_v12  ;;  %231 = vst [vmem:[#allocation2 + $0x34] sm:$0xf] %v2946_v18  ;;  %v269_v26 = vshrl.u32 %v2955_v21, 16  ;;  %v272_v28 = vshll.u32 %v2955_v21, 16 }
  0x63   :  { %737 = vst [vmem:[#allocation2 + $0x224] sm:$0xf] %v721_v16  ;;  %v2969_v27 = vld [vmem:[%s5084_s0 + $0x8] sm:$0xf]  ;;  %v278_v29 = vshll.u32 %v2956_v22, 16  ;;  %v260_v33 = vrot.slane %v258_v24, 5 }
  0x64   :  { %v2970_v30 = vld [vmem:[%s5084_s0 + $0x10] sm:$0xf]  ;;  %391 = vst [vmem:[#allocation2 + $0x18] sm:$0xf] %v2969_v27  ;;  %v271_v34 = vrot.slane %v269_v26, 4  ;;  %v274_v36 = vrot.slane %v272_v28, 5 }
  0x65   :  { %v2977_v31 = vld [vmem:[%s5084_s0 + $0x50] sm:$0xf]  ;;  %392 = vst [vmem:[#allocation2 + $0x3c] sm:$0xf] %v2970_v30  ;;  %v2978_v35 = vld [vmem:[%s5084_s0 + $0x58] sm:$0xf]  ;;  %v261_v37 = vor.u32 %v260_v33, %v257_v32 }
  0x66   :  { %408 = vst [vmem:[#allocation2 + $0x1c] sm:$0xf] %v2977_v31  ;;  %409 = vst [vmem:[#allocation2 + $0x40] sm:$0xf] %v2978_v35  ;;  %v266_v38 = vrot.slane %v264_v25, 5  ;;  %v4415_v39 = vld [vmem:[%s5083_s1 + $0x238] sm:$0xff]   ;;  %v275_v40 = vor.u32 %v274_v36, %v271_v34 }
  0x67   :  { %v280_v41 = vrot.slane %v278_v29, 5  ;;  %v3816_v42 = vld [vmem:[%s5085_s2 + $0x38] sm:$0xff]   ;;  %v2947_v43 = vld [vmem:[%s5084_s0 + $0xe8] sm:$0xf]  ;;  %v262_v46 = vrot.slane %v261_v37, 4  ;;  %3640 = vmatprep.subr.bf16.mxu0 %v4415_v39  ;;  %v3823_v10 = vld [vmem:[%s5085_s2 + $0x30] sm:$0xff]  }
  0x68   :  { %v3802_v44 = vld [vmem:[#allocation2 + $0x204] ss:$36 sps:$4 sm:$0xff]   ;;  %232 = vst [vmem:[#allocation2 + $0x58] sm:$0xf] %v2947_v43  ;;  %v276_v47 = vrot.slane %v275_v40, 4  ;;  %3672 = vmatprep.subr.bf16.mxu1 %v3816_v42  ;;  %v3822_v16 = vld [vmem:[%s5083_s1 + $0x230] sm:$0xff]  }
  0x69   :  { %v2948_v48 = vld [vmem:[%s5084_s0 + $0xf0] sm:$0xf]  ;;  %v2957_v49 = vld [vmem:[%s5084_s0 + $0xa0] sm:$0xf]  ;;  %2313 = vmatprep.mubr.bf16.mxu1 %v3802_v44  ;;  %v267_v51 = vsel %vm4040_vm2, %v262_v46, %v266_v38  ;;  %v2958_v52 = vld [vmem:[%s5084_s0 + $0xa4] sm:$0x1] }
  0x6a   :  { %v3804_v45 = vld [vmem:[#allocation2 + $0x200] ss:$36 sps:$4 sm:$0xff]   ;;  %233 = vst [vmem:[#allocation2 + $0x7c] sm:$0xf] %v2948_v48  ;;  %v2959_v53 = vld [vmem:[%s5084_s0 + $0xa8] sm:$0xf]  ;;  %v281_v55 = vsel %vm4040_vm2, %v276_v47, %v280_v41 }
  0x6b   :  { %v2960_v54 = vld [vmem:[%s5084_s0 + $0xac] sm:$0x1]  ;;  %2314 = vmatmul.mubr.bf16.gmra.mxu1 %v3804_v45  ;;  %374 = vst [vmem:[#allocation2 + $0x14] sm:$0xf] %v267_v51  ;;  %v283_v56 = vshrl.u32 %v2957_v49, 16  ;;  %v286_v57 = vshll.u32 %v2957_v49, 16 }
  0x6c   :  { %v292_v58 = vshll.u32 %v2958_v52, 16  ;;  %v2971_v59 = vld [vmem:[%s5084_s0 + $0x18] sm:$0xf]  ;;  %375 = vst [vmem:[#allocation2 + $0x38] sm:$0xf] %v281_v55  ;;  %v297_v61 = vshrl.u32 %v2959_v53, 16 }
  0x6d   :  { %v3814_v60 = vld [vmem:[#allocation2 + $0x1c] ss:$36 sps:$4 sm:$0xff]   ;;  %393 = vst [vmem:[#allocation2 + $0x60] sm:$0xf] %v2971_v59  ;;  %v285_v63 = vrot.slane %v283_v56, 4  ;;  %v288_v0 = vrot.slane %v286_v57, 5 }
  0x6e   :  { %v3812_v62 = vld [vmem:[#allocation2 + $0x18] ss:$36 sps:$4 sm:$0xff]   ;;  %v300_v1 = vshll.u32 %v2959_v53, 16  ;;  %v2972_v2 = vld [vmem:[%s5084_s0 + $0x20] sm:$0xf]  ;;  %2451 = vmatprep.mubr.bf16.mxu1 %v3814_v60  ;;  %v299_v3 = vrot.slane %v297_v61, 4 }
  0x6f   :  { %v306_v4 = vshll.u32 %v2960_v54, 16  ;;  %394 = vst [vmem:[#allocation2 + $0x84] sm:$0xf] %v2972_v2  ;;  %v2979_v5 = vld [vmem:[%s5084_s0 + $0x60] sm:$0xf]  ;;  %v289_v7 = vor.u32 %v288_v0, %v285_v63  ;;  %v294_v8 = vrot.slane %v292_v58, 5 }
  0x70   :  { %v2980_v6 = vld [vmem:[%s5084_s0 + $0x68] sm:$0xf]  ;;  %v302_v9 = vrot.slane %v300_v1, 5  ;;  %410 = vst [vmem:[#allocation2 + $0x64] sm:$0xf] %v2979_v5  ;;  %v3836_v49 = vld [vmem:[%s5083_s1 + $0x220] sm:$0xff]  }
  0x71   :  { %411 = vst [vmem:[#allocation2 + $0x88] sm:$0xf] %v2980_v6  ;;  %v290_v11 = vrot.slane %v289_v7, 4  ;;  %v308_v13 = vrot.slane %v306_v4, 5  ;;  %v2949_v14 = vld [vmem:[%s5084_s0 + $0xf8] sm:$0xf] }
  0x72   :  { %v303_v12 = vor.u32 %v302_v9, %v299_v3  ;;  %v2950_v15 = vld [vmem:[%s5084_s0 + $0x100] sm:$0xf]  ;;  %234 = vst [vmem:[#allocation2 + $0xa0] sm:$0xf] %v2949_v14  ;;  %v2961_v17 = vld [vmem:[%s5084_s0 + $0xb0] sm:$0xf] }
  0x73   :  { %235 = vst [vmem:[#allocation2 + $0xc4] sm:$0xf] %v2950_v15  ;;  %v2962_v18 = vld [vmem:[%s5084_s0 + $0xb4] sm:$0x1]  ;;  %2452 = vmatmul.mubr.bf16.vlgmr.msra.gmra.mxu1 %v3812_v62  ;;  %v295_v21 = vsel %vm4040_vm2, %v290_v11, %v294_v8  ;;  %v2963_v23 = vld [vmem:[%s5084_s0 + $0xb8] sm:$0xf] }
  0x74   :  { %v3809_v19 = vld [vmem:[#allocation2 + $0x10] ss:$36 sps:$4 sm:$0xff]   ;;  %v304_v22 = vrot.slane %v303_v12, 4  ;;  %3673 = vmatpush3.bf16.msra.mxu1 %v3816_v42  ;;  %376 = vst [vmem:[#allocation2 + $0x5c] sm:$0xf] %v295_v21  ;;  %v311_v25 = vshrl.u32 %v2961_v17, 16 }
  0x75   :  { %v3811_v20 = vld [vmem:[#allocation2 + $0x14] ss:$36 sps:$4 sm:$0xff]   ;;  %v2964_v24 = vld [vmem:[%s5084_s0 + $0xbc] sm:$0x1]  ;;  %v314_v26 = vshll.u32 %v2961_v17, 16  ;;  %3674 = vmatprep.subr.bf16.mxu1 %v3823_v10  ;;  %v320_v28 = vshll.u32 %v2962_v18, 16 }
  0x76   :  { %2354 = vmatprep.mubr.bf16.mxu0 %v3811_v20  ;;  %v309_v27 = vsel %vm4040_vm2, %v304_v22, %v308_v13  ;;  %v325_v29 = vshrl.u32 %v2963_v23, 16  ;;  %v328_v30 = vshll.u32 %v2963_v23, 16  ;;  %v2973_v31 = vld [vmem:[%s5084_s0 + $0x28] sm:$0xf]  ;;  %v313_v34 = vrot.slane %v311_v25, 4  ;;  %v3837_v51 = vld [vmem:[%s5085_s2 + $0x20] sm:$0xff]  }
  0x77   :  { %v3830_v32 = vld [vmem:[%s5085_s2 + $0x28] sm:$0xff]   ;;  %2355 = vmatmul.mubr.bf16.vlgmr.msra.gmra.mxu0 %v3809_v19  ;;  %377 = vst [vmem:[#allocation2 + $0x80] sm:$0xf] %v309_v27  ;;  %v316_v35 = vrot.slane %v314_v26, 5  ;;  %395 = vst [vmem:[#allocation2 + $0xa8] sm:$0xf] %v2973_v31 }
  0x78   :  { %v3819_v33 = vld [vmem:[#allocation2 + $0x64] ss:$36 sps:$4 sm:$0xff]   ;;  %3641 = vmatpush3.bf16.msra.mxu0 %v4415_v39  ;;  %v322_v38 = vrot.slane %v320_v28, 5  ;;  %v327_v40 = vrot.slane %v325_v29, 4  ;;  %v330_v41 = vrot.slane %v328_v30, 5  ;;  %v334_v42 = vshll.u32 %v2964_v24, 16  ;;  %3675 = vmatpush3.bf16.msra.mxu1 %v3823_v10 }
  0x79   :  { %v3829_v36 = vld [vmem:[%s5083_s1 + $0x228] sm:$0xff]   ;;  %v3821_v37 = vld [vmem:[#allocation2 + $0x60] ss:$36 sps:$4 sm:$0xff]   ;;  %2459 = vmatprep.mubr.bf16.mxu1 %v3819_v33  ;;  %3642 = vmatprep.subr.bf16.mxu0 %v3822_v16  ;;  %v317_v43 = vor.u32 %v316_v35, %v313_v34  ;;  %v2974_v44 = vld [vmem:[%s5084_s0 + $0x30] sm:$0xf] }
  0x7a   :  { %v2981_v45 = vld [vmem:[%s5084_s0 + $0x70] sm:$0xf]  ;;  %v2982_v39 = vld [vmem:[%s5084_s0 + $0x78] sm:$0xf]  ;;  %v331_v46 = vor.u32 %v330_v41, %v327_v40  ;;  %v336_v47 = vrot.slane %v334_v42, 5  ;;  %3676 = vmatprep.subr.bf16.mxu1 %v3830_v32 }
  0x7b   :  { %396 = vst [vmem:[#allocation2 + $0xcc] sm:$0xf] %v2974_v44  ;;  %412 = vst [vmem:[#allocation2 + $0xac] sm:$0xf] %v2981_v45  ;;  %v318_v48 = vrot.slane %v317_v43, 4  ;;  %v1106_v52 = vld [vmem:[#allocation2 + $0x58] sm:$0xff]  ;;  %2460 = vmatmul.mubr.bf16.gmra.mxu1 %v3821_v37 }
  0x7c   :  { %413 = vst [vmem:[#allocation2 + $0xd0] sm:$0xf] %v2982_v39  ;;  %3643 = vmatpush3.bf16.msra.mxu0 %v3822_v16  ;;  %v332_v53 = vrot.slane %v331_v46, 4  ;;  %v2951_v54 = vld [vmem:[%s5084_s0 + $0x108] sm:$0xf]  ;;  %3677 = vmatpush3.bf16.msra.mxu1 %v3830_v32  ;;  %v3844_v6 = vld [vmem:[%s5085_s2 + $0x18] sm:$0xff]  }
  0x7d   :  { %v2952_v55 = vld [vmem:[%s5084_s0 + $0x110] sm:$0xf]  ;;  %v323_v56 = vsel %vm4040_vm2, %v318_v48, %v322_v38  ;;  %3644 = vmatprep.subr.bf16.mxu0 %v3829_v36  ;;  %236 = vst [vmem:[#allocation2 + $0xe8] sm:$0xf] %v2951_v54  ;;  %v2965_v57 = vld [vmem:[%s5084_s0 + $0xc0] sm:$0xf]  ;;  %3678 = vmatprep.subr.bf16.mxu1 %v3837_v51 }
  0x7e   :  { %237 = vst [vmem:[#allocation2 + $0x10c] sm:$0xf] %v2952_v55  ;;  %v2966_v58 = vld [vmem:[%s5084_s0 + $0xc4] sm:$0x1]  ;;  %v2967_v59 = vld [vmem:[%s5084_s0 + $0xc8] sm:$0xf]  ;;  %v337_v62 = vsel %vm4040_vm2, %v332_v53, %v336_v47 }
  0x7f   :  { %v1111_v60 = vld [vmem:[#allocation2 + $0x7c] sm:$0xff]  ;;  %378 = vst [vmem:[#allocation2 + $0xa4] sm:$0xf] %v323_v56  ;;  %v2968_v63 = vld [vmem:[%s5084_s0 + $0xcc] sm:$0x1]  ;;  %v339_v0 = vshrl.u32 %v2965_v57, 16 }
  0x80   :  { %v3817_v61 = vld [vmem:[#allocation2 + $0x5c] ss:$36 sps:$4 sm:$0xff]   ;;  %v3111_v1 = vcombine.low %v1106_v52, %v1111_v60  ;;  %379 = vst [vmem:[#allocation2 + $0xc8] sm:$0xf] %v337_v62  ;;  %v342_v2 = vshll.u32 %v2965_v57, 16  ;;  %v348_v3 = vshll.u32 %v2966_v58, 16  ;;  %3645 = vmatpush3.bf16.msra.mxu0 %v3829_v36  ;;  %3679 = vmatpush3.bf16.msra.mxu1 %v3837_v51 }
  0x81   :  { %v353_v4 = vshrl.u32 %v2967_v59, 16  ;;  %v2975_v5 = vld [vmem:[%s5084_s0 + $0x38] sm:$0xf]  ;;  %2362 = vmatprep.mubr.bf16.mxu0 %v3817_v61  ;;  %v341_v7 = vrot.slane %v339_v0, 4  ;;  %v356_v8 = vshll.u32 %v2967_v59, 16  ;;  %v362_v9 = vshll.u32 %v2968_v63, 16  ;;  %3646 = vmatprep.subr.bf16.mxu0 %v3836_v49 }
  0x82   :  { %v2976_v10 = vld [vmem:[%s5084_s0 + $0x40] sm:$0xf]  ;;  %397 = vst [vmem:[#allocation2 + $0xf0] sm:$0xf] %v2975_v5  ;;  %v3843_v11 = vld [vmem:[%s5083_s1 + $0x218] sm:$0xff]   ;;  %2363 = vmatmul.mubr.bf16.gmra.mxu0 %v3111_v1  ;;  %v344_v13 = vrot.slane %v342_v2, 5  ;;  %3680 = vmatprep.subr.bf16.mxu1 %v3844_v6 }
  0x83   :  { %v3826_v12 = vld [vmem:[#allocation2 + $0xac] ss:$36 sps:$4 sm:$0xff]   ;;  %v350_v14 = vrot.slane %v348_v3, 5  ;;  %398 = vst [vmem:[#allocation2 + $0x114] sm:$0xf] %v2976_v10  ;;  %v355_v16 = vrot.slane %v353_v4, 4 }
  0x84   :  { %v3828_v15 = vld [vmem:[#allocation2 + $0xa8] ss:$36 sps:$4 sm:$0xff]   ;;  %v358_v17 = vrot.slane %v356_v8, 5  ;;  %v364_v18 = vrot.slane %v362_v9, 5  ;;  %v3851_v19 = vld [vmem:[%s5085_s2 + $0x10] sm:$0xff]   ;;  %2467 = vmatprep.mubr.bf16.mxu1 %v3826_v12  ;;  %v345_v20 = vor.u32 %v344_v13, %v341_v7  ;;  %3647 = vmatpush3.bf16.msra.mxu0 %v3836_v49  ;;  %v3864_v57 = vld [vmem:[%s5083_s1 + $0x200] sm:$0xff]  }
  0x85   :  { %v2983_v21 = vld [vmem:[%s5084_s0 + $0x80] sm:$0xf]  ;;  %v2984_v22 = vld [vmem:[%s5084_s0 + $0x88] sm:$0xf]  ;;  %v3850_v23 = vld [vmem:[%s5083_s1 + $0x210] sm:$0xff]   ;;  %2468 = vmatmul.mubr.bf16.gmra.mxu1 %v3828_v15  ;;  %3648 = vmatprep.subr.bf16.mxu0 %v3843_v11 }
  0x86   :  { %v359_v24 = vor.u32 %v358_v17, %v355_v16  ;;  %414 = vst [vmem:[#allocation2 + $0xf4] sm:$0xf] %v2983_v21  ;;  %415 = vst [vmem:[#allocation2 + $0x118] sm:$0xf] %v2984_v22  ;;  %v1116_v25 = vld [vmem:[#allocation2 + $0xa0] sm:$0xff]  ;;  %v346_v26 = vrot.slane %v345_v20, 4  ;;  %3681 = vmatpush3.bf16.msra.mxu1 %v3844_v6 }
  0x87   :  { %v3041_v27 = vld [vmem:[%s5084_s0 + $0x1f8] sm:$0xf]  ;;  %v3042_v28 = vld [vmem:[%s5084_s0 + $0x200] sm:$0xf]  ;;  %v1121_v29 = vld [vmem:[#allocation2 + $0xc4] sm:$0xff]  ;;  %3682 = vmatprep.subr.bf16.mxu1 %v3851_v19 }
  0x88   :  { %v3824_v30 = vld [vmem:[#allocation2 + $0xa4] ss:$36 sps:$4 sm:$0xff]   ;;  %v360_v31 = vrot.slane %v359_v24, 4  ;;  %764 = vst [vmem:[#allocation2 + $0x130] sm:$0xf] %v3041_v27  ;;  %v3120_v33 = vcombine.low %v1116_v25, %v1121_v29  ;;  %v351_v34 = vsel %vm4040_vm2, %v346_v26, %v350_v14  ;;  %3649 = vmatpush3.bf16.msra.mxu0 %v3843_v11 }
  0x89   :  { %765 = vst [vmem:[#allocation2 + $0x154] sm:$0xf] %v3042_v28  ;;  %v3049_v32 = vld [vmem:[%s5084_s0 + $0x1b0] sm:$0xf]  ;;  %v3050_v35 = vld [vmem:[%s5084_s0 + $0x1b4] sm:$0x1]  ;;  %2370 = vmatprep.mubr.bf16.mxu0 %v3824_v30  ;;  %3650 = vmatprep.subr.bf16.mxu0 %v3850_v23 }
  0x8a   :  { %v3051_v36 = vld [vmem:[%s5084_s0 + $0x1b8] sm:$0xf]  ;;  %v3052_v37 = vld [vmem:[%s5084_s0 + $0x1bc] sm:$0x1]  ;;  %v365_v38 = vsel %vm4040_vm2, %v360_v31, %v364_v18  ;;  %380 = vst [vmem:[#allocation2 + $0xec] sm:$0xf] %v351_v34  ;;  %2371 = vmatmul.mubr.bf16.gmra.mxu0 %v3120_v33  ;;  %3683 = vmatpush3.bf16.msra.mxu1 %v3851_v19 }
  0x8b   :  { %v789_v40 = vshrl.u32 %v3049_v32, 16  ;;  %v792_v41 = vshll.u32 %v3049_v32, 16  ;;  %v798_v42 = vshll.u32 %v3050_v35, 16  ;;  %v3065_v43 = vld [vmem:[%s5084_s0 + $0x128] sm:$0xf]  ;;  %v803_v45 = vshrl.u32 %v3051_v36, 16 }
  0x8c   :  { %v3857_v44 = vld [vmem:[%s5083_s1 + $0x208] sm:$0xff]   ;;  %381 = vst [vmem:[#allocation2 + $0x110] sm:$0xf] %v365_v38  ;;  %v806_v39 = vshll.u32 %v3051_v36, 16  ;;  %v812_v46 = vshll.u32 %v3052_v37, 16  ;;  %3651 = vmatpush3.bf16.msra.mxu0 %v3850_v23  ;;  %v3865_v62 = vld [vmem:[%s5085_s2] sm:$0xff]  }
  0x8d   :  { %v3066_v47 = vld [vmem:[%s5084_s0 + $0x130] sm:$0xf]  ;;  %925 = vst [vmem:[#allocation2 + $0x138] sm:$0xf] %v3065_v43  ;;  %v3858_v48 = vld [vmem:[%s5085_s2 + $0x8] sm:$0xff]   ;;  %v791_v49 = vrot.slane %v789_v40, 4  ;;  %3652 = vmatprep.subr.bf16.mxu0 %v3857_v44 }
  0x8e   :  { %v794_v51 = vrot.slane %v792_v41, 5  ;;  %v800_v52 = vrot.slane %v798_v42, 5  ;;  %926 = vst [vmem:[#allocation2 + $0x15c] sm:$0xf] %v3066_v47  ;;  %v3073_v53 = vld [vmem:[%s5084_s0 + $0x170] sm:$0xf]  ;;  %3684 = vmatprep.subr.bf16.mxu1 %v3858_v48 }
  0x8f   :  { %v3833_v54 = vld [vmem:[#allocation2 + $0xf4] ss:$36 sps:$4 sm:$0xff]   ;;  %v805_v55 = vrot.slane %v803_v45, 4  ;;  %v808_v56 = vrot.slane %v806_v39, 5  ;;  %942 = vst [vmem:[#allocation2 + $0x13c] sm:$0xf] %v3073_v53  ;;  %3685 = vmatpush3.bf16.msra.mxu1 %v3858_v48 }
  0x90   :  { %v3835_v58 = vld [vmem:[#allocation2 + $0xf0] ss:$36 sps:$4 sm:$0xff]   ;;  %v795_v59 = vor.u32 %v794_v51, %v791_v49  ;;  %v814_v60 = vrot.slane %v812_v46, 5  ;;  %v3074_v61 = vld [vmem:[%s5084_s0 + $0x178] sm:$0xf]  ;;  %2475 = vmatprep.mubr.bf16.mxu1 %v3833_v54  ;;  %3653 = vmatpush3.bf16.msra.mxu0 %v3857_v44 }
  0x91   :  { %v809_v63 = vor.u32 %v808_v56, %v805_v55  ;;  %943 = vst [vmem:[#allocation2 + $0x160] sm:$0xf] %v3074_v61  ;;  %2476 = vmatmul.mubr.bf16.gmra.mxu1 %v3835_v58  ;;  %v3043_v1 = vld [vmem:[%s5084_s0 + $0x208] sm:$0xf]  ;;  %v3044_v4 = vld [vmem:[%s5084_s0 + $0x210] sm:$0xf]  ;;  %3686 = vmatprep.subr.bf16.mxu1 %v3865_v62 }
  0x92   :  { %v796_v0 = vrot.slane %v795_v59, 4  ;;  %v1126_v2 = vld [vmem:[#allocation2 + $0xe8] sm:$0xff]  ;;  %766 = vst [vmem:[#allocation2 + $0x178] sm:$0xf] %v3043_v1  ;;  %v3053_v5 = vld [vmem:[%s5084_s0 + $0x1c0] sm:$0xf]  ;;  %3654 = vmatprep.subr.bf16.mxu0 %v3864_v57 }
  0x93   :  { %v810_v3 = vrot.slane %v809_v63, 4  ;;  %v1131_v6 = vld [vmem:[#allocation2 + $0x10c] sm:$0xff]  ;;  %767 = vst [vmem:[#allocation2 + $0x19c] sm:$0xf] %v3044_v4  ;;  %v3054_v9 = vld [vmem:[%s5084_s0 + $0x1c4] sm:$0x1]  ;;  %3687 = vmatpush3.bf16.msra.mxu1 %v3865_v62 }
  0x94   :  { %v3831_v7 = vld [vmem:[#allocation2 + $0xec] ss:$36 sps:$4 sm:$0xff]   ;;  %v801_v8 = vsel %vm4040_vm2, %v796_v0, %v800_v52  ;;  %v817_v10 = vshrl.u32 %v3053_v5, 16  ;;  %v3129_v11 = vcombine.low %v1126_v2, %v1131_v6  ;;  %v3055_v13 = vld [vmem:[%s5084_s0 + $0x1c8] sm:$0xf]  ;;  %v820_v15 = vshll.u32 %v3053_v5, 16  ;;  %3655 = vmatpush3.bf16.msra.mxu0 %v3864_v57 }
  0x95   :  { %v815_v12 = vsel %vm4040_vm2, %v810_v3, %v814_v60  ;;  %908 = vst [vmem:[#allocation2 + $0x134] sm:$0xf] %v801_v8  ;;  %v3056_v14 = vld [vmem:[%s5084_s0 + $0x1cc] sm:$0x1]  ;;  %v826_v16 = vshll.u32 %v3054_v9, 16  ;;  %2378 = vmatprep.mubr.bf16.mxu0 %v3831_v7  ;;  %v831_v18 = vshrl.u32 %v3055_v13, 16 }
  0x96   :  { %909 = vst [vmem:[#allocation2 + $0x158] sm:$0xf] %v815_v12  ;;  %v819_v17 = vrot.slane %v817_v10, 4  ;;  %v834_v19 = vshll.u32 %v3055_v13, 16  ;;  %2379 = vmatmul.mubr.bf16.gmra.mxu0 %v3129_v11  ;;  %v822_v20 = vrot.slane %v820_v15, 5  ;;  %v840_v21 = vshll.u32 %v3056_v14, 16 }
  0x97   :  { %v3067_v22 = vld [vmem:[%s5084_s0 + $0x138] sm:$0xf]  ;;  %v3068_v23 = vld [vmem:[%s5084_s0 + $0x140] sm:$0xf]  ;;  %v833_v26 = vrot.slane %v831_v18, 4  ;;  %v828_v28 = vrot.slane %v826_v16, 5 }
  0x98   :  { %v3840_v24 = vld [vmem:[#allocation2 + $0x13c] ss:$36 sps:$4 sm:$0xff]   ;;  %927 = vst [vmem:[#allocation2 + $0x180] sm:$0xf] %v3067_v22  ;;  %928 = vst [vmem:[#allocation2 + $0x1a4] sm:$0xf] %v3068_v23  ;;  %v823_v27 = vor.u32 %v822_v20, %v819_v17 }
  0x99   :  { %v3842_v25 = vld [vmem:[#allocation2 + $0x138] ss:$36 sps:$4 sm:$0xff]   ;;  %v836_v29 = vrot.slane %v834_v19, 5  ;;  %v3075_v30 = vld [vmem:[%s5084_s0 + $0x180] sm:$0xf]  ;;  %2483 = vmatprep.mubr.bf16.mxu1 %v3840_v24  ;;  %v842_v34 = vrot.slane %v840_v21, 5 }
  0x9a   :  { %v3076_v31 = vld [vmem:[%s5084_s0 + $0x188] sm:$0xf]  ;;  %944 = vst [vmem:[#allocation2 + $0x184] sm:$0xf] %v3075_v30  ;;  %2484 = vmatmul.mubr.bf16.gmra.mxu1 %v3842_v25  ;;  %v824_v32 = vrot.slane %v823_v27, 4 }
  0x9b   :  { %945 = vst [vmem:[#allocation2 + $0x1a8] sm:$0xf] %v3076_v31  ;;  %v837_v33 = vor.u32 %v836_v29, %v833_v26  ;;  %v3045_v35 = vld [vmem:[%s5084_s0 + $0x218] sm:$0xf]  ;;  %v3046_v37 = vld [vmem:[%s5084_s0 + $0x220] sm:$0xf] }
  0x9c   :  { %v1136_v36 = vld [vmem:[#allocation2 + $0x130] sm:$0xff]  ;;  %768 = vst [vmem:[#allocation2 + $0x1c0] sm:$0xf] %v3045_v35  ;;  %v829_v42 = vsel %vm4040_vm2, %v824_v32, %v828_v28  ;;  %769 = vst [vmem:[#allocation2 + $0x1e4] sm:$0xf] %v3046_v37 }
  0x9d   :  { %v3057_v38 = vld [vmem:[%s5084_s0 + $0x1d0] sm:$0xf]  ;;  %v1141_v40 = vld [vmem:[#allocation2 + $0x154] sm:$0xff]  ;;  %v838_v43 = vrot.slane %v837_v33, 4  ;;  %910 = vst [vmem:[#allocation2 + $0x17c] sm:$0xf] %v829_v42 }
  0x9e   :  { %v3838_v41 = vld [vmem:[#allocation2 + $0x134] ss:$36 sps:$4 sm:$0xff]   ;;  %v3138_v45 = vcombine.low %v1136_v36, %v1141_v40  ;;  %v3060_v46 = vld [vmem:[%s5084_s0 + $0x1dc] sm:$0x1]  ;;  %v845_v47 = vshrl.u32 %v3057_v38, 16  ;;  %v848_v48 = vshll.u32 %v3057_v38, 16 }
  0x9f   :  { %v3058_v44 = vld [vmem:[%s5084_s0 + $0x1d4] sm:$0x1]  ;;  %v3059_v39 = vld [vmem:[%s5084_s0 + $0x1d8] sm:$0xf]  ;;  %2386 = vmatprep.mubr.bf16.mxu0 %v3838_v41  ;;  %v843_v49 = vsel %vm4040_vm2, %v838_v43, %v842_v34  ;;  %v3069_v54 = vld [vmem:[%s5084_s0 + $0x148] sm:$0xf] }
  0xa0   :  { %v854_v51 = vshll.u32 %v3058_v44, 16  ;;  %v859_v52 = vshrl.u32 %v3059_v39, 16  ;;  %v862_v53 = vshll.u32 %v3059_v39, 16  ;;  %2387 = vmatmul.mubr.bf16.gmra.mxu0 %v3138_v45  ;;  %911 = vst [vmem:[#allocation2 + $0x1a0] sm:$0xf] %v843_v49  ;;  %v847_v55 = vrot.slane %v845_v47, 4 }
  0xa1   :  { %v850_v56 = vrot.slane %v848_v48, 5  ;;  %v868_v57 = vshll.u32 %v3060_v46, 16  ;;  %v3070_v58 = vld [vmem:[%s5084_s0 + $0x150] sm:$0xf]  ;;  %929 = vst [vmem:[#allocation2 + $0x1c8] sm:$0xf] %v3069_v54 }
  0xa2   :  { %v3847_v59 = vld [vmem:[#allocation2 + $0x184] ss:$36 sps:$4 sm:$0xff]   ;;  %v861_v60 = vrot.slane %v859_v52, 4  ;;  %930 = vst [vmem:[#allocation2 + $0x1ec] sm:$0xf] %v3070_v58  ;;  %v856_v63 = vrot.slane %v854_v51, 5 }
  0xa3   :  { %v3849_v61 = vld [vmem:[#allocation2 + $0x180] ss:$36 sps:$4 sm:$0xff]   ;;  %v851_v62 = vor.u32 %v850_v56, %v847_v55  ;;  %v864_v0 = vrot.slane %v862_v53, 5  ;;  %v3077_v1 = vld [vmem:[%s5084_s0 + $0x190] sm:$0xf]  ;;  %2491 = vmatprep.mubr.bf16.mxu1 %v3847_v59  ;;  %v870_v5 = vrot.slane %v868_v57, 5 }
  0xa4   :  { %v3078_v2 = vld [vmem:[%s5084_s0 + $0x198] sm:$0xf]  ;;  %946 = vst [vmem:[#allocation2 + $0x1cc] sm:$0xf] %v3077_v1  ;;  %2492 = vmatmul.mubr.bf16.gmra.mxu1 %v3849_v61  ;;  %v3047_v7 = vld [vmem:[%s5084_s0 + $0x228] sm:$0xf] }
  0xa5   :  { %v852_v3 = vrot.slane %v851_v62, 4  ;;  %v865_v4 = vor.u32 %v864_v0, %v861_v60  ;;  %947 = vst [vmem:[#allocation2 + $0x1f0] sm:$0xf] %v3078_v2  ;;  %v1146_v6 = vld [vmem:[#allocation2 + $0x178] sm:$0xff]  ;;  %v3048_v8 = vld [vmem:[%s5084_s0 + $0x230] sm:$0xf] }
  0xa6   :  { %770 = vst [vmem:[#allocation2 + $0x208] sm:$0xf] %v3047_v7  ;;  %771 = vst [vmem:[#allocation2 + $0x22c] sm:$0xf] %v3048_v8  ;;  %v3061_v11 = vld [vmem:[%s5084_s0 + $0x1e0] sm:$0xf] }
  0xa7   :  { %v857_v9 = vsel %vm4040_vm2, %v852_v3, %v856_v63  ;;  %v866_v10 = vrot.slane %v865_v4, 4  ;;  %v3062_v12 = vld [vmem:[%s5084_s0 + $0x1e4] sm:$0x1]  ;;  %v1151_v13 = vld [vmem:[#allocation2 + $0x19c] sm:$0xff]  ;;  %v3063_v15 = vld [vmem:[%s5084_s0 + $0x1e8] sm:$0xf] }
  0xa8   :  { %v3845_v14 = vld [vmem:[#allocation2 + $0x17c] ss:$36 sps:$4 sm:$0xff]   ;;  %912 = vst [vmem:[#allocation2 + $0x1c4] sm:$0xf] %v857_v9  ;;  %v873_v16 = vshrl.u32 %v3061_v11, 16  ;;  %v3147_v17 = vcombine.low %v1146_v6, %v1151_v13  ;;  %v876_v20 = vshll.u32 %v3061_v11, 16 }
  0xa9   :  { %v871_v18 = vsel %vm4040_vm2, %v866_v10, %v870_v5  ;;  %v3064_v19 = vld [vmem:[%s5084_s0 + $0x1ec] sm:$0x1]  ;;  %v882_v21 = vshll.u32 %v3062_v12, 16  ;;  %v3071_v22 = vld [vmem:[%s5084_s0 + $0x158] sm:$0xf]  ;;  %2394 = vmatprep.mubr.bf16.mxu0 %v3845_v14  ;;  %v887_v24 = vshrl.u32 %v3063_v15, 16 }
  0xaa   :  { %913 = vst [vmem:[#allocation2 + $0x1e8] sm:$0xf] %v871_v18  ;;  %v875_v23 = vrot.slane %v873_v16, 4  ;;  %v890_v25 = vshll.u32 %v3063_v15, 16  ;;  %v896_v26 = vshll.u32 %v3064_v19, 16  ;;  %2395 = vmatmul.mubr.bf16.gmra.mxu0 %v3147_v17  ;;  %v878_v28 = vrot.slane %v876_v20, 5 }
  0xab   :  { %v3072_v27 = vld [vmem:[%s5084_s0 + $0x160] sm:$0xf]  ;;  %931 = vst [vmem:[#allocation2 + $0x210] sm:$0xf] %v3071_v22  ;;  %v884_v29 = vrot.slane %v882_v21, 5  ;;  %v889_v33 = vrot.slane %v887_v24, 4 }
  0xac   :  { %932 = vst [vmem:[#allocation2 + $0x234] sm:$0xf] %v3072_v27  ;;  %v3079_v30 = vld [vmem:[%s5084_s0 + $0x1a0] sm:$0xf]  ;;  %v3854_v31 = vld [vmem:[#allocation2 + $0x1cc] ss:$36 sps:$4 sm:$0xff]   ;;  %v879_v34 = vor.u32 %v878_v28, %v875_v23 }
  0xad   :  { %v3856_v32 = vld [vmem:[#allocation2 + $0x1c8] ss:$36 sps:$4 sm:$0xff]   ;;  %948 = vst [vmem:[#allocation2 + $0x214] sm:$0xf] %v3079_v30  ;;  %v892_v35 = vrot.slane %v890_v25, 5  ;;  %v898_v36 = vrot.slane %v896_v26, 5  ;;  %2499 = vmatprep.mubr.bf16.mxu1 %v3854_v31 }
  0xae   :  { %v3080_v37 = vld [vmem:[%s5084_s0 + $0x1a8] sm:$0xf]  ;;  %2500 = vmatmul.mubr.bf16.gmra.mxu1 %v3856_v32  ;;  %v880_v40 = vrot.slane %v879_v34, 4  ;;  %v2986_v43 = vld [vmem:[%s5084_s0 + $0xc] sm:$0x1] }
  0xaf   :  { %949 = vst [vmem:[#allocation2 + $0x238] sm:$0xf] %v3080_v37  ;;  %v1156_v38 = vld [vmem:[#allocation2 + $0x1c0] sm:$0xff]  ;;  %v893_v41 = vor.u32 %v892_v35, %v889_v33  ;;  %v2985_v42 = vld [vmem:[%s5084_s0 + $0x8] sm:$0xf]  ;;  %v442_v52 = vshll.u32 %v2986_v43, 16 }
  0xb0   :  { %v2987_v44 = vld [vmem:[%s5084_s0 + $0x10] sm:$0xf]  ;;  %v2988_v45 = vld [vmem:[%s5084_s0 + $0x14] sm:$0x1]  ;;  %v433_v39 = vshrl.u32 %v2985_v42, 16  ;;  %v436_v46 = vshll.u32 %v2985_v42, 16  ;;  %v885_v49 = vsel %vm4040_vm2, %v880_v40, %v884_v29 }
  0xb1   :  { %v1161_v47 = vld [vmem:[#allocation2 + $0x1e4] sm:$0xff]  ;;  %v894_v51 = vrot.slane %v893_v41, 4  ;;  %v447_v53 = vshrl.u32 %v2987_v44, 16  ;;  %914 = vst [vmem:[#allocation2 + $0x20c] sm:$0xf] %v885_v49  ;;  %v450_v57 = vshll.u32 %v2987_v44, 16 }
  0xb2   :  { %v3852_v48 = vld [vmem:[#allocation2 + $0x1c4] ss:$36 sps:$4 sm:$0xff]   ;;  %v3156_v54 = vcombine.low %v1156_v38, %v1161_v47  ;;  %v435_v55 = vrot.slane %v433_v39, 4  ;;  %v438_v56 = vrot.slane %v436_v46, 5  ;;  %v456_v60 = vshll.u32 %v2988_v45, 16 }
  0xb3   :  { %2402 = vmatprep.mubr.bf16.mxu0 %v3852_v48  ;;  %v899_v58 = vsel %vm4040_vm2, %v894_v51, %v898_v36  ;;  %v449_v59 = vrot.slane %v447_v53, 4  ;;  %v444_v62 = vrot.slane %v442_v52, 5  ;;  %v452_v63 = vrot.slane %v450_v57, 5  ;;  %v3867_v0 = vld [vmem:[#allocation2 + $0x10] ss:$36 sps:$4 sm:$0xff]  }
  0xb4   :  { %2403 = vmatmul.mubr.bf16.gmra.mxu0 %v3156_v54  ;;  %915 = vst [vmem:[#allocation2 + $0x230] sm:$0xf] %v899_v58  ;;  %v439_v61 = vor.u32 %v438_v56, %v435_v55  ;;  %v2989_v1 = vld [vmem:[%s5084_s0 + $0x18] sm:$0xf]  ;;  %v3863_v3 = vld [vmem:[#allocation2 + $0x210] ss:$36 sps:$4 sm:$0xff]  }
  0xb5   :  { %v458_v4 = vrot.slane %v456_v60, 5  ;;  %v453_v6 = vor.u32 %v452_v63, %v449_v59  ;;  %v2990_v7 = vld [vmem:[%s5084_s0 + $0x1c] sm:$0x1]  ;;  %v2991_v8 = vld [vmem:[%s5084_s0 + $0x20] sm:$0xf]  ;;  %v461_v9 = vshrl.u32 %v2989_v1, 16 }
  0xb6   :  { %v3861_v2 = vld [vmem:[#allocation2 + $0x214] ss:$36 sps:$4 sm:$0xff]   ;;  %v440_v5 = vrot.slane %v439_v61, 4  ;;  %v2992_v10 = vld [vmem:[%s5084_s0 + $0x24] sm:$0x1]  ;;  %v464_v11 = vshll.u32 %v2989_v1, 16 }
  0xb7   :  { %2507 = vmatprep.mubr.bf16.mxu1 %v3861_v2  ;;  %v470_v12 = vshll.u32 %v2990_v7, 16  ;;  %v475_v13 = vshrl.u32 %v2991_v8, 16  ;;  %v478_v14 = vshll.u32 %v2991_v8, 16  ;;  %v454_v16 = vrot.slane %v453_v6, 4  ;;  %v3869_v25 = vld [vmem:[#allocation2 + $0x58] ss:$36 sps:$4 sm:$0xff]  }
  0xb8   :  { %2508 = vmatmul.mubr.bf16.gmra.mxu1 %v3863_v3  ;;  %v445_v15 = vsel %vm4040_vm2, %v440_v5, %v444_v62  ;;  %v463_v17 = vrot.slane %v461_v9, 4  ;;  %v484_v18 = vshll.u32 %v2992_v10, 16  ;;  %v1166_v19 = vld [vmem:[#allocation2 + $0x208] sm:$0xff]  ;;  %v466_v20 = vrot.slane %v464_v11, 5  ;;  %v2995_v34 = vld [vmem:[%s5084_s0 + $0x30] sm:$0xf] }
  0xb9   :  { %552 = vst [vmem:[#allocation2 + $0x20] sm:$0xf] %v445_v15  ;;  %3688 = vmatprep.mubr.bf16.mxu1 %v3867_v0  ;;  %v477_v21 = vrot.slane %v475_v13, 4  ;;  %v480_v22 = vrot.slane %v478_v14, 5  ;;  %v459_v23 = vsel %vm4040_vm2, %v454_v16, %v458_v4  ;;  %v472_v24 = vrot.slane %v470_v12, 5 }
  0xba   :  { %553 = vst [vmem:[#allocation2 + $0x44] sm:$0xf] %v459_v23  ;;  %v467_v28 = vor.u32 %v466_v20, %v463_v17  ;;  %v486_v30 = vrot.slane %v484_v18, 5  ;;  %v2993_v31 = vld [vmem:[%s5084_s0 + $0x28] sm:$0xf]  ;;  %v503_v42 = vshrl.u32 %v2995_v34, 16 }
  0xbb   :  { %v1171_v26 = vld [vmem:[#allocation2 + $0x22c] sm:$0xff]  ;;  %v481_v29 = vor.u32 %v480_v22, %v477_v21  ;;  %v2996_v35 = vld [vmem:[%s5084_s0 + $0x34] sm:$0x1]  ;;  %v489_v38 = vshrl.u32 %v2993_v31, 16  ;;  %v492_v40 = vshll.u32 %v2993_v31, 16  ;;  %v506_v43 = vshll.u32 %v2995_v34, 16 }
  0xbc   :  { %v3859_v27 = vld [vmem:[#allocation2 + $0x20c] ss:$36 sps:$4 sm:$0xff]   ;;  %v3165_v32 = vcombine.low %v1166_v19, %v1171_v26  ;;  %v468_v36 = vrot.slane %v467_v28, 4  ;;  %v512_v44 = vshll.u32 %v2996_v35, 16  ;;  %v3871_v48 = vld [vmem:[#allocation2 + $0xa0] ss:$36 sps:$4 sm:$0xff]  }
  0xbd   :  { %v2994_v33 = vld [vmem:[%s5084_s0 + $0x2c] sm:$0x1]  ;;  %2410 = vmatprep.mubr.bf16.mxu0 %v3859_v27  ;;  %v482_v37 = vrot.slane %v481_v29, 4  ;;  %v491_v46 = vrot.slane %v489_v38, 4  ;;  %v494_v47 = vrot.slane %v492_v40, 5  ;;  %v505_v52 = vrot.slane %v503_v42, 4 }
  0xbe   :  { %2411 = vmatmul.mubr.bf16.gmra.mxu0 %v3165_v32  ;;  %v498_v41 = vshll.u32 %v2994_v33, 16  ;;  %v473_v45 = vsel %vm4040_vm2, %v468_v36, %v472_v24  ;;  %v2997_v49 = vld [vmem:[%s5084_s0 + $0x38] sm:$0xf]  ;;  %v508_v53 = vrot.slane %v506_v43, 5  ;;  %v514_v54 = vrot.slane %v512_v44, 5 }
  0xbf   :  { %v487_v39 = vsel %vm4040_vm2, %v482_v37, %v486_v30  ;;  %554 = vst [vmem:[#allocation2 + $0x68] sm:$0xf] %v473_v45  ;;  %v495_v55 = vor.u32 %v494_v47, %v491_v46  ;;  %v2998_v56 = vld [vmem:[%s5084_s0 + $0x3c] sm:$0x1]  ;;  %v2999_v57 = vld [vmem:[%s5084_s0 + $0x40] sm:$0xf] }
  0xc0   :  { %555 = vst [vmem:[#allocation2 + $0x8c] sm:$0xf] %v487_v39  ;;  %3689 = vmatmul.mubr.bf16.vlgmr.msra.gmra.mxu1 %v3869_v25  ;;  %v500_v51 = vrot.slane %v498_v41, 5  ;;  %v3000_v58 = vld [vmem:[%s5084_s0 + $0x44] sm:$0x1]  ;;  %v509_v60 = vor.u32 %v508_v53, %v505_v52  ;;  %v517_v61 = vshrl.u32 %v2997_v49, 16 }
  0xc1   :  { %3692 = vmatprep.mubr.bf16.mxu1 %v3871_v48  ;;  %v3866_v59 = vld [vmem:[#allocation2 + $0x20] ss:$36 sps:$4 sm:$0xff]   ;;  %v520_v62 = vshll.u32 %v2997_v49, 16  ;;  %v496_v63 = vrot.slane %v495_v55, 4  ;;  %v526_v0 = vshll.u32 %v2998_v56, 16  ;;  %v531_v1 = vshrl.u32 %v2999_v57, 16 }
  0xc2   :  { %v534_v2 = vshll.u32 %v2999_v57, 16  ;;  %3656 = vmatprep.mubr.bf16.mxu0 %v3866_v59  ;;  %v510_v3 = vrot.slane %v509_v60, 4  ;;  %v519_v4 = vrot.slane %v517_v61, 4  ;;  %v540_v6 = vshll.u32 %v3000_v58, 16  ;;  %v3873_v10 = vld [vmem:[#allocation2 + $0xe8] ss:$36 sps:$4 sm:$0xff]  }
  0xc3   :  { %v522_v5 = vrot.slane %v520_v62, 5  ;;  %v501_v7 = vsel %vm4040_vm2, %v496_v63, %v500_v51  ;;  %v533_v8 = vrot.slane %v531_v1, 4  ;;  %v528_v13 = vrot.slane %v526_v0, 5  ;;  %v3081_v15 = vld [vmem:[%s5084_s0 + $0x128] sm:$0xf] }
  0xc4   :  { %v536_v9 = vrot.slane %v534_v2, 5  ;;  %v515_v11 = vsel %vm4040_vm2, %v510_v3, %v514_v54  ;;  %556 = vst [vmem:[#allocation2 + $0xb0] sm:$0xf] %v501_v7  ;;  %v542_v14 = vrot.slane %v540_v6, 5  ;;  %v3082_v16 = vld [vmem:[%s5084_s0 + $0x12c] sm:$0x1] }
  0xc5   :  { %v523_v12 = vor.u32 %v522_v5, %v519_v4  ;;  %557 = vst [vmem:[#allocation2 + $0xd4] sm:$0xf] %v515_v11  ;;  %v3083_v20 = vld [vmem:[%s5084_s0 + $0x130] sm:$0xf]  ;;  %v3084_v21 = vld [vmem:[%s5084_s0 + $0x134] sm:$0x1] }
  0xc6   :  { %v537_v18 = vor.u32 %v536_v9, %v533_v8  ;;  %v967_v22 = vshrl.u32 %v3081_v15, 16  ;;  %v970_v24 = vshll.u32 %v3081_v15, 16  ;;  %v976_v25 = vshll.u32 %v3082_v16, 16  ;;  %v3875_v35 = vld [vmem:[#allocation2 + $0x130] ss:$36 sps:$4 sm:$0xff]  }
  0xc7   :  { %v3868_v17 = vld [vmem:[#allocation2 + $0x68] ss:$36 sps:$4 sm:$0xff]   ;;  %v524_v19 = vrot.slane %v523_v12, 4  ;;  %v981_v26 = vshrl.u32 %v3083_v20, 16  ;;  %v984_v29 = vshll.u32 %v3083_v20, 16  ;;  %v990_v30 = vshll.u32 %v3084_v21, 16 }
  0xc8   :  { %3693 = vmatmul.mubr.bf16.gmra.mxu1 %v3873_v10  ;;  %3657 = vmatmul.mubr.bf16.vlgmr.msra.gmra.mxu0 %v3868_v17  ;;  %v538_v23 = vrot.slane %v537_v18, 4  ;;  %v969_v28 = vrot.slane %v967_v22, 4  ;;  %v972_v32 = vrot.slane %v970_v24, 5  ;;  %v978_v33 = vrot.slane %v976_v25, 5  ;;  %v3085_v38 = vld [vmem:[%s5084_s0 + $0x138] sm:$0xf] }
  0xc9   :  { %v529_v27 = vsel %vm4040_vm2, %v524_v19, %v528_v13  ;;  %v983_v34 = vrot.slane %v981_v26, 4  ;;  %v986_v36 = vrot.slane %v984_v29, 5  ;;  %v992_v37 = vrot.slane %v990_v30, 5  ;;  %v3086_v40 = vld [vmem:[%s5084_s0 + $0x13c] sm:$0x1]  ;;  %3696 = vmatprep.mubr.bf16.mxu1 %v3875_v35 }
  0xca   :  { %v543_v31 = vsel %vm4040_vm2, %v538_v23, %v542_v14  ;;  %558 = vst [vmem:[#allocation2 + $0xf8] sm:$0xf] %v529_v27  ;;  %v973_v41 = vor.u32 %v972_v32, %v969_v28  ;;  %v3087_v42 = vld [vmem:[%s5084_s0 + $0x140] sm:$0xf]  ;;  %v3088_v43 = vld [vmem:[%s5084_s0 + $0x144] sm:$0x1] }
  0xcb   :  { %559 = vst [vmem:[#allocation2 + $0x11c] sm:$0xf] %v543_v31  ;;  %v987_v45 = vor.u32 %v986_v36, %v983_v34  ;;  %v995_v39 = vshrl.u32 %v3085_v38, 16  ;;  %v998_v46 = vshll.u32 %v3085_v38, 16  ;;  %v1004_v48 = vshll.u32 %v3086_v40, 16 }
  0xcc   :  { %v3870_v44 = vld [vmem:[#allocation2 + $0xb0] ss:$36 sps:$4 sm:$0xff]   ;;  %v974_v47 = vrot.slane %v973_v41, 4  ;;  %v1009_v49 = vshrl.u32 %v3087_v42, 16  ;;  %v1012_v51 = vshll.u32 %v3087_v42, 16  ;;  %v1018_v55 = vshll.u32 %v3088_v43, 16 }
  0xcd   :  { %3660 = vmatprep.mubr.bf16.mxu0 %v3870_v44  ;;  %v988_v52 = vrot.slane %v987_v45, 4  ;;  %v997_v53 = vrot.slane %v995_v39, 4  ;;  %v1000_v54 = vrot.slane %v998_v46, 5  ;;  %v3877_v59 = vld [vmem:[#allocation2 + $0x178] ss:$36 sps:$4 sm:$0xff]   ;;  %v1006_v62 = vrot.slane %v1004_v48, 5 }
  0xce   :  { %v979_v56 = vsel %vm4040_vm2, %v974_v47, %v978_v33  ;;  %v1011_v57 = vrot.slane %v1009_v49, 4  ;;  %v1014_v58 = vrot.slane %v1012_v51, 5  ;;  %v1020_v63 = vrot.slane %v1018_v55, 5  ;;  %v3089_v0 = vld [vmem:[%s5084_s0 + $0x148] sm:$0xf] }
  0xcf   :  { %v993_v60 = vsel %vm4040_vm2, %v988_v52, %v992_v37  ;;  %1086 = vst [vmem:[#allocation2 + $0x140] sm:$0xf] %v979_v56  ;;  %v1001_v61 = vor.u32 %v1000_v54, %v997_v53  ;;  %v3090_v3 = vld [vmem:[%s5084_s0 + $0x14c] sm:$0x1]  ;;  %v3091_v5 = vld [vmem:[%s5084_s0 + $0x150] sm:$0xf] }
  0xd0   :  { %1087 = vst [vmem:[#allocation2 + $0x164] sm:$0xf] %v993_v60  ;;  %v1015_v2 = vor.u32 %v1014_v58, %v1011_v57  ;;  %3697 = vmatmul.mubr.bf16.gmra.mxu1 %v3877_v59  ;;  %v3092_v6 = vld [vmem:[%s5084_s0 + $0x154] sm:$0x1]  ;;  %v1023_v7 = vshrl.u32 %v3089_v0, 16  ;;  %v1026_v9 = vshll.u32 %v3089_v0, 16 }
  0xd1   :  { %v1002_v4 = vrot.slane %v1001_v61, 4  ;;  %v1032_v10 = vshll.u32 %v3090_v3, 16  ;;  %v1037_v11 = vshrl.u32 %v3091_v5, 16  ;;  %v1040_v14 = vshll.u32 %v3091_v5, 16  ;;  %v3879_v20 = vld [vmem:[#allocation2 + $0x1c0] ss:$36 sps:$4 sm:$0xff]  }
  0xd2   :  { %v3872_v1 = vld [vmem:[#allocation2 + $0xf8] ss:$36 sps:$4 sm:$0xff]   ;;  %v1016_v8 = vrot.slane %v1015_v2, 4  ;;  %v1025_v13 = vrot.slane %v1023_v7, 4  ;;  %v1046_v15 = vshll.u32 %v3092_v6, 16  ;;  %v1028_v17 = vrot.slane %v1026_v9, 5  ;;  %3700 = vmatprep.mubr.bf16.mxu1 %v3879_v20 }
  0xd3   :  { %3661 = vmatmul.mubr.bf16.gmra.mxu0 %v3872_v1  ;;  %v1007_v12 = vsel %vm4040_vm2, %v1002_v4, %v1006_v62  ;;  %v1034_v18 = vrot.slane %v1032_v10, 5  ;;  %v1039_v19 = vrot.slane %v1037_v11, 4  ;;  %v1042_v22 = vrot.slane %v1040_v14, 5  ;;  %v3093_v24 = vld [vmem:[%s5084_s0 + $0x158] sm:$0xf] }
  0xd4   :  { %v1021_v16 = vsel %vm4040_vm2, %v1016_v8, %v1020_v63  ;;  %1088 = vst [vmem:[#allocation2 + $0x188] sm:$0xf] %v1007_v12  ;;  %v1048_v23 = vrot.slane %v1046_v15, 5  ;;  %v3094_v25 = vld [vmem:[%s5084_s0 + $0x15c] sm:$0x1]  ;;  %v1029_v26 = vor.u32 %v1028_v17, %v1025_v13  ;;  %v1051_v32 = vshrl.u32 %v3093_v24, 16 }
  0xd5   :  { %1089 = vst [vmem:[#allocation2 + $0x1ac] sm:$0xf] %v1021_v16  ;;  %v3095_v27 = vld [vmem:[%s5084_s0 + $0x160] sm:$0xf]  ;;  %v3096_v28 = vld [vmem:[%s5084_s0 + $0x164] sm:$0x1]  ;;  %v1043_v31 = vor.u32 %v1042_v22, %v1039_v19 }
  0xd6   :  { %v1054_v33 = vshll.u32 %v3093_v24, 16  ;;  %v1030_v35 = vrot.slane %v1029_v26, 4  ;;  %v1060_v36 = vshll.u32 %v3094_v25, 16  ;;  %v1065_v37 = vshrl.u32 %v3095_v27, 16  ;;  %v3881_v48 = vld [vmem:[#allocation2 + $0x208] ss:$36 sps:$4 sm:$0xff]  }
  0xd7   :  { %v3874_v30 = vld [vmem:[#allocation2 + $0x140] ss:$36 sps:$4 sm:$0xff]   ;;  %v1068_v38 = vshll.u32 %v3095_v27, 16  ;;  %v1044_v41 = vrot.slane %v1043_v31, 4  ;;  %v1053_v42 = vrot.slane %v1051_v32, 4  ;;  %v1074_v44 = vshll.u32 %v3096_v28, 16 }
  0xd8   :  { %3664 = vmatprep.mubr.bf16.mxu0 %v3874_v30  ;;  %v1056_v43 = vrot.slane %v1054_v33, 5  ;;  %v1035_v45 = vsel %vm4040_vm2, %v1030_v35, %v1034_v18  ;;  %v1062_v39 = vrot.slane %v1060_v36, 5  ;;  %v1067_v46 = vrot.slane %v1065_v37, 4  ;;  %3701 = vmatmul.mubr.bf16.gmra.mxu1 %v3881_v48  ;;  %v4833_v57 = vld [vmem:[%s5086_s3] ss:$0 sm:$0xff] }
  0xd9   :  { %v1070_v47 = vrot.slane %v1068_v38, 5  ;;  %v1049_v51 = vsel %vm4040_vm2, %v1044_v41, %v1048_v23  ;;  %1090 = vst [vmem:[#allocation2 + $0x1d0] sm:$0xf] %v1035_v45  ;;  %v1076_v53 = vrot.slane %v1074_v44, 5 }
  0xda   :  { %v1057_v52 = vor.u32 %v1056_v43, %v1053_v42  ;;  %1091 = vst [vmem:[#allocation2 + $0x1f4] sm:$0xf] %v1049_v51 }
  0xdb   :  { %v1071_v56 = vor.u32 %v1070_v47, %v1067_v46 }
  0xdc   :  { %v3876_v55 = vld [vmem:[#allocation2 + $0x188] ss:$36 sps:$4 sm:$0xff]   ;;  %v1058_v58 = vrot.slane %v1057_v52, 4 }
  0xdd   :  { %3665 = vmatmul.mubr.bf16.gmra.mxu0 %v3876_v55  ;;  %v1072_v59 = vrot.slane %v1071_v56, 4 }
  0xde   :  { %v1063_v61 = vsel %vm4040_vm2, %v1058_v58, %v1062_v39 }
  0xdf   :  { %v1077_v0 = vsel %vm4040_vm2, %v1072_v59, %v1076_v53  ;;  %1092 = vst [vmem:[#allocation2 + $0x218] sm:$0xf] %v1063_v61 }
  0xe0   :  { %1093 = vst [vmem:[#allocation2 + $0x23c] sm:$0xf] %v1077_v0 }
  0xe1   :  { %v3878_v6 = vld [vmem:[#allocation2 + $0x1d0] ss:$36 sps:$4 sm:$0xff]  }
  0xe2   :  { %3668 = vmatprep.mubr.bf16.mxu0 %v3878_v6 }
  0xe3   :  { %v3368_v21 = vpop.f32.mrf.mxu0 }
  0xe4   :  { %v3432_v60 = vpop.f32.mrf.mxu1 }
  0xe5   :  { %v3369_v29 = vpop.f32.mrf.mxu0 }
  0xe6   :  { %v3370_v34 = vadd.f32 %v3369_v29, %v3368_v21  ;;  %v3433_v1 = vpop.f32.mrf.mxu1 }
  0xe7   :  { %v3371_v40 = vpop.f32.mrf.mxu0  ;;  %v3434_v2 = vadd.f32 %v3433_v1, %v3432_v60  ;;  %v3880_v14 = vld [vmem:[#allocation2 + $0x218] ss:$36 sps:$4 sm:$0xff]  }
  0xe8   :  { %v2163_v62 = vadd.f32 %v3370_v34, %v4833_v57  ;;  %v3435_v4 = vpop.f32.mrf.mxu1  ;;  %3669 = vmatmul.mubr.bf16.gmra.mxu0 %v3880_v14 }
  0xe9   :  { %v3372_v49 = vpop.f32.mrf.mxu0 }
  0xea   :  { %v3373_v54 = vadd.f32 %v3372_v49, %v3371_v40  ;;  %v4840_v7 = vadd.f32 %v3434_v2, %v2163_v62  ;;  %v3436_v10 = vpop.f32.mrf.mxu1 }
  0xeb   :  { %v3374_v63 = vpop.f32.mrf.mxu0  ;;  %v3437_v11 = vadd.f32 %v3436_v10, %v3435_v4 }
  0xec   :  { %v2166_v8 = vadd.f32 %v3373_v54, %v4833_v57  ;;  %v3438_v15 = vpop.f32.mrf.mxu1 }
  0xed   :  { %v3375_v3 = vpop.f32.mrf.mxu0 }
  0xee   :  { %v3376_v5 = vadd.f32 %v3375_v3, %v3374_v63  ;;  %v4843_v50 = vadd.f32 %v3437_v11, %v2166_v8  ;;  %v3439_v18 = vpop.f32.mrf.mxu1 }
  0xef   :  { %v3377_v9 = vpop.f32.mrf.mxu0  ;;  %v3440_v19 = vadd.f32 %v3439_v18, %v3438_v15 }
  0xf0   :  { %v2171_v16 = vadd.f32 %v3376_v5, %v4833_v57  ;;  %v3441_v21 = vpop.f32.mrf.mxu1 }
  0xf1   :  { %v3378_v12 = vpop.f32.mrf.mxu0 }
  0xf2   :  { %v3379_v13 = vadd.f32 %v3378_v12, %v3377_v9  ;;  %v4846_v23 = vadd.f32 %v3440_v19, %v2171_v16  ;;  %v3442_v26 = vpop.f32.mrf.mxu1 }
  0xf3   :  { %v3380_v17 = vpop.f32.mrf.mxu0  ;;  %v3443_v27 = vadd.f32 %v3442_v26, %v3441_v21 }
  0xf4   :  { %v2174_v24 = vadd.f32 %v3379_v13, %v4833_v57 }
  0xf5   :  { %v3381_v20 = vpop.f32.mrf.mxu0  ;;  %v3444_v31 = vpop.f32.mrf.mxu1 }
  0xf6   :  { %v3382_v22 = vadd.f32 %v3381_v20, %v3380_v17  ;;  %v4849_v30 = vadd.f32 %v3443_v27, %v2174_v24 }
  0xf7   :  { %v3383_v25 = vpop.f32.mrf.mxu0  ;;  %v3445_v34 = vpop.f32.mrf.mxu1 }
  0xf8   :  { %v2179_v32 = vadd.f32 %v3382_v22, %v4833_v57  ;;  %v3446_v35 = vadd.f32 %v3445_v34, %v3444_v31 }
  0xf9   :  { %v3384_v28 = vpop.f32.mrf.mxu0  ;;  %v3447_v37 = vpop.f32.mrf.mxu1 }
  0xfa   :  { %v3385_v29 = vadd.f32 %v3384_v28, %v3383_v25  ;;  %v4852_v40 = vadd.f32 %v3446_v35, %v2179_v32 }
  0xfb   :  { %v3386_v33 = vpop.f32.mrf.mxu0  ;;  %v3448_v43 = vpop.f32.mrf.mxu1 }
  0xfc   :  { %v2182_v41 = vadd.f32 %v3385_v29, %v4833_v57  ;;  %v3449_v44 = vadd.f32 %v3448_v43, %v3447_v37 }
  0xfd   :  { %v3387_v36 = vpop.f32.mrf.mxu0 }
  0xfe   :  { %v3388_v38 = vadd.f32 %v3387_v36, %v3386_v33  ;;  %v4855_v46 = vadd.f32 %v3449_v44, %v2182_v41 }
  0xff   :  { %v3389_v42 = vpop.f32.mrf.mxu0 }
 0x100   :  { %v3450_v47 = vpop.f32.mrf.mxu1  ;;  %v2187_v48 = vadd.f32 %v3388_v38, %v4833_v57 }
 0x101   :  { %v3390_v45 = vpop.f32.mrf.mxu0 }
 0x102   :  { %v3391_v39 = vadd.f32 %v3390_v45, %v3389_v42  ;;  %v3451_v51 = vpop.f32.mrf.mxu1 }
 0x103   :  { %v3392_v49 = vpop.f32.mrf.mxu0  ;;  %v3452_v52 = vadd.f32 %v3451_v51, %v3450_v47 }
 0x104   :  { %v3453_v54 = vpop.f32.mrf.mxu1  ;;  %v2190_v58 = vadd.f32 %v3391_v39, %v4833_v57 }
 0x105   :  { %v3393_v53 = vpop.f32.mrf.mxu0  ;;  %v4858_v56 = vadd.f32 %v3452_v52, %v2187_v48 }
 0x106   :  { %v3394_v55 = vadd.f32 %v3393_v53, %v3392_v49  ;;  %v3454_v60 = vpop.f32.mrf.mxu1 }
 0x107   :  { %v3395_v59 = vpop.f32.mrf.mxu0  ;;  %v3455_v61 = vadd.f32 %v3454_v60, %v3453_v54 }
 0x108   :  { %v2195_v2 = vadd.f32 %v3394_v55, %v4833_v57 }
 0x109   :  { %v3396_v62 = vpop.f32.mrf.mxu0  ;;  %v4861_v0 = vadd.f32 %v3455_v61, %v2190_v58 }
 0x10a   :  { %v3397_v63 = vadd.f32 %v3396_v62, %v3395_v59 }
 0x10b   :  { %v3456_v1 = vpop.f32.mrf.mxu1 }
 0x10c   :  { %v2198_v11 = vadd.f32 %v3397_v63, %v4833_v57 }
 0x10d   :  { %v3457_v4 = vpop.f32.mrf.mxu1 }
 0x10e   :  { %v3398_v3 = vpop.f32.mrf.mxu0  ;;  %v3458_v5 = vadd.f32 %v3457_v4, %v3456_v1 }
 0x10f   :  { %v3459_v8 = vpop.f32.mrf.mxu1 }
 0x110   :  { %v3399_v6 = vpop.f32.mrf.mxu0  ;;  %v4864_v10 = vadd.f32 %v3458_v5, %v2195_v2 }
 0x111   :  { %v3400_v9 = vadd.f32 %v3399_v6, %v3398_v3  ;;  %v3460_v13 = vpop.f32.mrf.mxu1 }
 0x112   :  { %v3401_v12 = vpop.f32.mrf.mxu0  ;;  %v3461_v14 = vadd.f32 %v3460_v13, %v3459_v8 }
 0x113   :  { %v2203_v19 = vadd.f32 %v3400_v9, %v4833_v57 }
 0x114   :  { %v3402_v15 = vpop.f32.mrf.mxu0  ;;  %v4867_v17 = vadd.f32 %v3461_v14, %v2198_v11 }
 0x115   :  { %v3403_v16 = vadd.f32 %v3402_v15, %v3401_v12  ;;  %v3462_v18 = vpop.f32.mrf.mxu1 }
 0x117   :  { %v3463_v21 = vpop.f32.mrf.mxu1  ;;  %v2206_v28 = vadd.f32 %v3403_v16, %v4833_v57 }
 0x118   :  { %v3404_v20 = vpop.f32.mrf.mxu0  ;;  %v3464_v22 = vadd.f32 %v3463_v21, %v3462_v18 }
 0x119   :  { %v3465_v25 = vpop.f32.mrf.mxu1 }
 0x11a   :  { %v3405_v24 = vpop.f32.mrf.mxu0  ;;  %v4870_v27 = vadd.f32 %v3464_v22, %v2203_v19 }
 0x11b   :  { %v3406_v26 = vadd.f32 %v3405_v24, %v3404_v20  ;;  %v3466_v31 = vpop.f32.mrf.mxu1 }
 0x11c   :  { %v3407_v29 = vpop.f32.mrf.mxu0  ;;  %v3467_v32 = vadd.f32 %v3466_v31, %v3465_v25 }
 0x11d   :  { %v2211_v37 = vadd.f32 %v3406_v26, %v4833_v57 }
 0x11e   :  { %v3408_v33 = vpop.f32.mrf.mxu0  ;;  %v4873_v35 = vadd.f32 %v3467_v32, %v2206_v28 }
 0x11f   :  { %v3409_v34 = vadd.f32 %v3408_v33, %v3407_v29  ;;  %v3468_v36 = vpop.f32.mrf.mxu1 }
 0x121   :  { %v3469_v41 = vpop.f32.mrf.mxu1  ;;  %v2214_v47 = vadd.f32 %v3409_v34, %v4833_v57 }
 0x122   :  { %v3410_v38 = vpop.f32.mrf.mxu0  ;;  %v3470_v42 = vadd.f32 %v3469_v41, %v3468_v36 }
 0x123   :  { %v3471_v44 = vpop.f32.mrf.mxu1 }
 0x124   :  { %v3411_v43 = vpop.f32.mrf.mxu0  ;;  %v4876_v39 = vadd.f32 %v3470_v42, %v2211_v37 }
 0x125   :  { %v3412_v45 = vadd.f32 %v3411_v43, %v3410_v38  ;;  %v3472_v49 = vpop.f32.mrf.mxu1 }
 0x126   :  { %v3413_v48 = vpop.f32.mrf.mxu0  ;;  %v3473_v51 = vadd.f32 %v3472_v49, %v3471_v44 }
 0x127   :  { %v2219_v58 = vadd.f32 %v3412_v45, %v4833_v57 }
 0x128   :  { %v3414_v52 = vpop.f32.mrf.mxu0  ;;  %v4879_v54 = vadd.f32 %v3473_v51, %v2214_v47 }
 0x129   :  { %v3415_v53 = vadd.f32 %v3414_v52, %v3413_v48 }
 0x12a   :  { %5091 = vst [vmem:[#allocation3_spill] sm:$0xff] %v4879_v54 }
 0x12b   :  { %v3474_v55 = vpop.f32.mrf.mxu1  ;;  %v2222_v63 = vadd.f32 %v3415_v53, %v4833_v57 }
 0x12d   :  { %v3475_v59 = vpop.f32.mrf.mxu1 }
 0x12e   :  { %v3476_v60 = vadd.f32 %v3475_v59, %v3474_v55 }
 0x12f   :  { %v3477_v61 = vpop.f32.mrf.mxu1 }
 0x130   :  { %v4882_v62 = vadd.f32 %v3476_v60, %v2219_v58 }
 0x131   :  { %v3478_v1 = vpop.f32.mrf.mxu1 }
 0x132   :  { %v3479_v2 = vadd.f32 %v3478_v1, %v3477_v61 }
 0x133   :  { %v3560_v3 = vpop.f32.mrf.mxu1 }
 0x134   :  { %v4885_v4 = vadd.f32 %v3479_v2, %v2222_v63 }
 0x135   :  { %v3561_v5 = vpop.f32.mrf.mxu1 }
 0x136   :  { %5092 = vst [vmem:[#allocation4_spill] sm:$0xff] %v4885_v4  ;;  %v3562_v8 = vadd.f32 %v3561_v5, %v3560_v3 }
 0x137   :  { %v3496_v6 = vpop.f32.mrf.mxu0  ;;  %v3563_v9 = vpop.f32.mrf.mxu1 }
 0x139   :  { %v3497_v11 = vpop.f32.mrf.mxu0  ;;  %v3564_v13 = vpop.f32.mrf.mxu1 }
 0x13a   :  { %v3498_v12 = vadd.f32 %v3497_v11, %v3496_v6  ;;  %v3565_v15 = vadd.f32 %v3564_v13, %v3563_v9 }
 0x13b   :  { %v3499_v14 = vpop.f32.mrf.mxu0  ;;  %v3566_v18 = vpop.f32.mrf.mxu1 }
 0x13c   :  { %v2357_v16 = vadd.f32 %v3498_v12, %v4840_v7 }
 0x13d   :  { %v3500_v19 = vpop.f32.mrf.mxu0  ;;  %v3567_v57 = vpop.f32.mrf.mxu1 }
 0x13e   :  { %v3501_v20 = vadd.f32 %v3500_v19, %v3499_v14  ;;  %v4888_v21 = vadd.f32 %v3562_v8, %v2357_v16  ;;  %v3568_v32 = vadd.f32 %v3567_v57, %v3566_v18 }
 0x13f   :  { %v4891_v24 = vpop.f32.mrf.mxu1 }
 0x140   :  { %v2360_v22 = vadd.f32 %v3501_v20, %v4843_v50 }
 0x141   :  { %v4893_v26 = vpop.f32.mrf.mxu1 }
 0x142   :  { %v3502_v25 = vpop.f32.mrf.mxu0  ;;  %v4895_v28 = vadd.f32 %v3565_v15, %v2360_v22 }
 0x144   :  { %v3503_v29 = vpop.f32.mrf.mxu0 }
 0x145   :  { %v3504_v31 = vadd.f32 %v3503_v29, %v3502_v25  ;;  %v3572_v33 = vpop.f32.mrf.mxu1 }
 0x146   :  { %v4897_v7 = vpop.f32.mrf.mxu0 }
 0x147   :  { %v2365_v34 = vadd.f32 %v3504_v31, %v4846_v23  ;;  %v3573_v36 = vpop.f32.mrf.mxu1 }
 0x148   :  { %v3506_v37 = vpop.f32.mrf.mxu0  ;;  %v3574_v38 = vadd.f32 %v3573_v36, %v3572_v33 }
 0x149   :  { %v3575_v41 = vpop.f32.mrf.mxu1  ;;  %v4900_v50 = vadd.f32 %v3568_v32, %v2365_v34 }
 0x14a   :  { %v3508_v42 = vpop.f32.mrf.mxu0 }
 0x14b   :  { %v3576_v43 = vpop.f32.mrf.mxu1 }
 0x14c   :  { %v3509_v44 = vpop.f32.mrf.mxu0  ;;  %v3577_v45 = vadd.f32 %v3576_v43, %v3575_v41 }
 0x14d   :  { %v3510_v47 = vadd.f32 %v3509_v44, %v3508_v42 }
 0x14e   :  { %v3511_v48 = vpop.f32.mrf.mxu0 }
 0x14f   :  { %v2373_v49 = vadd.f32 %v3510_v47, %v4852_v40 }
 0x150   :  { %v3512_v52 = vpop.f32.mrf.mxu0 }
 0x151   :  { %v4903_v51 = vpop.f32.mrf.mxu1  ;;  %v3513_v53 = vadd.f32 %v3512_v52, %v3511_v48  ;;  %v4907_v23 = vadd.f32 %v3574_v38, %v2373_v49 }
 0x153   :  { %v4905_v55 = vpop.f32.mrf.mxu1  ;;  %v2376_v58 = vadd.f32 %v3513_v53, %v4855_v46 }
 0x155   :  { %v4910_v59 = vpop.f32.mrf.mxu1  ;;  %v4916_v63 = vadd.f32 %v3577_v45, %v2376_v58 }
 0x156   :  { %v4912_v60 = vpop.f32.mrf.mxu0 }
 0x157   :  { %v4914_v61 = vpop.f32.mrf.mxu1 }
 0x158   :  { %v3515_v1 = vpop.f32.mrf.mxu0 }
 0x15a   :  { %v4918_v40 = vpop.f32.mrf.mxu0  ;;  %v3584_v2 = vpop.f32.mrf.mxu1 }
 0x15c   :  { %v4920_v3 = vpop.f32.mrf.mxu0  ;;  %v3585_v5 = vpop.f32.mrf.mxu1 }
 0x15d   :  { %v3586_v6 = vadd.f32 %v3585_v5, %v3584_v2  ;;  %v3507_v2 = vadd.f32 %v3506_v37, %v4897_v7  ;;  %v3571_v7 = vadd.f32 %v4893_v26, %v4891_v24  ;;  %v3519_v26 = vadd.f32 %v4920_v3, %v4918_v40 }
 0x15e   :  { %v4922_v8 = vpop.f32.mrf.mxu1 }
 0x160   :  { %v3520_v9 = vpop.f32.mrf.mxu0  ;;  %v4924_v46 = vpop.f32.mrf.mxu1 }
 0x162   :  { %v3521_v11 = vpop.f32.mrf.mxu0 }
 0x163   :  { %v3522_v12 = vadd.f32 %v3521_v11, %v3520_v9 }
 0x164   :  { %v4926_v13 = vpop.f32.mrf.mxu0  ;;  %v4928_v14 = vpop.f32.mrf.mxu1 }
 0x165   :  { %v2389_v15 = vadd.f32 %v3522_v12, %v4864_v10 }
 0x166   :  { %v4931_v16 = vpop.f32.mrf.mxu0  ;;  %v4933_v18 = vpop.f32.mrf.mxu1 }
 0x167   :  { %v4935_v19 = vadd.f32 %v3586_v6, %v2389_v15  ;;  %v2368_v15 = vadd.f32 %v3507_v2, %v4849_v30 }
 0x168   :  { %v4937_v20 = vpop.f32.mrf.mxu1 }
 0x16a   :  { %v4939_v57 = vpop.f32.mrf.mxu0  ;;  %v4941_v22 = vpop.f32.mrf.mxu1 }
 0x16c   :  { %v4943_v25 = vpop.f32.mrf.mxu0 }
 0x16e   :  { %v4945_v29 = vpop.f32.mrf.mxu0  ;;  %v4947_v31 = vpop.f32.mrf.mxu1 }
 0x170   :  { %v4949_v32 = vpop.f32.mrf.mxu0  ;;  %v4951_v10 = vpop.f32.mrf.mxu1 }
 0x172   :  { %v4953_v33 = vpop.f32.mrf.mxu1 }
 0x173   :  { %5093 = vst [vmem:[#allocation5_spill] sm:$0xff] %v4953_v33 }
 0x174   :  { %v4955_v34 = vpop.f32.mrf.mxu0  ;;  %v4957_v36 = vpop.f32.mrf.mxu1 }
 0x175   :  { %5094 = vst [vmem:[#allocation6_spill] sm:$0xff] %v4957_v36 }
 0x176   :  { %v4959_v38 = vpop.f32.mrf.mxu0 }
 0x178   :  { %v4961_v41 = vpop.f32.mrf.mxu0  ;;  %v4963_v42 = vpop.f32.mrf.mxu1 }
 0x17a   :  { %v4965_v43 = vpop.f32.mrf.mxu0  ;;  %v4967_v44 = vpop.f32.mrf.mxu1 }
 0x17c   :  { %v4969_v45 = vpop.f32.mrf.mxu1 }
 0x17d   :  { %5095 = vst [vmem:[#allocation7_spill] sm:$0xff] %v4969_v45 }
 0x17e   :  { %v4971_v47 = vpop.f32.mrf.mxu0  ;;  %v4973_v48 = vpop.f32.mrf.mxu1 }
 0x17f   :  { %5096 = vst [vmem:[#allocation8_spill] sm:$0xff] %v4973_v48 }
 0x180   :  { %v4975_v49 = vpop.f32.mrf.mxu0  ;;  %v3690_v52 = vpop.f32.mrf.mxu1 }
 0x182   :  { %v4977_v53 = vpop.f32.mrf.mxu0  ;;  %v2826_v58 = vpop.f32.mrf.mxu1 }
 0x184   :  { %v3691_v5 = vpop.f32.mrf.mxu1  ;;  %v4980_v6 = vpop.f32.mrf.mxu0 }
 0x185   :  { %v3306_v9 = vpack.c.bf16 %v3691_v5, %v3690_v52  ;;  %v2465_v5 = vadd.f32 %v3571_v7, %v2368_v15 }
 0x186   :  { %v2829_v11 = vpop.f32.mrf.mxu1 }
 0x187   :  { %3345 = vst [vmem:[%s5087_s5 + $0x8] sm:$0xff] %v3306_v9   ;;  %v3301_v12 = vpack.c.bf16 %v2829_v11, %v2826_v58  ;;  %v3516_v58 = vadd.f32 %v3515_v1, %v4912_v60  ;;  %v3580_v60 = vadd.f32 %v4905_v55, %v4903_v51  ;;  %v3583_v51 = vadd.f32 %v4914_v61, %v4910_v59 }
 0x188   :  { %v3694_v36 = vpop.f32.mrf.mxu1  ;;  %v3658_v33 = vpop.f32.mrf.mxu0 }
 0x189   :  { %3302 = vst [vmem:[%s5087_s5] sm:$0xff] %v3301_v12   ;;  %v2559_v52 = vadd.f32 %v3658_v33, %v4900_v50 }
 0x18a   :  { %v2842_v37 = vpop.f32.mrf.mxu1  ;;  %v2550_v48 = vpop.f32.mrf.mxu0 }
 0x18b   :  { %v2551_v30 = vadd.f32 %v2550_v48, %v4888_v21  ;;  %v2615_v50 = vmax.f32 %v2559_v52, 0.0  ;;  %v2384_v48 = vadd.f32 %v3519_v26, %v4861_v0 }
 0x18c   :  { %v3695_v45 = vpop.f32.mrf.mxu1  ;;  %v3659_v54 = vpop.f32.mrf.mxu0 }
 0x18d   :  { %v3316_v9 = vpack.c.bf16 %v3695_v45, %v3694_v36  ;;  %v2562_v2 = vadd.f32 %v3659_v54, %v2465_v5  ;;  %v2381_v54 = vadd.f32 %v3516_v58, %v4858_v56  ;;  %v2613_v21 = vmax.f32 %v2551_v30, 0.0 }
 0x18e   :  { %v2845_v11 = vpop.f32.mrf.mxu1  ;;  %v2553_v4 = vpop.f32.mrf.mxu0  ;;  %v2481_v7 = vadd.f32 %v3583_v51, %v2384_v48  ;;  %v3528_v5 = vadd.f32 %v4943_v25, %v4939_v57  ;;  %v3531_v30 = vadd.f32 %v4949_v32, %v4945_v29  ;;  %v3592_v57 = vadd.f32 %v4933_v18, %v4928_v14 }
 0x18f   :  { %3347 = vst [vmem:[%s5087_s5 + $0x18] sm:$0xff] %v3316_v9   ;;  %v3311_v24 = vpack.c.bf16 %v2845_v11, %v2842_v37  ;;  %v2616_v33 = vmax.f32 %v2562_v2, 0.0  ;;  %v2554_v12 = vadd.f32 %v2553_v4, %v4895_v28  ;;  %v2478_v56 = vadd.f32 %v3580_v60, %v2381_v54 }
 0x190   :  { %v3698_v45 = vpop.f32.mrf.mxu1  ;;  %v2397_v25 = vadd.f32 %v3528_v5, %v4870_v27  ;;  %v2400_v32 = vadd.f32 %v3531_v30, %v4873_v35  ;;  %v3595_v14 = vadd.f32 %v4941_v22, %v4937_v20  ;;  %v3589_v35 = vadd.f32 %v4924_v46, %v4922_v8 }
 0x191   :  { %3346 = vst [vmem:[%s5087_s5 + $0x10] sm:$0xff] %v3311_v24   ;;  %v3266_v1 = vpack.c.bf16 %v2616_v33, %v2615_v50  ;;  %v2614_v36 = vmax.f32 %v2554_v12, 0.0  ;;  %v3540_v48 = vadd.f32 %v4975_v49, %v4971_v47  ;;  %v3534_v8 = vadd.f32 %v4959_v38, %v4955_v34 }
 0x192   :  { %v2858_v40 = vpop.f32.mrf.mxu1  ;;  %v2494_v27 = vadd.f32 %v3592_v57, %v2397_v25  ;;  %v3604_v47 = vadd.f32 %v4967_v44, %v4963_v42  ;;  %v5099_v44 = vld [vmem:[#allocation7_spill] sm:$0xff] }
 0x193   :  { %3338 = vst [vmem:[%s5088_s4 + $0x8] sm:$0xff] %v3266_v1   ;;  %v3261_v4 = vpack.c.bf16 %v2614_v36, %v2613_v21  ;;  %v3662_v28 = vpop.f32.mrf.mxu0  ;;  %v2497_v21 = vadd.f32 %v3595_v14, %v2400_v32  ;;  %v2413_v49 = vadd.f32 %v3540_v48, %v4882_v62  ;;  %v5100_v62 = vld [vmem:[#allocation8_spill] sm:$0xff] }
 0x194   :  { %v3699_v3 = vpop.f32.mrf.mxu1  ;;  %v2575_v15 = vadd.f32 %v3662_v28, %v2478_v56  ;;  %v3543_v28 = vadd.f32 %v4980_v6, %v4977_v53  ;;  %v2405_v53 = vadd.f32 %v3534_v8, %v4876_v39  ;;  %v3598_v6 = vadd.f32 %v4951_v10, %v4947_v31  ;;  %v5101_v31 = vld [vmem:[#allocation5_spill] sm:$0xff]  ;;  %v5102_v10 = vld [vmem:[#allocation6_spill] sm:$0xff] }
 0x195   :  { %3262 = vst [vmem:[%s5088_s4] sm:$0xff] %v3261_v4   ;;  %v2566_v55 = vpop.f32.mrf.mxu0  ;;  %v3326_v0 = vpack.c.bf16 %v3699_v3, %v3698_v45  ;;  %v5097_v3 = vld [vmem:[#allocation4_spill] sm:$0xff]  ;;  %v2510_v39 = vadd.f32 %v3604_v47, %v2413_v49 }
 0x196   :  { %v2861_v52 = vpop.f32.mrf.mxu1  ;;  %v2567_v9 = vadd.f32 %v2566_v55, %v4907_v23  ;;  %v2619_v2 = vmax.f32 %v2575_v15, 0.0  ;;  %v3525_v23 = vadd.f32 %v4931_v16, %v4926_v13  ;;  %v2416_v15 = vadd.f32 %v3543_v28, %v5097_v3 }
 0x197   :  { %v3663_v37 = vpop.f32.mrf.mxu0  ;;  %3349 = vst [vmem:[%s5087_s5 + $0x28] sm:$0xff] %v3326_v0   ;;  %v3321_v59 = vpack.c.bf16 %v2861_v52, %v2858_v40  ;;  %v3607_v0 = vadd.f32 %v5100_v62, %v5099_v44  ;;  %v3601_v52 = vadd.f32 %v5102_v10, %v5101_v31 }
 0x198   :  { %v2578_v58 = vadd.f32 %v3663_v37, %v2481_v7  ;;  %v2617_v26 = vmax.f32 %v2567_v9, 0.0  ;;  %v3702_v29 = vpop.f32.mrf.mxu1  ;;  %v2392_v12 = vadd.f32 %v3525_v23, %v4867_v17  ;;  %v5098_v7 = vld [vmem:[#allocation3_spill] sm:$0xff]  ;;  %v2502_v9 = vadd.f32 %v3598_v6, %v2405_v53 }
 0x199   :  { %v2569_v61 = vpop.f32.mrf.mxu0  ;;  %3348 = vst [vmem:[%s5087_s5 + $0x20] sm:$0xff] %v3321_v59  }
 0x19a   :  { %v2620_v11 = vmax.f32 %v2578_v58, 0.0  ;;  %v2570_v24 = vadd.f32 %v2569_v61, %v4916_v63  ;;  %v2874_v13 = vpop.f32.mrf.mxu1  ;;  %v2489_v17 = vadd.f32 %v3589_v35, %v2392_v12  ;;  %v2513_v58 = vadd.f32 %v3607_v0, %v2416_v15 }
 0x19c   :  { %v3276_v50 = vpack.c.bf16 %v2620_v11, %v2619_v2  ;;  %v2618_v33 = vmax.f32 %v2570_v24, 0.0  ;;  %v3703_v18 = vpop.f32.mrf.mxu1 }
 0x19d   :  { %v3666_v60 = vpop.f32.mrf.mxu0  ;;  %v3336_v1 = vpack.c.bf16 %v3703_v18, %v3702_v29 }
 0x19e   :  { %3340 = vst [vmem:[%s5088_s4 + $0x18] sm:$0xff] %v3276_v50   ;;  %v3271_v63 = vpack.c.bf16 %v2618_v33, %v2617_v26  ;;  %v2591_v54 = vadd.f32 %v3666_v60, %v2494_v27  ;;  %v2877_v45 = vpop.f32.mrf.mxu1 }
 0x19f   :  { %v2582_v16 = vpop.f32.mrf.mxu0  ;;  %3351 = vst [vmem:[%s5087_s5 + $0x38] sm:$0xff] %v3336_v1   ;;  %v3331_v4 = vpack.c.bf16 %v2877_v45, %v2874_v13 }
 0x1a0   :  { %3339 = vst [vmem:[%s5088_s4 + $0x10] sm:$0xff] %v3271_v63   ;;  %v2583_v20 = vadd.f32 %v2582_v16, %v4935_v19  ;;  %v2623_v40 = vmax.f32 %v2591_v54, 0.0  ;;  %v3537_v19 = vadd.f32 %v4965_v43, %v4961_v41 }
 0x1a1   :  { %v3667_v36 = vpop.f32.mrf.mxu0  ;;  %3350 = vst [vmem:[%s5087_s5 + $0x30] sm:$0xff] %v3331_v4  }
 0x1a2   :  { %v2594_v22 = vadd.f32 %v3667_v36, %v2497_v21  ;;  %v2621_v34 = vmax.f32 %v2583_v20, 0.0  ;;  %v2408_v42 = vadd.f32 %v3537_v19, %v5098_v7 }
 0x1a3   :  { %v2585_v46 = vpop.f32.mrf.mxu0 }
 0x1a4   :  { %v2624_v51 = vmax.f32 %v2594_v22, 0.0  ;;  %v2586_v56 = vadd.f32 %v2585_v46, %v2489_v17  ;;  %v2505_v2 = vadd.f32 %v3601_v52, %v2408_v42 }
 0x1a6   :  { %v3286_v38 = vpack.c.bf16 %v2624_v51, %v2623_v40  ;;  %v2622_v55 = vmax.f32 %v2586_v56, 0.0 }
 0x1a8   :  { %3342 = vst [vmem:[%s5088_s4 + $0x28] sm:$0xff] %v3286_v38   ;;  %v3281_v41 = vpack.c.bf16 %v2622_v55, %v2621_v34  ;;  %v3670_v43 = vpop.f32.mrf.mxu0 }
 0x1a9   :  { %v2607_v5 = vadd.f32 %v3670_v43, %v2510_v39 }
 0x1aa   :  { %3341 = vst [vmem:[%s5088_s4 + $0x20] sm:$0xff] %v3281_v41   ;;  %v2598_v37 = vpop.f32.mrf.mxu0 }
 0x1ab   :  { %v2599_v61 = vadd.f32 %v2598_v37, %v2502_v9  ;;  %v2627_v24 = vmax.f32 %v2607_v5, 0.0 }
 0x1ac   :  { %v3671_v59 = vpop.f32.mrf.mxu0 }
 0x1ad   :  { %v2610_v30 = vadd.f32 %v3671_v59, %v2513_v58  ;;  %v2625_v25 = vmax.f32 %v2599_v61, 0.0 }
 0x1ae   :  { %v2601_v11 = vpop.f32.mrf.mxu0 }
 0x1af   :  { %v2628_v23 = vmax.f32 %v2610_v30, 0.0  ;;  %v2602_v57 = vadd.f32 %v2601_v11, %v2505_v2 }
 0x1b1   :  { %v3296_v26 = vpack.c.bf16 %v2628_v23, %v2627_v24  ;;  %v2626_v50 = vmax.f32 %v2602_v57, 0.0 }
 0x1b3   :  { %3344 = vst [vmem:[%s5088_s4 + $0x38] sm:$0xff] %v3296_v26   ;;  %v3291_v33 = vpack.c.bf16 %v2626_v50, %v2625_v25 }
 0x1b5   :  { %3343 = vst [vmem:[%s5088_s4 + $0x30] sm:$0xff] %v3291_v33  }

// kernel: wrn_basic_block.3
= control target key start
LH: loop header
LB: loop body
LE: loop exit
PB: predicated region body
PF: predicated region fallthrough
CT: control target
= control target key end

     0   :  { %vm51_vm0 = vsmask.f32 3328  ;;  %vm52_vm1 = vsmask.f32 7440  ;;  %vm214_vm2 = vcmask 1042432   ;;  %vm215_vm3 = vcmask 1046532   ;;  %s5393_s1 = inlined_call_operand.vmem [shape: bf16[1,1152,128], index: 1, kind: input, shape index: {}]   ;;  %s5394_s0 = inlined_call_operand.vmem [shape: bf16[1,20,10,128], index: 0, kind: input, shape index: {}]   ;;  %s5395_s2 = inlined_call_operand.vmem [shape: bf16[1,16,8,128], index: 2, kind: input, shape index: {}]   ;;  %s5396_s3 = inlined_call_operand.vmem [shape: f32[1,16,8,128], index: 3, kind: output, shape index: {}]  }
   0x1   :  { %v3785_v0 = vld [vmem:[%s5393_s1 + $0x78] sm:$0xff]   ;;  %v3789_v4 = vld [vmem:[%s5393_s1 + $0x70] sm:$0xff]   ;;  %v3793_v8 = vld [vmem:[%s5393_s1 + $0x68] sm:$0xff]  }
   0x2   :  { %v3786_v1 = vld [vmem:[%s5393_s1 + $0xf8] sm:$0xff]   ;;  %3465 = vmatprep.subr.bf16.mxu0 %v3785_v0  ;;  %v3790_v5 = vld [vmem:[%s5393_s1 + $0xf0] sm:$0xff]   ;;  %v3794_v9 = vld [vmem:[%s5393_s1 + $0xe8] sm:$0xff]  }
   0x3   :  { %v3787_v2 = vld [vmem:[%s5393_s1 + $0x38] sm:$0xff]   ;;  %3529 = vmatprep.subr.bf16.mxu1 %v3786_v1  ;;  %v3791_v6 = vld [vmem:[%s5393_s1 + $0x30] sm:$0xff]   ;;  %v3795_v10 = vld [vmem:[%s5393_s1 + $0x28] sm:$0xff]  }
   0x4   :  { %v3788_v3 = vld [vmem:[%s5393_s1 + $0xb8] sm:$0xff]   ;;  %3466 = vmatpush3.bf16.msra.mxu0 %v3787_v2  ;;  %v3792_v7 = vld [vmem:[%s5393_s1 + $0xb0] sm:$0xff]   ;;  %v3796_v11 = vld [vmem:[%s5393_s1 + $0xa8] sm:$0xff]  }
   0x5   :  { %3530 = vmatpush3.bf16.msra.mxu1 %v3788_v3  ;;  %3467 = vmatprep.subr.bf16.mxu0 %v3789_v4  ;;  %v3797_v12 = vld [vmem:[%s5393_s1 + $0x60] sm:$0xff]   ;;  %v3801_v16 = vld [vmem:[%s5393_s1 + $0x58] sm:$0xff]   ;;  %v3805_v20 = vld [vmem:[%s5393_s1 + $0x50] sm:$0xff]  }
   0x6   :  { %3531 = vmatprep.subr.bf16.mxu1 %v3790_v5  ;;  %v3798_v13 = vld [vmem:[%s5393_s1 + $0xe0] sm:$0xff]   ;;  %v3802_v17 = vld [vmem:[%s5393_s1 + $0xd8] sm:$0xff]   ;;  %v3806_v21 = vld [vmem:[%s5393_s1 + $0xd0] sm:$0xff]  }
   0x7   :  { %v3799_v14 = vld [vmem:[%s5393_s1 + $0x20] sm:$0xff]   ;;  %v3803_v18 = vld [vmem:[%s5393_s1 + $0x18] sm:$0xff]   ;;  %v3807_v22 = vld [vmem:[%s5393_s1 + $0x10] sm:$0xff]  }
   0x8   :  { %3468 = vmatpush3.bf16.msra.mxu0 %v3791_v6  ;;  %v3800_v15 = vld [vmem:[%s5393_s1 + $0xa0] sm:$0xff]   ;;  %v3804_v19 = vld [vmem:[%s5393_s1 + $0x98] sm:$0xff]   ;;  %v3808_v23 = vld [vmem:[%s5393_s1 + $0x90] sm:$0xff]  }
   0x9   :  { %3532 = vmatpush3.bf16.msra.mxu1 %v3792_v7  ;;  %3469 = vmatprep.subr.bf16.mxu0 %v3793_v8  ;;  %v3809_v24 = vld [vmem:[%s5393_s1 + $0x48] sm:$0xff]   ;;  %v3813_v28 = vld [vmem:[%s5393_s1 + $0x40] sm:$0xff]   ;;  %vm4095_vm4 = vmor %vm214_vm2, %vm215_vm3 }
   0xa   :  { %3533 = vmatprep.subr.bf16.mxu1 %v3794_v9  ;;  %v3810_v25 = vld [vmem:[%s5393_s1 + $0xc8] sm:$0xff]   ;;  %v3814_v29 = vld [vmem:[%s5393_s1 + $0xc0] sm:$0xff]   ;;  %vm4104_vm5 = vmor %vm51_vm0, %vm52_vm1 }
   0xb   :  { %v3811_v26 = vld [vmem:[%s5393_s1 + $0x8] sm:$0xff]   ;;  %v3815_v30 = vld [vmem:[%s5393_s1] sm:$0xff]   ;;  %v3043_v61 = vld [vmem:[%s5394_s0 + $0x10] sm:$0xf] }
   0xc   :  { %3470 = vmatpush3.bf16.msra.mxu0 %v3795_v10  ;;  %v3812_v27 = vld [vmem:[%s5393_s1 + $0x88] sm:$0xff]   ;;  %v3816_v31 = vld [vmem:[%s5393_s1 + $0x80] sm:$0xff]   ;;  %275 = vst [vmem:[#allocation2 + $0x30] sm:$0xf] %v3043_v61  ;;  %v3823_v1 = vld [vmem:[%s5393_s1 + $0x178] sm:$0xff]  }
   0xd   :  { %3534 = vmatpush3.bf16.msra.mxu1 %v3796_v11  ;;  %3471 = vmatprep.subr.bf16.mxu0 %v3797_v12  ;;  %v19_v32 = vld [vmem:[%s5394_s0] sm:$0xf]  ;;  %v20_v33 = vld [vmem:[%s5394_s0 + $0x8] sm:$0xf]  ;;  %v36_v35 = vld [vmem:[%s5394_s0 + $0x4] sm:$0x1] }
   0xe   :  { %3535 = vmatprep.subr.bf16.mxu1 %v3798_v13  ;;  %v35_v34 = vld [vmem:[%s5394_s0] sm:$0xf]  ;;  %27 = vst [vmem:[#allocation2] sm:$0xf] %v19_v32  ;;  %28 = vst [vmem:[#allocation2 + $0x24] sm:$0xf] %v20_v33 }
   0xf   :  { %v37_v36 = vld [vmem:[%s5394_s0 + $0x8] sm:$0xf]  ;;  %v38_v37 = vld [vmem:[%s5394_s0 + $0xc] sm:$0x1]  ;;  %v55_v38 = vshrl.u32 %v35_v34, 16  ;;  %v58_v39 = vshll.u32 %v35_v34, 16 }
  0x10   :  { %3472 = vmatpush3.bf16.msra.mxu0 %v3799_v14  ;;  %v64_v40 = vshll.u32 %v36_v35, 16  ;;  %v69_v41 = vshrl.u32 %v37_v36, 16  ;;  %v182_v42 = vld [vmem:[%s5394_s0] sm:$0xe]  ;;  %v72_v43 = vshll.u32 %v37_v36, 16  ;;  %v78_v44 = vshll.u32 %v38_v37, 16 }
  0x11   :  { %3536 = vmatpush3.bf16.msra.mxu1 %v3800_v15  ;;  %3473 = vmatprep.subr.bf16.mxu0 %v3801_v16  ;;  %v183_v45 = vld [vmem:[%s5394_s0 + $0x4] sm:$0x1]  ;;  %v184_v46 = vld [vmem:[%s5394_s0 + $0x8] sm:$0xe]  ;;  %v57_v47 = vrot.slane %v55_v38, 4  ;;  %v60_v48 = vrot.slane %v58_v39, 5 }
  0x12   :  { %3537 = vmatprep.subr.bf16.mxu1 %v3802_v17  ;;  %v71_v49 = vrot.slane %v69_v41, 4  ;;  %v185_v50 = vld [vmem:[%s5394_s0 + $0xc] sm:$0x1]  ;;  %v66_v52 = vrot.slane %v64_v40, 5  ;;  %v74_v53 = vrot.slane %v72_v43, 5  ;;  %v3034_v54 = vrot.slane %v182_v42, 9 }
  0x13   :  { %v219_v55 = vrot.slane %v183_v45, 5  ;;  %v3042_v56 = vld [vmem:[%s5394_s0 + $0x8] sm:$0xf]  ;;  %v61_v58 = vor.u32 %v60_v48, %v57_v47  ;;  %v3035_v59 = vrot.slane %v184_v46, 9  ;;  %v223_v60 = vrot.slane %v185_v50, 5  ;;  %v3824_v4 = vld [vmem:[%s5393_s1 + $0x1f8] sm:$0xff]  }
  0x14   :  { %3474 = vmatpush3.bf16.msra.mxu0 %v3803_v18  ;;  %274 = vst [vmem:[#allocation2 + $0xc] sm:$0xf] %v3042_v56  ;;  %v75_v62 = vor.u32 %v74_v53, %v71_v49  ;;  %v80_v63 = vrot.slane %v78_v44, 5  ;;  %v21_v7 = vld [vmem:[%s5394_s0 + $0x10] sm:$0xf]  ;;  %v3825_v34 = vld [vmem:[%s5393_s1 + $0x138] sm:$0xff]  }
  0x15   :  { %3538 = vmatpush3.bf16.msra.mxu1 %v3804_v19  ;;  %3475 = vmatprep.subr.bf16.mxu0 %v3805_v20  ;;  %v220_v0 = vsel %vm4095_vm4, %v3034_v54, %v219_v55  ;;  %v62_v2 = vrot.slane %v61_v58, 4  ;;  %v224_v3 = vsel %vm4095_vm4, %v3035_v59, %v223_v60  ;;  %v22_v9 = vld [vmem:[%s5394_s0 + $0x18] sm:$0xf]  ;;  %29 = vst [vmem:[#allocation2 + $0x48] sm:$0xf] %v21_v7  ;;  %v3832_v43 = vld [vmem:[%s5393_s1 + $0x170] sm:$0xff]  }
  0x16   :  { %3539 = vmatprep.subr.bf16.mxu1 %v3806_v21  ;;  %257 = vst [vmem:[#allocation2 + $0x8] sm:$0xf] %v220_v0  ;;  %v76_v5 = vrot.slane %v75_v62, 4  ;;  %258 = vst [vmem:[#allocation2 + $0x2c] sm:$0xf] %v224_v3  ;;  %v3833_v44 = vld [vmem:[%s5393_s1 + $0x1f0] sm:$0xff]  }
  0x17   :  { %v67_v6 = vsel %vm4104_vm5, %v62_v2, %v66_v52  ;;  %v39_v10 = vld [vmem:[%s5394_s0 + $0x10] sm:$0xf]  ;;  %v40_v11 = vld [vmem:[%s5394_s0 + $0x14] sm:$0x1]  ;;  %30 = vst [vmem:[#allocation2 + $0x6c] sm:$0xf] %v22_v9 }
  0x18   :  { %3476 = vmatpush3.bf16.msra.mxu0 %v3807_v22  ;;  %v81_v8 = vsel %vm4104_vm5, %v76_v5, %v80_v63  ;;  %174 = vst [vmem:[#allocation2 + $0x4] sm:$0xf] %v67_v6  ;;  %v41_v12 = vld [vmem:[%s5394_s0 + $0x18] sm:$0xf]  ;;  %v42_v13 = vld [vmem:[%s5394_s0 + $0x1c] sm:$0x1] }
  0x19   :  { %3540 = vmatpush3.bf16.msra.mxu1 %v3808_v23  ;;  %3477 = vmatprep.subr.bf16.mxu0 %v3809_v24  ;;  %175 = vst [vmem:[#allocation2 + $0x28] sm:$0xf] %v81_v8  ;;  %v83_v14 = vshrl.u32 %v39_v10, 16  ;;  %v86_v15 = vshll.u32 %v39_v10, 16  ;;  %v92_v16 = vshll.u32 %v40_v11, 16  ;;  %v97_v17 = vshrl.u32 %v41_v12, 16 }
  0x1a   :  { %3541 = vmatprep.subr.bf16.mxu1 %v3810_v25  ;;  %v100_v18 = vshll.u32 %v41_v12, 16  ;;  %v106_v19 = vshll.u32 %v42_v13, 16  ;;  %v186_v20 = vld [vmem:[%s5394_s0 + $0x10] sm:$0xe]  ;;  %v187_v23 = vld [vmem:[%s5394_s0 + $0x14] sm:$0x1] }
  0x1b   :  { %v85_v21 = vrot.slane %v83_v14, 4  ;;  %v88_v22 = vrot.slane %v86_v15, 5  ;;  %v188_v24 = vld [vmem:[%s5394_s0 + $0x18] sm:$0xe]  ;;  %v3036_v33 = vrot.slane %v186_v20, 9  ;;  %v227_v37 = vrot.slane %v187_v23, 5 }
  0x1c   :  { %3478 = vmatpush3.bf16.msra.mxu0 %v3811_v26  ;;  %v3826_v25 = vld [vmem:[%s5393_s1 + $0x1b8] sm:$0xff]   ;;  %v94_v26 = vrot.slane %v92_v16, 5  ;;  %v3037_v38 = vrot.slane %v188_v24, 9  ;;  %v3045_v42 = vld [vmem:[%s5394_s0 + $0x20] sm:$0xf]  ;;  %v3834_v53 = vld [vmem:[%s5393_s1 + $0x130] sm:$0xff]  }
  0x1d   :  { %3542 = vmatpush3.bf16.msra.mxu1 %v3812_v27  ;;  %3479 = vmatprep.subr.bf16.mxu0 %v3813_v28  ;;  %v99_v27 = vrot.slane %v97_v17, 4  ;;  %v102_v28 = vrot.slane %v100_v18, 5  ;;  %v89_v32 = vor.u32 %v88_v22, %v85_v21  ;;  %v189_v36 = vld [vmem:[%s5394_s0 + $0x1c] sm:$0x1]  ;;  %v3044_v39 = vld [vmem:[%s5394_s0 + $0x18] sm:$0xf]  ;;  %v228_v48 = vsel %vm4095_vm4, %v3036_v33, %v227_v37 }
  0x1e   :  { %3543 = vmatprep.subr.bf16.mxu1 %v3814_v29  ;;  %v108_v29 = vrot.slane %v106_v19, 5  ;;  %v231_v41 = vrot.slane %v189_v36, 5  ;;  %276 = vst [vmem:[#allocation2 + $0x54] sm:$0xf] %v3044_v39  ;;  %v3817_v45 = vld [vmem:[#allocation2] ss:$36 sps:$4 sm:$0xff]  }
  0x1f   :  { %v103_v35 = vor.u32 %v102_v28, %v99_v27  ;;  %v90_v40 = vrot.slane %v89_v32, 4  ;;  %277 = vst [vmem:[#allocation2 + $0x78] sm:$0xf] %v3045_v42  ;;  %259 = vst [vmem:[#allocation2 + $0x50] sm:$0xf] %v228_v48  ;;  %v3835_v54 = vld [vmem:[%s5393_s1 + $0x1b0] sm:$0xff]  }
  0x20   :  { %3480 = vmatpush3.bf16.msra.mxu0 %v3815_v30  ;;  %v3820_v30 = vld [vmem:[#allocation2 + $0x8] ss:$36 sps:$4 sm:$0xff]   ;;  %v232_v50 = vsel %vm4095_vm4, %v3037_v38, %v231_v41  ;;  %v23_v55 = vld [vmem:[%s5394_s0 + $0x20] sm:$0xf]  ;;  %v44_v59 = vld [vmem:[%s5394_s0 + $0x24] sm:$0x1] }
  0x21   :  { %3544 = vmatpush3.bf16.msra.mxu1 %v3816_v31  ;;  %3593 = vmatprep.subr.bf16.mxu0 %v3823_v1  ;;  %v3822_v31 = vld [vmem:[#allocation2 + $0xc] ss:$36 sps:$4 sm:$0xff]   ;;  %v3819_v46 = vld [vmem:[#allocation2 + $0x4] ss:$36 sps:$4 sm:$0xff]   ;;  %v104_v47 = vrot.slane %v103_v35, 4  ;;  %v95_v49 = vsel %vm4104_vm5, %v90_v40, %v94_v26  ;;  %v120_v0 = vshll.u32 %v44_v59, 16 }
  0x22   :  { %3657 = vmatprep.subr.bf16.mxu1 %v3824_v4  ;;  %2658 = vmatprep.mubr.bf16.mxu1 %v3822_v31  ;;  %176 = vst [vmem:[#allocation2 + $0x4c] sm:$0xf] %v95_v49  ;;  %260 = vst [vmem:[#allocation2 + $0x74] sm:$0xf] %v232_v50  ;;  %v24_v56 = vld [vmem:[%s5394_s0 + $0x28] sm:$0xf] }
  0x23   :  { %2561 = vmatprep.mubr.bf16.mxu0 %v3819_v46  ;;  %v109_v52 = vsel %vm4104_vm5, %v104_v47, %v108_v29  ;;  %31 = vst [vmem:[#allocation2 + $0x90] sm:$0xf] %v23_v55  ;;  %32 = vst [vmem:[#allocation2 + $0xb4] sm:$0xf] %v24_v56  ;;  %v43_v58 = vld [vmem:[%s5394_s0 + $0x20] sm:$0xf] }
  0x24   :  { %2659 = vmatmul.mubr.bf16.vlgmr.msra.gmra.mxu1 %v3820_v30  ;;  %2562 = vmatmul.mubr.bf16.vlgmr.msra.gmra.mxu0 %v3817_v45  ;;  %177 = vst [vmem:[#allocation2 + $0x70] sm:$0xf] %v109_v52  ;;  %v45_v60 = vld [vmem:[%s5394_s0 + $0x28] sm:$0xf]  ;;  %v46_v61 = vld [vmem:[%s5394_s0 + $0x2c] sm:$0x1] }
  0x25   :  { %3658 = vmatpush3.bf16.msra.mxu1 %v3826_v25  ;;  %3594 = vmatpush3.bf16.msra.mxu0 %v3825_v34  ;;  %v111_v62 = vshrl.u32 %v43_v58, 16  ;;  %v114_v63 = vshll.u32 %v43_v58, 16  ;;  %v125_v1 = vshrl.u32 %v45_v60, 16  ;;  %v128_v2 = vshll.u32 %v45_v60, 16  ;;  %v190_v4 = vld [vmem:[%s5394_s0 + $0x20] sm:$0xe] }
  0x26   :  { %3659 = vmatprep.subr.bf16.mxu1 %v3833_v44  ;;  %3595 = vmatprep.subr.bf16.mxu0 %v3832_v43  ;;  %v134_v3 = vshll.u32 %v46_v61, 16  ;;  %v191_v5 = vld [vmem:[%s5394_s0 + $0x24] sm:$0x1]  ;;  %v122_v8 = vrot.slane %v120_v0, 5  ;;  %v3841_v10 = vld [vmem:[%s5393_s1 + $0x168] sm:$0xff]   ;;  %v3038_v19 = vrot.slane %v190_v4, 9 }
  0x27   :  { %v113_v6 = vrot.slane %v111_v62, 4  ;;  %v116_v7 = vrot.slane %v114_v63, 5  ;;  %v127_v9 = vrot.slane %v125_v1, 4  ;;  %v3829_v12 = vld [vmem:[#allocation2 + $0x54] ss:$36 sps:$4 sm:$0xff]   ;;  %v130_v13 = vrot.slane %v128_v2, 5 }
  0x28   :  { %v136_v14 = vrot.slane %v134_v3, 5  ;;  %2666 = vmatprep.mubr.bf16.mxu1 %v3829_v12  ;;  %v192_v22 = vld [vmem:[%s5394_s0 + $0x28] sm:$0xe]  ;;  %v193_v23 = vld [vmem:[%s5394_s0 + $0x2c] sm:$0x1]  ;;  %v235_v24 = vrot.slane %v191_v5, 5 }
  0x29   :  { %3660 = vmatpush3.bf16.msra.mxu1 %v3835_v54  ;;  %3596 = vmatpush3.bf16.msra.mxu0 %v3834_v53  ;;  %v1480_v11 = vld [vmem:[#allocation2 + $0x48] sm:$0xff]  ;;  %v3831_v17 = vld [vmem:[#allocation2 + $0x50] ss:$36 sps:$4 sm:$0xff]   ;;  %v117_v18 = vor.u32 %v116_v7, %v113_v6  ;;  %v131_v21 = vor.u32 %v130_v13, %v127_v9  ;;  %v3039_v27 = vrot.slane %v192_v22, 9  ;;  %v239_v28 = vrot.slane %v193_v23, 5 }
  0x2a   :  { %3597 = vmatprep.subr.bf16.mxu0 %v3841_v10  ;;  %v3842_v25 = vld [vmem:[%s5393_s1 + $0x1e8] sm:$0xff]   ;;  %v236_v32 = vsel %vm4095_vm4, %v3038_v19, %v235_v24  ;;  %v3047_v33 = vld [vmem:[%s5394_s0 + $0x30] sm:$0xf]  ;;  %v26_v39 = vld [vmem:[%s5394_s0 + $0x38] sm:$0xf] }
  0x2b   :  { %v1485_v15 = vld [vmem:[#allocation2 + $0x6c] sm:$0xff]  ;;  %v118_v26 = vrot.slane %v117_v18, 4  ;;  %v3046_v29 = vld [vmem:[%s5394_s0 + $0x28] sm:$0xf]  ;;  %v132_v31 = vrot.slane %v131_v21, 4  ;;  %3661 = vmatprep.subr.bf16.mxu1 %v3842_v25  ;;  %v240_v36 = vsel %vm4095_vm4, %v3039_v27, %v239_v28  ;;  %v3853_v21 = vld [vmem:[%s5393_s1 + $0x1a0] sm:$0xff]  }
  0x2c   :  { %v3827_v16 = vld [vmem:[#allocation2 + $0x4c] ss:$36 sps:$4 sm:$0xff]   ;;  %v3291_v20 = vcombine.low %v1480_v11, %v1485_v15  ;;  %2667 = vmatmul.mubr.bf16.gmra.mxu1 %v3831_v17  ;;  %278 = vst [vmem:[#allocation2 + $0x9c] sm:$0xf] %v3046_v29  ;;  %261 = vst [vmem:[#allocation2 + $0x98] sm:$0xf] %v236_v32 }
  0x2d   :  { %2569 = vmatprep.mubr.bf16.mxu0 %v3827_v16  ;;  %v3843_v30 = vld [vmem:[%s5393_s1 + $0x128] sm:$0xff]   ;;  %v123_v35 = vsel %vm4104_vm5, %v118_v26, %v122_v8  ;;  %279 = vst [vmem:[#allocation2 + $0xc0] sm:$0xf] %v3047_v33  ;;  %v137_v37 = vsel %vm4104_vm5, %v132_v31, %v136_v14  ;;  %262 = vst [vmem:[#allocation2 + $0xbc] sm:$0xf] %v240_v36  ;;  %v3850_v14 = vld [vmem:[%s5393_s1 + $0x160] sm:$0xff]  }
  0x2e   :  { %2570 = vmatmul.mubr.bf16.gmra.mxu0 %v3291_v20  ;;  %v3844_v34 = vld [vmem:[%s5393_s1 + $0x1a8] sm:$0xff]   ;;  %178 = vst [vmem:[#allocation2 + $0x94] sm:$0xf] %v123_v35  ;;  %179 = vst [vmem:[#allocation2 + $0xb8] sm:$0xf] %v137_v37  ;;  %v3851_v17 = vld [vmem:[%s5393_s1 + $0x1e0] sm:$0xff]  }
  0x2f   :  { %3598 = vmatpush3.bf16.msra.mxu0 %v3843_v30  ;;  %3662 = vmatpush3.bf16.msra.mxu1 %v3844_v34  ;;  %v25_v38 = vld [vmem:[%s5394_s0 + $0x30] sm:$0xf]  ;;  %34 = vst [vmem:[#allocation2 + $0xfc] sm:$0xf] %v26_v39  ;;  %v48_v41 = vld [vmem:[%s5394_s0 + $0x34] sm:$0x1] }
  0x30   :  { %33 = vst [vmem:[#allocation2 + $0xd8] sm:$0xf] %v25_v38  ;;  %v47_v40 = vld [vmem:[%s5394_s0 + $0x30] sm:$0xf]  ;;  %v49_v42 = vld [vmem:[%s5394_s0 + $0x38] sm:$0xf]  ;;  %3599 = vmatprep.subr.bf16.mxu0 %v3850_v14  ;;  %3663 = vmatprep.subr.bf16.mxu1 %v3851_v17 }
  0x31   :  { %v50_v43 = vld [vmem:[%s5394_s0 + $0x3c] sm:$0x1]  ;;  %v139_v44 = vshrl.u32 %v47_v40, 16  ;;  %v142_v45 = vshll.u32 %v47_v40, 16  ;;  %v148_v46 = vshll.u32 %v48_v41, 16  ;;  %v153_v47 = vshrl.u32 %v49_v42, 16 }
  0x32   :  { %v156_v48 = vshll.u32 %v49_v42, 16  ;;  %v162_v49 = vshll.u32 %v50_v43, 16  ;;  %v194_v50 = vld [vmem:[%s5394_s0 + $0x30] sm:$0xe]  ;;  %v195_v52 = vld [vmem:[%s5394_s0 + $0x34] sm:$0x1] }
  0x33   :  { %v141_v53 = vrot.slane %v139_v44, 4  ;;  %v144_v54 = vrot.slane %v142_v45, 5  ;;  %v150_v55 = vrot.slane %v148_v46, 5  ;;  %v155_v56 = vrot.slane %v153_v47, 4  ;;  %v196_v58 = vld [vmem:[%s5394_s0 + $0x38] sm:$0xe]  ;;  %3664 = vmatpush3.bf16.msra.mxu1 %v3853_v21 }
  0x34   :  { %v158_v59 = vrot.slane %v156_v48, 5  ;;  %v164_v60 = vrot.slane %v162_v49, 5  ;;  %v197_v61 = vld [vmem:[%s5394_s0 + $0x3c] sm:$0x1]  ;;  %v3040_v62 = vrot.slane %v194_v50, 9  ;;  %v243_v2 = vrot.slane %v195_v52, 5 }
  0x35   :  { %v1490_v63 = vld [vmem:[#allocation2 + $0x90] sm:$0xff]  ;;  %v3838_v0 = vld [vmem:[#allocation2 + $0x9c] ss:$36 sps:$4 sm:$0xff]   ;;  %v145_v1 = vor.u32 %v144_v54, %v141_v53  ;;  %v3041_v3 = vrot.slane %v196_v58, 9  ;;  %v247_v8 = vrot.slane %v197_v61, 5 }
  0x36   :  { %v1495_v4 = vld [vmem:[#allocation2 + $0xb4] sm:$0xff]  ;;  %v159_v7 = vor.u32 %v158_v59, %v155_v56  ;;  %2674 = vmatprep.mubr.bf16.mxu1 %v3838_v0  ;;  %v244_v11 = vsel %vm4095_vm4, %v3040_v62, %v243_v2  ;;  %v3049_v13 = vld [vmem:[%s5394_s0 + $0x40] sm:$0xf]  ;;  %v3138_v22 = vld [vmem:[%s5394_s0 + $0x50] sm:$0xf] }
  0x37   :  { %v3836_v5 = vld [vmem:[#allocation2 + $0x94] ss:$36 sps:$4 sm:$0xff]   ;;  %v3300_v9 = vcombine.low %v1490_v63, %v1495_v4  ;;  %v146_v10 = vrot.slane %v145_v1, 4  ;;  %v248_v16 = vsel %vm4095_vm4, %v3041_v3, %v247_v8  ;;  %263 = vst [vmem:[#allocation2 + $0xe0] sm:$0xf] %v244_v11  ;;  %v3852_v20 = vld [vmem:[%s5393_s1 + $0x120] sm:$0xff]  }
  0x38   :  { %v3840_v6 = vld [vmem:[#allocation2 + $0x98] ss:$36 sps:$4 sm:$0xff]   ;;  %2577 = vmatprep.mubr.bf16.mxu0 %v3836_v5  ;;  %v160_v15 = vrot.slane %v159_v7, 4  ;;  %281 = vst [vmem:[#allocation2 + $0x108] sm:$0xf] %v3049_v13  ;;  %3600 = vmatpush3.bf16.msra.mxu0 %v3852_v20 }
  0x39   :  { %v3048_v12 = vld [vmem:[%s5394_s0 + $0x38] sm:$0xf]  ;;  %2675 = vmatmul.mubr.bf16.gmra.mxu1 %v3840_v6  ;;  %2578 = vmatmul.mubr.bf16.gmra.mxu0 %v3300_v9  ;;  %v151_v18 = vsel %vm4104_vm5, %v146_v10, %v150_v55  ;;  %264 = vst [vmem:[#allocation2 + $0x104] sm:$0xf] %v248_v16  ;;  %756 = vst [vmem:[#allocation2 + $0x120] sm:$0xf] %v3138_v22 }
  0x3a   :  { %280 = vst [vmem:[#allocation2 + $0xe4] sm:$0xf] %v3048_v12  ;;  %v165_v19 = vsel %vm4104_vm5, %v160_v15, %v164_v60  ;;  %180 = vst [vmem:[#allocation2 + $0xdc] sm:$0xf] %v151_v18  ;;  %v3139_v23 = vld [vmem:[%s5394_s0 + $0x58] sm:$0xf] }
  0x3b   :  { %181 = vst [vmem:[#allocation2 + $0x100] sm:$0xf] %v165_v19  ;;  %v3146_v24 = vld [vmem:[%s5394_s0 + $0x50] sm:$0xf]  ;;  %v3147_v25 = vld [vmem:[%s5394_s0 + $0x54] sm:$0x1] }
  0x3c   :  { %757 = vst [vmem:[#allocation2 + $0x144] sm:$0xf] %v3139_v23  ;;  %v3148_v26 = vld [vmem:[%s5394_s0 + $0x58] sm:$0xf]  ;;  %v3149_v27 = vld [vmem:[%s5394_s0 + $0x5c] sm:$0x1] }
  0x3d   :  { %v781_v28 = vshrl.u32 %v3146_v24, 16  ;;  %v784_v29 = vshll.u32 %v3146_v24, 16  ;;  %v790_v30 = vshll.u32 %v3147_v25, 16  ;;  %v795_v31 = vshrl.u32 %v3148_v26, 16  ;;  %v3162_v34 = vld [vmem:[%s5394_s0 + $0x50] sm:$0xe] }
  0x3e   :  { %v798_v32 = vshll.u32 %v3148_v26, 16  ;;  %v804_v33 = vshll.u32 %v3149_v27, 16  ;;  %v3163_v37 = vld [vmem:[%s5394_s0 + $0x54] sm:$0x1]  ;;  %v3178_v38 = vrot.slane %v3162_v34, 9  ;;  %v3859_v62 = vld [vmem:[%s5393_s1 + $0x158] sm:$0xff]  }
  0x3f   :  { %v783_v35 = vrot.slane %v781_v28, 4  ;;  %v786_v36 = vrot.slane %v784_v29, 5  ;;  %v792_v41 = vrot.slane %v790_v30, 5  ;;  %v797_v44 = vrot.slane %v795_v31, 4  ;;  %v3164_v47 = vld [vmem:[%s5394_s0 + $0x58] sm:$0xe]  ;;  %3601 = vmatprep.subr.bf16.mxu0 %v3859_v62 }
  0x40   :  { %v3849_v40 = vld [vmem:[#allocation2 + $0xe0] ss:$36 sps:$4 sm:$0xff]   ;;  %v800_v45 = vrot.slane %v798_v32, 5  ;;  %v806_v46 = vrot.slane %v804_v33, 5  ;;  %v3165_v50 = vld [vmem:[%s5394_s0 + $0x5c] sm:$0x1] }
  0x41   :  { %v3847_v39 = vld [vmem:[#allocation2 + $0xe4] ss:$36 sps:$4 sm:$0xff]   ;;  %v1500_v42 = vld [vmem:[#allocation2 + $0xd8] sm:$0xff]  ;;  %v787_v43 = vor.u32 %v786_v36, %v783_v35  ;;  %v942_v52 = vrot.slane %v3163_v37, 5  ;;  %v3179_v56 = vrot.slane %v3164_v47, 9  ;;  %v946_v61 = vrot.slane %v3165_v50, 5 }
  0x42   :  { %v1505_v48 = vld [vmem:[#allocation2 + $0xfc] sm:$0xff]  ;;  %2682 = vmatprep.mubr.bf16.mxu1 %v3847_v39  ;;  %v801_v55 = vor.u32 %v800_v45, %v797_v44  ;;  %v3186_v58 = vld [vmem:[%s5394_s0 + $0x58] sm:$0xf]  ;;  %v3141_v7 = vld [vmem:[%s5394_s0 + $0x68] sm:$0xf] }
  0x43   :  { %v3845_v49 = vld [vmem:[#allocation2 + $0xdc] ss:$36 sps:$4 sm:$0xff]   ;;  %v3309_v53 = vcombine.low %v1500_v42, %v1505_v48  ;;  %2683 = vmatmul.mubr.bf16.gmra.mxu1 %v3849_v40  ;;  %v788_v54 = vrot.slane %v787_v43, 4  ;;  %v943_v60 = vsel %vm4095_vm4, %v3178_v38, %v942_v52  ;;  %997 = vst [vmem:[#allocation2 + $0x12c] sm:$0xf] %v3186_v58  ;;  %v947_v2 = vsel %vm4095_vm4, %v3179_v56, %v946_v61  ;;  %v3868_v25 = vld [vmem:[%s5393_s1 + $0x150] sm:$0xff]  }
  0x44   :  { %v3187_v59 = vld [vmem:[%s5394_s0 + $0x60] sm:$0xf]  ;;  %2585 = vmatprep.mubr.bf16.mxu0 %v3845_v49  ;;  %v802_v0 = vrot.slane %v801_v55, 4  ;;  %980 = vst [vmem:[#allocation2 + $0x128] sm:$0xf] %v943_v60  ;;  %v3860_v1 = vld [vmem:[%s5393_s1 + $0x1d8] sm:$0xff]  }
  0x45   :  { %998 = vst [vmem:[#allocation2 + $0x150] sm:$0xf] %v3187_v59  ;;  %2586 = vmatmul.mubr.bf16.gmra.mxu0 %v3309_v53  ;;  %v793_v63 = vsel %vm4104_vm5, %v788_v54, %v792_v41  ;;  %v3861_v3 = vld [vmem:[%s5393_s1 + $0x118] sm:$0xff]   ;;  %981 = vst [vmem:[#allocation2 + $0x14c] sm:$0xf] %v947_v2  ;;  %3665 = vmatprep.subr.bf16.mxu1 %v3860_v1  ;;  %v3869_v40 = vld [vmem:[%s5393_s1 + $0x1d0] sm:$0xff]  }
  0x46   :  { %900 = vst [vmem:[#allocation2 + $0x124] sm:$0xf] %v793_v63  ;;  %v807_v4 = vsel %vm4104_vm5, %v802_v0, %v806_v46  ;;  %v3862_v5 = vld [vmem:[%s5393_s1 + $0x198] sm:$0xff]   ;;  %3602 = vmatpush3.bf16.msra.mxu0 %v3861_v3  ;;  %v3140_v6 = vld [vmem:[%s5394_s0 + $0x60] sm:$0xf]  ;;  %v3870_v46 = vld [vmem:[%s5393_s1 + $0x110] sm:$0xff]  }
  0x47   :  { %901 = vst [vmem:[#allocation2 + $0x148] sm:$0xf] %v807_v4  ;;  %v3150_v8 = vld [vmem:[%s5394_s0 + $0x60] sm:$0xf]  ;;  %3666 = vmatpush3.bf16.msra.mxu1 %v3862_v5  ;;  %758 = vst [vmem:[#allocation2 + $0x168] sm:$0xf] %v3140_v6  ;;  %3603 = vmatprep.subr.bf16.mxu0 %v3868_v25 }
  0x48   :  { %759 = vst [vmem:[#allocation2 + $0x18c] sm:$0xf] %v3141_v7  ;;  %v3151_v9 = vld [vmem:[%s5394_s0 + $0x64] sm:$0x1]  ;;  %v3152_v10 = vld [vmem:[%s5394_s0 + $0x68] sm:$0xf]  ;;  %3667 = vmatprep.subr.bf16.mxu1 %v3869_v40 }
  0x49   :  { %v3153_v11 = vld [vmem:[%s5394_s0 + $0x6c] sm:$0x1]  ;;  %v809_v12 = vshrl.u32 %v3150_v8, 16  ;;  %v812_v13 = vshll.u32 %v3150_v8, 16  ;;  %v818_v14 = vshll.u32 %v3151_v9, 16  ;;  %v823_v15 = vshrl.u32 %v3152_v10, 16 }
  0x4a   :  { %v3166_v16 = vld [vmem:[%s5394_s0 + $0x60] sm:$0xe]  ;;  %v826_v17 = vshll.u32 %v3152_v10, 16  ;;  %v832_v18 = vshll.u32 %v3153_v11, 16  ;;  %v3167_v19 = vld [vmem:[%s5394_s0 + $0x64] sm:$0x1]  ;;  %3604 = vmatpush3.bf16.msra.mxu0 %v3870_v46 }
  0x4b   :  { %v3168_v20 = vld [vmem:[%s5394_s0 + $0x68] sm:$0xe]  ;;  %v811_v21 = vrot.slane %v809_v12, 4  ;;  %v814_v22 = vrot.slane %v812_v13, 5  ;;  %v820_v23 = vrot.slane %v818_v14, 5  ;;  %v825_v24 = vrot.slane %v823_v15, 4 }
  0x4c   :  { %v828_v27 = vrot.slane %v826_v17, 5  ;;  %v834_v28 = vrot.slane %v832_v18, 5  ;;  %v3169_v29 = vld [vmem:[%s5394_s0 + $0x6c] sm:$0x1]  ;;  %v3180_v30 = vrot.slane %v3166_v16, 9  ;;  %v950_v34 = vrot.slane %v3167_v19, 5 }
  0x4d   :  { %v1510_v26 = vld [vmem:[#allocation2 + $0x120] sm:$0xff]  ;;  %v3856_v31 = vld [vmem:[#allocation2 + $0x12c] ss:$36 sps:$4 sm:$0xff]   ;;  %v815_v33 = vor.u32 %v814_v22, %v811_v21  ;;  %v3181_v38 = vrot.slane %v3168_v20, 9  ;;  %v954_v39 = vrot.slane %v3169_v29, 5 }
  0x4e   :  { %v3858_v32 = vld [vmem:[#allocation2 + $0x128] ss:$36 sps:$4 sm:$0xff]   ;;  %v829_v37 = vor.u32 %v828_v27, %v825_v24  ;;  %2690 = vmatprep.mubr.bf16.mxu1 %v3856_v31  ;;  %v951_v43 = vsel %vm4095_vm4, %v3180_v30, %v950_v34  ;;  %v3189_v45 = vld [vmem:[%s5394_s0 + $0x70] sm:$0xf]  ;;  %v3143_v54 = vld [vmem:[%s5394_s0 + $0x78] sm:$0xf] }
  0x4f   :  { %v1515_v35 = vld [vmem:[#allocation2 + $0x144] sm:$0xff]  ;;  %v816_v42 = vrot.slane %v815_v33, 4  ;;  %2691 = vmatmul.mubr.bf16.gmra.mxu1 %v3858_v32  ;;  %v955_v48 = vsel %vm4095_vm4, %v3181_v38, %v954_v39  ;;  %982 = vst [vmem:[#allocation2 + $0x170] sm:$0xf] %v951_v43  ;;  %1000 = vst [vmem:[#allocation2 + $0x198] sm:$0xf] %v3189_v45 }
  0x50   :  { %v3854_v36 = vld [vmem:[#allocation2 + $0x124] ss:$36 sps:$4 sm:$0xff]   ;;  %v3318_v41 = vcombine.low %v1510_v26, %v1515_v35  ;;  %v830_v47 = vrot.slane %v829_v37, 4  ;;  %v3871_v49 = vld [vmem:[%s5393_s1 + $0x190] sm:$0xff]   ;;  %983 = vst [vmem:[#allocation2 + $0x194] sm:$0xf] %v955_v48 }
  0x51   :  { %v3188_v44 = vld [vmem:[%s5394_s0 + $0x68] sm:$0xf]  ;;  %2593 = vmatprep.mubr.bf16.mxu0 %v3854_v36  ;;  %v821_v50 = vsel %vm4104_vm5, %v816_v42, %v820_v23  ;;  %3668 = vmatpush3.bf16.msra.mxu1 %v3871_v49  ;;  %v3142_v53 = vld [vmem:[%s5394_s0 + $0x70] sm:$0xf]  ;;  %761 = vst [vmem:[#allocation2 + $0x1d4] sm:$0xf] %v3143_v54 }
  0x52   :  { %999 = vst [vmem:[#allocation2 + $0x174] sm:$0xf] %v3188_v44  ;;  %2594 = vmatmul.mubr.bf16.gmra.mxu0 %v3318_v41  ;;  %v835_v52 = vsel %vm4104_vm5, %v830_v47, %v834_v28  ;;  %902 = vst [vmem:[#allocation2 + $0x16c] sm:$0xf] %v821_v50  ;;  %v3154_v55 = vld [vmem:[%s5394_s0 + $0x70] sm:$0xf] }
  0x53   :  { %903 = vst [vmem:[#allocation2 + $0x190] sm:$0xf] %v835_v52  ;;  %760 = vst [vmem:[#allocation2 + $0x1b0] sm:$0xf] %v3142_v53  ;;  %v3155_v56 = vld [vmem:[%s5394_s0 + $0x74] sm:$0x1] }
  0x54   :  { %v3156_v58 = vld [vmem:[%s5394_s0 + $0x78] sm:$0xf]  ;;  %v3157_v59 = vld [vmem:[%s5394_s0 + $0x7c] sm:$0x1]  ;;  %v837_v60 = vshrl.u32 %v3154_v55, 16  ;;  %v840_v61 = vshll.u32 %v3154_v55, 16 }
  0x55   :  { %v846_v62 = vshll.u32 %v3155_v56, 16  ;;  %v851_v63 = vshrl.u32 %v3156_v58, 16  ;;  %v3170_v0 = vld [vmem:[%s5394_s0 + $0x70] sm:$0xe]  ;;  %v854_v1 = vshll.u32 %v3156_v58, 16  ;;  %v860_v2 = vshll.u32 %v3157_v59, 16 }
  0x56   :  { %v3171_v3 = vld [vmem:[%s5394_s0 + $0x74] sm:$0x1]  ;;  %v3172_v4 = vld [vmem:[%s5394_s0 + $0x78] sm:$0xe]  ;;  %v839_v5 = vrot.slane %v837_v60, 4  ;;  %v842_v6 = vrot.slane %v840_v61, 5 }
  0x57   :  { %v848_v7 = vrot.slane %v846_v62, 5  ;;  %v853_v8 = vrot.slane %v851_v63, 4  ;;  %v3877_v9 = vld [vmem:[%s5393_s1 + $0x148] sm:$0xff]   ;;  %v3867_v11 = vld [vmem:[#allocation2 + $0x170] ss:$36 sps:$4 sm:$0xff]   ;;  %v856_v12 = vrot.slane %v854_v1, 5 }
  0x58   :  { %v843_v14 = vor.u32 %v842_v6, %v839_v5  ;;  %v862_v15 = vrot.slane %v860_v2, 5  ;;  %v3173_v16 = vld [vmem:[%s5394_s0 + $0x7c] sm:$0x1]  ;;  %v3182_v17 = vrot.slane %v3170_v0, 9  ;;  %v958_v18 = vrot.slane %v3171_v3, 5  ;;  %3605 = vmatprep.subr.bf16.mxu0 %v3877_v9  ;;  %v3878_v24 = vld [vmem:[%s5393_s1 + $0x1c8] sm:$0xff]  }
  0x59   :  { %v3865_v10 = vld [vmem:[#allocation2 + $0x174] ss:$36 sps:$4 sm:$0xff]   ;;  %v1520_v13 = vld [vmem:[#allocation2 + $0x168] sm:$0xff]  ;;  %v857_v21 = vor.u32 %v856_v12, %v853_v8  ;;  %v3183_v22 = vrot.slane %v3172_v4, 9  ;;  %v962_v23 = vrot.slane %v3173_v16, 5  ;;  %3669 = vmatprep.subr.bf16.mxu1 %v3878_v24  ;;  %v3886_v56 = vld [vmem:[%s5393_s1 + $0x140] sm:$0xff]  }
  0x5a   :  { %v1525_v19 = vld [vmem:[#allocation2 + $0x18c] sm:$0xff]  ;;  %2698 = vmatprep.mubr.bf16.mxu1 %v3865_v10  ;;  %v844_v26 = vrot.slane %v843_v14, 4  ;;  %v959_v27 = vsel %vm4095_vm4, %v3182_v17, %v958_v18  ;;  %v3190_v28 = vld [vmem:[%s5394_s0 + $0x78] sm:$0xf]  ;;  %v3191_v29 = vld [vmem:[%s5394_s0 + $0x80] sm:$0xf] }
  0x5b   :  { %v3863_v20 = vld [vmem:[#allocation2 + $0x16c] ss:$36 sps:$4 sm:$0xff]   ;;  %v3327_v25 = vcombine.low %v1520_v13, %v1525_v19  ;;  %2699 = vmatmul.mubr.bf16.gmra.mxu1 %v3867_v11  ;;  %v858_v31 = vrot.slane %v857_v21, 4  ;;  %v963_v32 = vsel %vm4095_vm4, %v3183_v22, %v962_v23  ;;  %984 = vst [vmem:[#allocation2 + $0x1b8] sm:$0xf] %v959_v27  ;;  %v3887_v8 = vld [vmem:[%s5393_s1 + $0x1c0] sm:$0xff]  }
  0x5c   :  { %v3879_v30 = vld [vmem:[%s5393_s1 + $0x108] sm:$0xff]   ;;  %2601 = vmatprep.mubr.bf16.mxu0 %v3863_v20  ;;  %1001 = vst [vmem:[#allocation2 + $0x1bc] sm:$0xf] %v3190_v28  ;;  %1002 = vst [vmem:[#allocation2 + $0x1e0] sm:$0xf] %v3191_v29  ;;  %v849_v34 = vsel %vm4104_vm5, %v844_v26, %v848_v7  ;;  %v3888_v14 = vld [vmem:[%s5393_s1 + $0x100] sm:$0xff]  }
  0x5d   :  { %v3880_v33 = vld [vmem:[%s5393_s1 + $0x188] sm:$0xff]   ;;  %2602 = vmatmul.mubr.bf16.gmra.mxu0 %v3327_v25  ;;  %985 = vst [vmem:[#allocation2 + $0x1dc] sm:$0xf] %v963_v32  ;;  %v863_v35 = vsel %vm4104_vm5, %v858_v31, %v862_v15  ;;  %904 = vst [vmem:[#allocation2 + $0x1b4] sm:$0xf] %v849_v34  ;;  %v3889_v17 = vld [vmem:[%s5393_s1 + $0x180] sm:$0xff]  }
  0x5e   :  { %3606 = vmatpush3.bf16.msra.mxu0 %v3879_v30  ;;  %3670 = vmatpush3.bf16.msra.mxu1 %v3880_v33  ;;  %905 = vst [vmem:[#allocation2 + $0x1d8] sm:$0xf] %v863_v35  ;;  %v3144_v36 = vld [vmem:[%s5394_s0 + $0x80] sm:$0xf]  ;;  %v3145_v37 = vld [vmem:[%s5394_s0 + $0x88] sm:$0xf] }
  0x5f   :  { %v3158_v38 = vld [vmem:[%s5394_s0 + $0x80] sm:$0xf]  ;;  %762 = vst [vmem:[#allocation2 + $0x1f8] sm:$0xf] %v3144_v36  ;;  %763 = vst [vmem:[#allocation2 + $0x21c] sm:$0xf] %v3145_v37  ;;  %3607 = vmatprep.subr.bf16.mxu0 %v3886_v56  ;;  %3671 = vmatprep.subr.bf16.mxu1 %v3887_v8 }
  0x60   :  { %v3159_v39 = vld [vmem:[%s5394_s0 + $0x84] sm:$0x1]  ;;  %v3160_v40 = vld [vmem:[%s5394_s0 + $0x88] sm:$0xf]  ;;  %v3161_v41 = vld [vmem:[%s5394_s0 + $0x8c] sm:$0x1] }
  0x61   :  { %v865_v42 = vshrl.u32 %v3158_v38, 16  ;;  %v868_v43 = vshll.u32 %v3158_v38, 16  ;;  %v874_v44 = vshll.u32 %v3159_v39, 16  ;;  %v879_v45 = vshrl.u32 %v3160_v40, 16  ;;  %v3174_v46 = vld [vmem:[%s5394_s0 + $0x80] sm:$0xe] }
  0x62   :  { %v882_v47 = vshll.u32 %v3160_v40, 16  ;;  %v888_v48 = vshll.u32 %v3161_v41, 16  ;;  %v3175_v49 = vld [vmem:[%s5394_s0 + $0x84] sm:$0x1]  ;;  %v3176_v50 = vld [vmem:[%s5394_s0 + $0x88] sm:$0xe]  ;;  %3608 = vmatpush3.bf16.msra.mxu0 %v3888_v14  ;;  %3672 = vmatpush3.bf16.msra.mxu1 %v3889_v17 }
  0x63   :  { %v867_v52 = vrot.slane %v865_v42, 4  ;;  %v870_v53 = vrot.slane %v868_v43, 5  ;;  %v876_v54 = vrot.slane %v874_v44, 5  ;;  %v881_v55 = vrot.slane %v879_v45, 4  ;;  %v3874_v58 = vld [vmem:[#allocation2 + $0x1bc] ss:$36 sps:$4 sm:$0xff]  }
  0x64   :  { %v3876_v59 = vld [vmem:[#allocation2 + $0x1b8] ss:$36 sps:$4 sm:$0xff]   ;;  %v884_v60 = vrot.slane %v882_v47, 5  ;;  %v1530_v61 = vld [vmem:[#allocation2 + $0x1b0] sm:$0xff]  ;;  %v890_v63 = vrot.slane %v888_v48, 5  ;;  %v3184_v1 = vrot.slane %v3174_v46, 9  ;;  %2706 = vmatprep.mubr.bf16.mxu1 %v3874_v58 }
  0x65   :  { %v871_v62 = vor.u32 %v870_v53, %v867_v52  ;;  %v3177_v0 = vld [vmem:[%s5394_s0 + $0x8c] sm:$0x1]  ;;  %v966_v2 = vrot.slane %v3175_v49, 5  ;;  %v1535_v3 = vld [vmem:[#allocation2 + $0x1d4] sm:$0xff]  ;;  %v3185_v6 = vrot.slane %v3176_v50, 9  ;;  %2707 = vmatmul.mubr.bf16.gmra.mxu1 %v3876_v59 }
  0x66   :  { %v3872_v4 = vld [vmem:[#allocation2 + $0x1b4] ss:$36 sps:$4 sm:$0xff]   ;;  %v885_v5 = vor.u32 %v884_v60, %v881_v55  ;;  %v970_v7 = vrot.slane %v3177_v0, 5  ;;  %v3336_v9 = vcombine.low %v1530_v61, %v1535_v3  ;;  %v3192_v12 = vld [vmem:[%s5394_s0 + $0x88] sm:$0xf] }
  0x67   :  { %v872_v10 = vrot.slane %v871_v62, 4  ;;  %v967_v11 = vsel %vm4095_vm4, %v3184_v1, %v966_v2  ;;  %v3193_v13 = vld [vmem:[%s5394_s0 + $0x90] sm:$0xf]  ;;  %2609 = vmatprep.mubr.bf16.mxu0 %v3872_v4  ;;  %1003 = vst [vmem:[#allocation2 + $0x204] sm:$0xf] %v3192_v12  ;;  %v4553_v50 = vld [vmem:[%s5393_s1 + $0x238] sm:$0xff]  }
  0x68   :  { %v886_v15 = vrot.slane %v885_v5, 4  ;;  %v971_v16 = vsel %vm4095_vm4, %v3185_v6, %v970_v7  ;;  %986 = vst [vmem:[#allocation2 + $0x200] sm:$0xf] %v967_v11  ;;  %1004 = vst [vmem:[#allocation2 + $0x228] sm:$0xf] %v3193_v13  ;;  %2610 = vmatmul.mubr.bf16.gmra.mxu0 %v3336_v9  ;;  %3737 = vmatprep.subr.bf16.mxu0 %v4553_v50 }
  0x69   :  { %v877_v18 = vsel %vm4104_vm5, %v872_v10, %v876_v54  ;;  %987 = vst [vmem:[#allocation2 + $0x224] sm:$0xf] %v971_v16  ;;  %v3050_v20 = vld [vmem:[%s5394_s0 + $0x8] sm:$0xf]  ;;  %v3051_v21 = vld [vmem:[%s5394_s0 + $0xc] sm:$0x1]  ;;  %3769 = vmatprep.subr.bf16.mxu1 %v4553_v50 }
  0x6a   :  { %v891_v19 = vsel %vm4104_vm5, %v886_v15, %v890_v63  ;;  %906 = vst [vmem:[#allocation2 + $0x1fc] sm:$0xf] %v877_v18  ;;  %v3052_v22 = vld [vmem:[%s5394_s0 + $0x10] sm:$0xf]  ;;  %v3053_v23 = vld [vmem:[%s5394_s0 + $0x14] sm:$0x1] }
  0x6b   :  { %907 = vst [vmem:[#allocation2 + $0x220] sm:$0xf] %v891_v19  ;;  %v299_v24 = vshrl.u32 %v3050_v20, 16  ;;  %v302_v25 = vshll.u32 %v3050_v20, 16  ;;  %v308_v26 = vshll.u32 %v3051_v21, 16  ;;  %v313_v27 = vshrl.u32 %v3052_v22, 16 }
  0x6c   :  { %v316_v28 = vshll.u32 %v3052_v22, 16  ;;  %v322_v29 = vshll.u32 %v3053_v23, 16  ;;  %v3066_v30 = vld [vmem:[%s5394_s0 + $0x8] sm:$0xe]  ;;  %v3067_v31 = vld [vmem:[%s5394_s0 + $0xc] sm:$0x1] }
  0x6d   :  { %v301_v32 = vrot.slane %v299_v24, 4  ;;  %v304_v33 = vrot.slane %v302_v25, 5  ;;  %v310_v34 = vrot.slane %v308_v26, 5  ;;  %v315_v35 = vrot.slane %v313_v27, 4  ;;  %v3068_v36 = vld [vmem:[%s5394_s0 + $0x10] sm:$0xe] }
  0x6e   :  { %v318_v37 = vrot.slane %v316_v28, 5  ;;  %v324_v38 = vrot.slane %v322_v29, 5  ;;  %v3069_v39 = vld [vmem:[%s5394_s0 + $0x14] sm:$0x1]  ;;  %v3082_v40 = vrot.slane %v3066_v30, 9  ;;  %v460_v44 = vrot.slane %v3067_v31, 5 }
  0x6f   :  { %v3883_v41 = vld [vmem:[#allocation2 + $0x204] ss:$36 sps:$4 sm:$0xff]   ;;  %v305_v43 = vor.u32 %v304_v33, %v301_v32  ;;  %v3083_v47 = vrot.slane %v3068_v36, 9  ;;  %v464_v48 = vrot.slane %v3069_v39, 5  ;;  %v3090_v49 = vld [vmem:[%s5394_s0 + $0x10] sm:$0xf] }
  0x70   :  { %v3885_v42 = vld [vmem:[#allocation2 + $0x200] ss:$36 sps:$4 sm:$0xff]   ;;  %v319_v46 = vor.u32 %v318_v37, %v315_v35  ;;  %2714 = vmatprep.mubr.bf16.mxu1 %v3883_v41  ;;  %v461_v55 = vsel %vm4095_vm4, %v3082_v40, %v460_v44  ;;  %v3091_v56 = vld [vmem:[%s5394_s0 + $0x18] sm:$0xf]  ;;  %515 = vst [vmem:[#allocation2 + $0x18] sm:$0xf] %v3090_v49 }
  0x71   :  { %v1540_v45 = vld [vmem:[#allocation2 + $0x1f8] sm:$0xff]  ;;  %v306_v54 = vrot.slane %v305_v43, 4  ;;  %2715 = vmatmul.mubr.bf16.gmra.mxu1 %v3885_v42  ;;  %v465_v60 = vsel %vm4095_vm4, %v3083_v47, %v464_v48  ;;  %498 = vst [vmem:[#allocation2 + $0x14] sm:$0xf] %v461_v55  ;;  %516 = vst [vmem:[#allocation2 + $0x3c] sm:$0xf] %v3091_v56 }
  0x72   :  { %v1545_v52 = vld [vmem:[#allocation2 + $0x21c] sm:$0xff]  ;;  %v320_v59 = vrot.slane %v319_v46, 4  ;;  %v3098_v61 = vld [vmem:[%s5394_s0 + $0x10] sm:$0xf]  ;;  %v3099_v62 = vld [vmem:[%s5394_s0 + $0x14] sm:$0x1] }
  0x73   :  { %v3881_v53 = vld [vmem:[#allocation2 + $0x1fc] ss:$36 sps:$4 sm:$0xff]   ;;  %v3345_v58 = vcombine.low %v1540_v45, %v1545_v52  ;;  %v311_v63 = vsel %vm4104_vm5, %v306_v54, %v310_v34  ;;  %499 = vst [vmem:[#allocation2 + $0x38] sm:$0xf] %v465_v60  ;;  %v3100_v0 = vld [vmem:[%s5394_s0 + $0x18] sm:$0xf] }
  0x74   :  { %2617 = vmatprep.mubr.bf16.mxu0 %v3881_v53  ;;  %v3101_v1 = vld [vmem:[%s5394_s0 + $0x1c] sm:$0x1]  ;;  %v540_v2 = vshrl.u32 %v3098_v61, 16  ;;  %v543_v3 = vshll.u32 %v3098_v61, 16  ;;  %v325_v4 = vsel %vm4104_vm5, %v320_v59, %v324_v38  ;;  %418 = vst [vmem:[#allocation2 + $0x10] sm:$0xf] %v311_v63 }
  0x75   :  { %2618 = vmatmul.mubr.bf16.gmra.mxu0 %v3345_v58  ;;  %v549_v5 = vshll.u32 %v3099_v62, 16  ;;  %v554_v6 = vshrl.u32 %v3100_v0, 16  ;;  %v557_v7 = vshll.u32 %v3100_v0, 16  ;;  %419 = vst [vmem:[#allocation2 + $0x34] sm:$0xf] %v325_v4  ;;  %v563_v10 = vshll.u32 %v3101_v1, 16 }
  0x76   :  { %v542_v8 = vrot.slane %v540_v2, 4  ;;  %v545_v9 = vrot.slane %v543_v3, 5  ;;  %v3054_v14 = vld [vmem:[%s5394_s0 + $0x18] sm:$0xf]  ;;  %v3055_v17 = vld [vmem:[%s5394_s0 + $0x1c] sm:$0x1] }
  0x77   :  { %v551_v11 = vrot.slane %v549_v5, 5  ;;  %v556_v12 = vrot.slane %v554_v6, 4  ;;  %v559_v13 = vrot.slane %v557_v7, 5  ;;  %v565_v16 = vrot.slane %v563_v10, 5  ;;  %v3056_v18 = vld [vmem:[%s5394_s0 + $0x20] sm:$0xf] }
  0x78   :  { %v546_v15 = vor.u32 %v545_v9, %v542_v8  ;;  %v327_v19 = vshrl.u32 %v3054_v14, 16  ;;  %v3057_v21 = vld [vmem:[%s5394_s0 + $0x24] sm:$0x1]  ;;  %v330_v22 = vshll.u32 %v3054_v14, 16  ;;  %v336_v23 = vshll.u32 %v3055_v17, 16  ;;  %v4606_v39 = vld [vmem:[%s5393_s1 + $0x230] sm:$0xff]  }
  0x79   :  { %v560_v20 = vor.u32 %v559_v13, %v556_v12  ;;  %v341_v24 = vshrl.u32 %v3056_v18, 16  ;;  %v344_v27 = vshll.u32 %v3056_v18, 16  ;;  %v350_v28 = vshll.u32 %v3057_v21, 16  ;;  %v3070_v29 = vld [vmem:[%s5394_s0 + $0x18] sm:$0xe]  ;;  %v4644_v7 = vld [vmem:[%s5393_s1 + $0x228] sm:$0xff]  }
  0x7a   :  { %v547_v25 = vrot.slane %v546_v15, 4  ;;  %v329_v26 = vrot.slane %v327_v19, 4  ;;  %v332_v31 = vrot.slane %v330_v22, 5  ;;  %v3071_v33 = vld [vmem:[%s5394_s0 + $0x1c] sm:$0x1]  ;;  %v338_v35 = vrot.slane %v336_v23, 5 }
  0x7b   :  { %v561_v30 = vrot.slane %v560_v20, 4  ;;  %v343_v32 = vrot.slane %v341_v24, 4  ;;  %v346_v36 = vrot.slane %v344_v27, 5  ;;  %v3072_v37 = vld [vmem:[%s5394_s0 + $0x20] sm:$0xe]  ;;  %v3084_v38 = vrot.slane %v3070_v29, 9 }
  0x7c   :  { %v552_v34 = vsel %vm4104_vm5, %v547_v25, %v551_v11  ;;  %v3890_v40 = vld [vmem:[#allocation2 + $0x10] ss:$36 sps:$4 sm:$0xff]   ;;  %v333_v43 = vor.u32 %v332_v31, %v329_v26  ;;  %v468_v44 = vrot.slane %v3071_v33, 5  ;;  %v352_v46 = vrot.slane %v350_v28, 5  ;;  %v3073_v47 = vld [vmem:[%s5394_s0 + $0x24] sm:$0x1] }
  0x7d   :  { %v3892_v41 = vld [vmem:[#allocation2 + $0x14] ss:$36 sps:$4 sm:$0xff]   ;;  %v566_v42 = vsel %vm4104_vm5, %v561_v30, %v565_v16  ;;  %659 = vst [vmem:[#allocation2 + $0x1c] sm:$0xf] %v552_v34  ;;  %v347_v45 = vor.u32 %v346_v36, %v343_v32  ;;  %v3085_v48 = vrot.slane %v3072_v37, 9  ;;  %v472_v54 = vrot.slane %v3073_v47, 5 }
  0x7e   :  { %660 = vst [vmem:[#allocation2 + $0x40] sm:$0xf] %v566_v42  ;;  %v3092_v49 = vld [vmem:[%s5394_s0 + $0x20] sm:$0xf]  ;;  %2755 = vmatprep.mubr.bf16.mxu0 %v3892_v41  ;;  %v334_v52 = vrot.slane %v333_v43, 4  ;;  %v469_v53 = vsel %vm4095_vm4, %v3084_v38, %v468_v44  ;;  %v4681_v43 = vld [vmem:[%s5393_s1 + $0x218] sm:$0xff]  }
  0x7f   :  { %v3093_v55 = vld [vmem:[%s5394_s0 + $0x28] sm:$0xf]  ;;  %517 = vst [vmem:[#allocation2 + $0x60] sm:$0xf] %v3092_v49  ;;  %v3102_v56 = vld [vmem:[%s5394_s0 + $0x20] sm:$0xf]  ;;  %2756 = vmatmul.mubr.bf16.vlgmr.msra.gmra.mxu0 %v3890_v40  ;;  %v473_v63 = vsel %vm4095_vm4, %v3085_v48, %v472_v54 }
  0x80   :  { %v348_v58 = vrot.slane %v347_v45, 4  ;;  %500 = vst [vmem:[#allocation2 + $0x5c] sm:$0xf] %v469_v53  ;;  %518 = vst [vmem:[#allocation2 + $0x84] sm:$0xf] %v3093_v55  ;;  %v568_v61 = vshrl.u32 %v3102_v56, 16  ;;  %3738 = vmatpush3.bf16.msra.mxu0 %v4553_v50  ;;  %v339_v62 = vsel %vm4104_vm5, %v334_v52, %v338_v35 }
  0x81   :  { %v3103_v59 = vld [vmem:[%s5394_s0 + $0x24] sm:$0x1]  ;;  %v3104_v60 = vld [vmem:[%s5394_s0 + $0x28] sm:$0xf]  ;;  %v3105_v0 = vld [vmem:[%s5394_s0 + $0x2c] sm:$0x1]  ;;  %3739 = vmatprep.subr.bf16.mxu0 %v4606_v39 }
  0x82   :  { %v571_v1 = vshll.u32 %v3102_v56, 16  ;;  %v577_v2 = vshll.u32 %v3103_v59, 16  ;;  %v353_v3 = vsel %vm4104_vm5, %v348_v58, %v352_v46  ;;  %420 = vst [vmem:[#allocation2 + $0x58] sm:$0xf] %v339_v62  ;;  %501 = vst [vmem:[#allocation2 + $0x80] sm:$0xf] %v473_v63 }
  0x83   :  { %v570_v4 = vrot.slane %v568_v61, 4  ;;  %v582_v5 = vshrl.u32 %v3104_v60, 16  ;;  %v585_v6 = vshll.u32 %v3104_v60, 16  ;;  %421 = vst [vmem:[#allocation2 + $0x7c] sm:$0xf] %v353_v3  ;;  %v591_v10 = vshll.u32 %v3105_v0, 16 }
  0x84   :  { %v573_v8 = vrot.slane %v571_v1, 5  ;;  %v579_v9 = vrot.slane %v577_v2, 5  ;;  %v3058_v11 = vld [vmem:[%s5394_s0 + $0x28] sm:$0xf]  ;;  %v3059_v14 = vld [vmem:[%s5394_s0 + $0x2c] sm:$0x1]  ;;  %3740 = vmatpush3.bf16.msra.mxu0 %v4606_v39 }
  0x85   :  { %v584_v12 = vrot.slane %v582_v5, 4  ;;  %v587_v13 = vrot.slane %v585_v6, 5  ;;  %v355_v15 = vshrl.u32 %v3058_v11, 16  ;;  %v4655_v16 = vld [vmem:[%s5393_s1 + $0x220] sm:$0xff]   ;;  %v3893_v17 = vld [vmem:[#allocation2 + $0x18] ss:$36 sps:$4 sm:$0xff]   ;;  %3741 = vmatprep.subr.bf16.mxu0 %v4644_v7 }
  0x86   :  { %v3895_v18 = vld [vmem:[#allocation2 + $0x1c] ss:$36 sps:$4 sm:$0xff]   ;;  %v574_v19 = vor.u32 %v573_v8, %v570_v4  ;;  %v593_v20 = vrot.slane %v591_v10, 5  ;;  %v3060_v22 = vld [vmem:[%s5394_s0 + $0x30] sm:$0xf]  ;;  %v358_v25 = vshll.u32 %v3058_v11, 16 }
  0x87   :  { %v588_v21 = vor.u32 %v587_v13, %v584_v12  ;;  %v3061_v23 = vld [vmem:[%s5394_s0 + $0x34] sm:$0x1]  ;;  %v357_v24 = vrot.slane %v355_v15, 4  ;;  %2852 = vmatprep.mubr.bf16.mxu1 %v3895_v18  ;;  %v364_v27 = vshll.u32 %v3059_v14, 16  ;;  %v369_v28 = vshrl.u32 %v3060_v22, 16 }
  0x88   :  { %v575_v26 = vrot.slane %v574_v19, 4  ;;  %v372_v29 = vshll.u32 %v3060_v22, 16  ;;  %v3074_v30 = vld [vmem:[%s5394_s0 + $0x28] sm:$0xe]  ;;  %2853 = vmatmul.mubr.bf16.vlgmr.msra.gmra.mxu1 %v3893_v17  ;;  %v360_v32 = vrot.slane %v358_v25, 5  ;;  %v378_v33 = vshll.u32 %v3061_v23, 16  ;;  %3742 = vmatpush3.bf16.msra.mxu0 %v4644_v7 }
  0x89   :  { %v589_v31 = vrot.slane %v588_v21, 4  ;;  %v3075_v34 = vld [vmem:[%s5394_s0 + $0x2c] sm:$0x1]  ;;  %v3086_v35 = vrot.slane %v3074_v30, 9  ;;  %3777 = vmatpush3.bf16.msra.mxu1 %v4553_v50  ;;  %v1482_v36 = vld [vmem:[#allocation2 + $0x58] sm:$0xff]  ;;  %v366_v38 = vrot.slane %v364_v27, 5  ;;  %3743 = vmatprep.subr.bf16.mxu0 %v4655_v16 }
  0x8a   :  { %v580_v37 = vsel %vm4104_vm5, %v575_v26, %v579_v9  ;;  %v371_v40 = vrot.slane %v369_v28, 4  ;;  %v374_v41 = vrot.slane %v372_v29, 5  ;;  %v3076_v42 = vld [vmem:[%s5394_s0 + $0x30] sm:$0xe]  ;;  %v1487_v44 = vld [vmem:[#allocation2 + $0x7c] sm:$0xff]  ;;  %3770 = vmatprep.subr.bf16.mxu1 %v4606_v39  ;;  %v361_v46 = vor.u32 %v360_v32, %v357_v24 }
  0x8b   :  { %v3897_v50 = vld [vmem:[#allocation2 + $0x5c] ss:$36 sps:$4 sm:$0xff]   ;;  %v594_v45 = vsel %vm4104_vm5, %v589_v31, %v593_v20  ;;  %661 = vst [vmem:[#allocation2 + $0x64] sm:$0xf] %v580_v37  ;;  %v380_v47 = vrot.slane %v378_v33, 5  ;;  %v3295_v49 = vcombine.low %v1482_v36, %v1487_v44  ;;  %v476_v53 = vrot.slane %v3075_v34, 5 }
  0x8c   :  { %v3077_v48 = vld [vmem:[%s5394_s0 + $0x34] sm:$0x1]  ;;  %662 = vst [vmem:[#allocation2 + $0x88] sm:$0xf] %v594_v45  ;;  %v375_v52 = vor.u32 %v374_v41, %v371_v40  ;;  %v3087_v54 = vrot.slane %v3076_v42, 9  ;;  %2763 = vmatprep.mubr.bf16.mxu0 %v3897_v50  ;;  %v362_v58 = vrot.slane %v361_v46, 4  ;;  %3744 = vmatpush3.bf16.msra.mxu0 %v4655_v16 }
  0x8d   :  { %v3094_v55 = vld [vmem:[%s5394_s0 + $0x30] sm:$0xf]  ;;  %v3095_v56 = vld [vmem:[%s5394_s0 + $0x38] sm:$0xf]  ;;  %v480_v59 = vrot.slane %v3077_v48, 5  ;;  %2764 = vmatmul.mubr.bf16.gmra.mxu0 %v3295_v49  ;;  %3778 = vmatpush3.bf16.msra.mxu1 %v4606_v39  ;;  %v477_v63 = vsel %vm4095_vm4, %v3086_v35, %v476_v53  ;;  %v4744_v31 = vld [vmem:[%s5393_s1 + $0x208] sm:$0xff]  }
  0x8e   :  { %519 = vst [vmem:[#allocation2 + $0xa8] sm:$0xf] %v3094_v55  ;;  %520 = vst [vmem:[#allocation2 + $0xcc] sm:$0xf] %v3095_v56  ;;  %v3106_v60 = vld [vmem:[%s5394_s0 + $0x30] sm:$0xf]  ;;  %v367_v3 = vsel %vm4104_vm5, %v362_v58, %v366_v38  ;;  %3771 = vmatprep.subr.bf16.mxu1 %v4644_v7  ;;  %3745 = vmatprep.subr.bf16.mxu0 %v4681_v43 }
  0x8f   :  { %v3107_v61 = vld [vmem:[%s5394_s0 + $0x34] sm:$0x1]  ;;  %v376_v62 = vrot.slane %v375_v52, 4  ;;  %v3108_v0 = vld [vmem:[%s5394_s0 + $0x38] sm:$0xf]  ;;  %v596_v2 = vshrl.u32 %v3106_v60, 16  ;;  %v481_v4 = vsel %vm4095_vm4, %v3087_v54, %v480_v59 }
  0x90   :  { %v3109_v1 = vld [vmem:[%s5394_s0 + $0x3c] sm:$0x1]  ;;  %502 = vst [vmem:[#allocation2 + $0xa4] sm:$0xf] %v477_v63  ;;  %v599_v39 = vshll.u32 %v3106_v60, 16  ;;  %v605_v5 = vshll.u32 %v3107_v61, 16  ;;  %3746 = vmatpush3.bf16.msra.mxu0 %v4681_v43 }
  0x91   :  { %v381_v6 = vsel %vm4104_vm5, %v376_v62, %v380_v47  ;;  %422 = vst [vmem:[#allocation2 + $0xa0] sm:$0xf] %v367_v3  ;;  %503 = vst [vmem:[#allocation2 + $0xc8] sm:$0xf] %v481_v4  ;;  %v598_v8 = vrot.slane %v596_v2, 4  ;;  %v610_v9 = vshrl.u32 %v3108_v0, 16  ;;  %3779 = vmatpush3.bf16.msra.mxu1 %v4644_v7 }
  0x92   :  { %v613_v10 = vshll.u32 %v3108_v0, 16  ;;  %v3062_v11 = vld [vmem:[%s5394_s0 + $0x38] sm:$0xf]  ;;  %v4726_v12 = vld [vmem:[%s5393_s1 + $0x210] sm:$0xff]   ;;  %423 = vst [vmem:[#allocation2 + $0xc4] sm:$0xf] %v381_v6  ;;  %3772 = vmatprep.subr.bf16.mxu1 %v4655_v16 }
  0x93   :  { %v601_v13 = vrot.slane %v599_v39, 5  ;;  %v607_v14 = vrot.slane %v605_v5, 5  ;;  %v619_v15 = vshll.u32 %v3109_v1, 16  ;;  %v3063_v17 = vld [vmem:[%s5394_s0 + $0x3c] sm:$0x1]  ;;  %v383_v18 = vshrl.u32 %v3062_v11, 16  ;;  %3747 = vmatprep.subr.bf16.mxu0 %v4726_v12 }
  0x94   :  { %v612_v19 = vrot.slane %v610_v9, 4  ;;  %v615_v20 = vrot.slane %v613_v10, 5  ;;  %v3064_v21 = vld [vmem:[%s5394_s0 + $0x40] sm:$0xf]  ;;  %v386_v22 = vshll.u32 %v3062_v11, 16  ;;  %v392_v30 = vshll.u32 %v3063_v17, 16  ;;  %3748 = vmatpush3.bf16.msra.mxu0 %v4726_v12 }
  0x95   :  { %v3899_v23 = vld [vmem:[#allocation2 + $0x64] ss:$36 sps:$4 sm:$0xff]   ;;  %v602_v25 = vor.u32 %v601_v13, %v598_v8  ;;  %v621_v26 = vrot.slane %v619_v15, 5  ;;  %v385_v29 = vrot.slane %v383_v18, 4  ;;  %v397_v33 = vshrl.u32 %v3064_v21, 16  ;;  %3780 = vmatpush3.bf16.msra.mxu1 %v4655_v16  ;;  %3749 = vmatprep.subr.bf16.mxu0 %v4744_v31 }
  0x96   :  { %v3901_v24 = vld [vmem:[#allocation2 + $0x60] ss:$36 sps:$4 sm:$0xff]   ;;  %v616_v27 = vor.u32 %v615_v20, %v612_v19  ;;  %v388_v7 = vrot.slane %v386_v22, 5  ;;  %2860 = vmatprep.mubr.bf16.mxu1 %v3899_v23  ;;  %v400_v34 = vshll.u32 %v3064_v21, 16  ;;  %v3078_v36 = vld [vmem:[%s5394_s0 + $0x38] sm:$0xe]  ;;  %3773 = vmatprep.subr.bf16.mxu1 %v4681_v43 }
  0x97   :  { %v3065_v28 = vld [vmem:[%s5394_s0 + $0x44] sm:$0x1]  ;;  %v603_v32 = vrot.slane %v602_v25, 4  ;;  %2861 = vmatmul.mubr.bf16.gmra.mxu1 %v3901_v24  ;;  %v394_v40 = vrot.slane %v392_v30, 5  ;;  %v3079_v41 = vld [vmem:[%s5394_s0 + $0x3c] sm:$0x1] }
  0x98   :  { %v406_v35 = vshll.u32 %v3065_v28, 16  ;;  %v617_v37 = vrot.slane %v616_v27, 4  ;;  %v389_v38 = vor.u32 %v388_v7, %v385_v29  ;;  %v3080_v42 = vld [vmem:[%s5394_s0 + $0x40] sm:$0xe]  ;;  %v399_v45 = vrot.slane %v397_v33, 4  ;;  %3750 = vmatpush3.bf16.msra.mxu0 %v4744_v31 }
  0x99   :  { %v1492_v44 = vld [vmem:[#allocation2 + $0xa0] sm:$0xff]  ;;  %v608_v50 = vsel %vm4104_vm5, %v603_v32, %v607_v14  ;;  %v402_v46 = vrot.slane %v400_v34, 5  ;;  %v3088_v56 = vrot.slane %v3078_v36, 9  ;;  %v484_v58 = vrot.slane %v3079_v41, 5  ;;  %v3097_v63 = vld [vmem:[%s5394_s0 + $0x48] sm:$0xf]  ;;  %3781 = vmatpush3.bf16.msra.mxu1 %v4681_v43 }
  0x9a   :  { %v408_v47 = vrot.slane %v406_v35, 5  ;;  %v3081_v48 = vld [vmem:[%s5394_s0 + $0x44] sm:$0x1]  ;;  %v622_v54 = vsel %vm4104_vm5, %v617_v37, %v621_v26  ;;  %663 = vst [vmem:[#allocation2 + $0xac] sm:$0xf] %v608_v50  ;;  %v390_v55 = vrot.slane %v389_v38, 4  ;;  %3774 = vmatprep.subr.bf16.mxu1 %v4726_v12 }
  0x9b   :  { %v4765_v49 = vld [vmem:[%s5393_s1 + $0x200] sm:$0xff]   ;;  %664 = vst [vmem:[#allocation2 + $0xd0] sm:$0xf] %v622_v54  ;;  %v403_v59 = vor.u32 %v402_v46, %v399_v45  ;;  %v3089_v60 = vrot.slane %v3080_v42, 9  ;;  %v488_v61 = vrot.slane %v3081_v48, 5  ;;  %v485_v1 = vsel %vm4095_vm4, %v3088_v56, %v484_v58 }
  0x9c   :  { %v1497_v52 = vld [vmem:[#allocation2 + $0xc4] sm:$0xff]  ;;  %v3096_v62 = vld [vmem:[%s5394_s0 + $0x40] sm:$0xf]  ;;  %v395_v0 = vsel %vm4104_vm5, %v390_v55, %v394_v40  ;;  %522 = vst [vmem:[#allocation2 + $0x114] sm:$0xf] %v3097_v63  ;;  %3751 = vmatprep.subr.bf16.mxu0 %v4765_v49 }
  0x9d   :  { %v3903_v53 = vld [vmem:[#allocation2 + $0xa4] ss:$36 sps:$4 sm:$0xff]   ;;  %v3304_v16 = vcombine.low %v1492_v44, %v1497_v52  ;;  %521 = vst [vmem:[#allocation2 + $0xf0] sm:$0xf] %v3096_v62  ;;  %v3110_v2 = vld [vmem:[%s5394_s0 + $0x40] sm:$0xf]  ;;  %v489_v5 = vsel %vm4095_vm4, %v3089_v60, %v488_v61  ;;  %3782 = vmatpush3.bf16.msra.mxu1 %v4726_v12  ;;  %3752 = vmatpush3.bf16.msra.mxu0 %v4765_v49 }
  0x9e   :  { %2771 = vmatprep.mubr.bf16.mxu0 %v3903_v53  ;;  %v3111_v3 = vld [vmem:[%s5394_s0 + $0x44] sm:$0x1]  ;;  %v3112_v4 = vld [vmem:[%s5394_s0 + $0x48] sm:$0xf]  ;;  %v404_v39 = vrot.slane %v403_v59, 4  ;;  %v624_v8 = vshrl.u32 %v3110_v2, 16  ;;  %3775 = vmatprep.subr.bf16.mxu1 %v4744_v31 }
  0x9f   :  { %2772 = vmatmul.mubr.bf16.gmra.mxu0 %v3304_v16  ;;  %424 = vst [vmem:[#allocation2 + $0xe8] sm:$0xf] %v395_v0  ;;  %504 = vst [vmem:[#allocation2 + $0xec] sm:$0xf] %v485_v1  ;;  %v3113_v6 = vld [vmem:[%s5394_s0 + $0x4c] sm:$0x1] }
  0xa0   :  { %v627_v9 = vshll.u32 %v3110_v2, 16  ;;  %505 = vst [vmem:[#allocation2 + $0x110] sm:$0xf] %v489_v5  ;;  %v633_v10 = vshll.u32 %v3111_v3, 16  ;;  %v638_v11 = vshrl.u32 %v3112_v4, 16  ;;  %v641_v13 = vshll.u32 %v3112_v4, 16 }
  0xa1   :  { %v647_v14 = vshll.u32 %v3113_v6, 16  ;;  %v409_v15 = vsel %vm4104_vm5, %v404_v39, %v408_v47  ;;  %v626_v17 = vrot.slane %v624_v8, 4  ;;  %v3194_v19 = vld [vmem:[%s5394_s0 + $0x58] sm:$0xf]  ;;  %v3195_v23 = vld [vmem:[%s5394_s0 + $0x5c] sm:$0x1]  ;;  %3783 = vmatpush3.bf16.msra.mxu1 %v4744_v31 }
  0xa2   :  { %v629_v18 = vrot.slane %v627_v9, 5  ;;  %425 = vst [vmem:[#allocation2 + $0x10c] sm:$0xf] %v409_v15  ;;  %v635_v43 = vrot.slane %v633_v10, 5  ;;  %v640_v20 = vrot.slane %v638_v11, 4  ;;  %v643_v21 = vrot.slane %v641_v13, 5  ;;  %3776 = vmatprep.subr.bf16.mxu1 %v4765_v49 }
  0xa3   :  { %v649_v22 = vrot.slane %v647_v14, 5  ;;  %v3196_v25 = vld [vmem:[%s5394_s0 + $0x60] sm:$0xf]  ;;  %v3197_v26 = vld [vmem:[%s5394_s0 + $0x64] sm:$0x1]  ;;  %v1022_v27 = vshrl.u32 %v3194_v19, 16 }
  0xa4   :  { %v630_v24 = vor.u32 %v629_v18, %v626_v17  ;;  %v3905_v28 = vld [vmem:[#allocation2 + $0xac] ss:$36 sps:$4 sm:$0xff]   ;;  %v644_v7 = vor.u32 %v643_v21, %v640_v20  ;;  %v1025_v30 = vshll.u32 %v3194_v19, 16  ;;  %v1031_v34 = vshll.u32 %v3195_v23, 16  ;;  %v3210_v36 = vld [vmem:[%s5394_s0 + $0x58] sm:$0xe] }
  0xa5   :  { %v3907_v29 = vld [vmem:[#allocation2 + $0xa8] ss:$36 sps:$4 sm:$0xff]   ;;  %v1024_v33 = vrot.slane %v1022_v27, 4  ;;  %v1036_v35 = vshrl.u32 %v3196_v25, 16  ;;  %2868 = vmatprep.mubr.bf16.mxu1 %v3905_v28  ;;  %v1039_v40 = vshll.u32 %v3196_v25, 16  ;;  %v1045_v41 = vshll.u32 %v3197_v26, 16  ;;  %3784 = vmatpush3.bf16.msra.mxu1 %v4765_v49 }
  0xa6   :  { %v631_v32 = vrot.slane %v630_v24, 4  ;;  %v1502_v37 = vld [vmem:[#allocation2 + $0xe8] sm:$0xff]  ;;  %v645_v38 = vrot.slane %v644_v7, 4  ;;  %v1027_v12 = vrot.slane %v1025_v30, 5  ;;  %2869 = vmatmul.mubr.bf16.gmra.mxu1 %v3907_v29  ;;  %v1033_v44 = vrot.slane %v1031_v34, 5 }
  0xa7   :  { %v1038_v50 = vrot.slane %v1036_v35, 4  ;;  %v3211_v45 = vld [vmem:[%s5394_s0 + $0x5c] sm:$0x1]  ;;  %v3212_v46 = vld [vmem:[%s5394_s0 + $0x60] sm:$0xe]  ;;  %v1041_v52 = vrot.slane %v1039_v40, 5 }
  0xa8   :  { %v636_v42 = vsel %vm4104_vm5, %v631_v32, %v635_v43  ;;  %v650_v47 = vsel %vm4104_vm5, %v645_v38, %v649_v22  ;;  %v1028_v48 = vor.u32 %v1027_v12, %v1024_v33  ;;  %v1047_v53 = vrot.slane %v1045_v41, 5  ;;  %v3213_v54 = vld [vmem:[%s5394_s0 + $0x64] sm:$0x1]  ;;  %v3234_v55 = vld [vmem:[%s5394_s0 + $0x60] sm:$0xf] }
  0xa9   :  { %665 = vst [vmem:[#allocation2 + $0xf4] sm:$0xf] %v636_v42  ;;  %v1507_v56 = vld [vmem:[#allocation2 + $0x10c] sm:$0xff]  ;;  %666 = vst [vmem:[#allocation2 + $0x118] sm:$0xf] %v650_v47  ;;  %v3226_v16 = vrot.slane %v3210_v36, 9  ;;  %v1042_v63 = vor.u32 %v1041_v52, %v1038_v50 }
  0xaa   :  { %v3909_v58 = vld [vmem:[#allocation2 + $0xec] ss:$36 sps:$4 sm:$0xff]   ;;  %v1183_v59 = vrot.slane %v3211_v45, 5  ;;  %v3227_v60 = vrot.slane %v3212_v46, 9  ;;  %1238 = vst [vmem:[#allocation2 + $0x138] sm:$0xf] %v3234_v55  ;;  %v3313_v61 = vcombine.low %v1502_v37, %v1507_v56 }
  0xab   :  { %v1029_v62 = vrot.slane %v1028_v48, 4  ;;  %v1187_v0 = vrot.slane %v3213_v54, 5  ;;  %v3235_v1 = vld [vmem:[%s5394_s0 + $0x68] sm:$0xf]  ;;  %v3242_v31 = vld [vmem:[%s5394_s0 + $0x60] sm:$0xf]  ;;  %2779 = vmatprep.mubr.bf16.mxu0 %v3909_v58 }
  0xac   :  { %v1184_v2 = vsel %vm4095_vm4, %v3226_v16, %v1183_v59  ;;  %1239 = vst [vmem:[#allocation2 + $0x15c] sm:$0xf] %v3235_v1  ;;  %v3243_v3 = vld [vmem:[%s5394_s0 + $0x64] sm:$0x1]  ;;  %v3244_v4 = vld [vmem:[%s5394_s0 + $0x68] sm:$0xf]  ;;  %2780 = vmatmul.mubr.bf16.gmra.mxu0 %v3313_v61 }
  0xad   :  { %v3245_v39 = vld [vmem:[%s5394_s0 + $0x6c] sm:$0x1]  ;;  %v1034_v5 = vsel %vm4104_vm5, %v1029_v62, %v1033_v44  ;;  %v1043_v6 = vrot.slane %v1042_v63, 4  ;;  %v1188_v8 = vsel %vm4095_vm4, %v3227_v60, %v1187_v0  ;;  %1221 = vst [vmem:[#allocation2 + $0x134] sm:$0xf] %v1184_v2  ;;  %v1263_v9 = vshrl.u32 %v3242_v31, 16 }
  0xae   :  { %1141 = vst [vmem:[#allocation2 + $0x130] sm:$0xf] %v1034_v5  ;;  %1222 = vst [vmem:[#allocation2 + $0x158] sm:$0xf] %v1188_v8  ;;  %v1266_v10 = vshll.u32 %v3242_v31, 16  ;;  %v1272_v11 = vshll.u32 %v3243_v3, 16 }
  0xaf   :  { %v1277_v13 = vshrl.u32 %v3244_v4, 16  ;;  %v1280_v14 = vshll.u32 %v3244_v4, 16  ;;  %v3198_v15 = vld [vmem:[%s5394_s0 + $0x68] sm:$0xf]  ;;  %v1048_v17 = vsel %vm4104_vm5, %v1043_v6, %v1047_v53  ;;  %v1265_v18 = vrot.slane %v1263_v9, 4 }
  0xb0   :  { %v1286_v19 = vshll.u32 %v3245_v39, 16  ;;  %v3199_v43 = vld [vmem:[%s5394_s0 + $0x6c] sm:$0x1]  ;;  %v3200_v49 = vld [vmem:[%s5394_s0 + $0x70] sm:$0xf]  ;;  %v1268_v20 = vrot.slane %v1266_v10, 5 }
  0xb1   :  { %1142 = vst [vmem:[#allocation2 + $0x154] sm:$0xf] %v1048_v17  ;;  %v1274_v21 = vrot.slane %v1272_v11, 5  ;;  %v1279_v22 = vrot.slane %v1277_v13, 4  ;;  %v1282_v23 = vrot.slane %v1280_v14, 5  ;;  %v1050_v7 = vshrl.u32 %v3198_v15, 16 }
  0xb2   :  { %v3911_v24 = vld [vmem:[#allocation2 + $0xf4] ss:$36 sps:$4 sm:$0xff]   ;;  %v1288_v26 = vrot.slane %v1286_v19, 5  ;;  %v1269_v27 = vor.u32 %v1268_v20, %v1265_v18  ;;  %v1053_v30 = vshll.u32 %v3198_v15, 16  ;;  %v3214_v32 = vld [vmem:[%s5394_s0 + $0x68] sm:$0xe] }
  0xb3   :  { %v3913_v25 = vld [vmem:[#allocation2 + $0xf0] ss:$36 sps:$4 sm:$0xff]   ;;  %v1283_v28 = vor.u32 %v1282_v23, %v1279_v22  ;;  %2876 = vmatprep.mubr.bf16.mxu1 %v3911_v24  ;;  %v1059_v33 = vshll.u32 %v3199_v43, 16  ;;  %v1064_v34 = vshrl.u32 %v3200_v49, 16  ;;  %v1067_v35 = vshll.u32 %v3200_v49, 16 }
  0xb4   :  { %v3201_v29 = vld [vmem:[%s5394_s0 + $0x74] sm:$0x1]  ;;  %v3215_v37 = vld [vmem:[%s5394_s0 + $0x6c] sm:$0x1]  ;;  %2877 = vmatmul.mubr.bf16.gmra.mxu1 %v3913_v25  ;;  %v1270_v38 = vrot.slane %v1269_v27, 4  ;;  %v1052_v40 = vrot.slane %v1050_v7, 4 }
  0xb5   :  { %v1073_v36 = vshll.u32 %v3201_v29, 16  ;;  %v1284_v12 = vrot.slane %v1283_v28, 4  ;;  %v1055_v41 = vrot.slane %v1053_v30, 5  ;;  %v3216_v42 = vld [vmem:[%s5394_s0 + $0x70] sm:$0xe]  ;;  %v1061_v50 = vrot.slane %v1059_v33, 5 }
  0xb6   :  { %v1512_v44 = vld [vmem:[#allocation2 + $0x130] sm:$0xff]  ;;  %v1066_v45 = vrot.slane %v1064_v34, 4  ;;  %v1069_v46 = vrot.slane %v1067_v35, 5  ;;  %v1275_v48 = vsel %vm4104_vm5, %v1270_v38, %v1274_v21  ;;  %v3228_v55 = vrot.slane %v3214_v32, 9  ;;  %v3237_v1 = vld [vmem:[%s5394_s0 + $0x78] sm:$0xf] }
  0xb7   :  { %v1075_v47 = vrot.slane %v1073_v36, 5  ;;  %v1289_v52 = vsel %vm4104_vm5, %v1284_v12, %v1288_v26  ;;  %v1056_v53 = vor.u32 %v1055_v41, %v1052_v40  ;;  %v3217_v54 = vld [vmem:[%s5394_s0 + $0x74] sm:$0x1]  ;;  %v3236_v56 = vld [vmem:[%s5394_s0 + $0x70] sm:$0xf]  ;;  %v1191_v60 = vrot.slane %v3215_v37, 5 }
  0xb8   :  { %v1517_v58 = vld [vmem:[#allocation2 + $0x154] sm:$0xff]  ;;  %1382 = vst [vmem:[#allocation2 + $0x13c] sm:$0xf] %v1275_v48  ;;  %1383 = vst [vmem:[#allocation2 + $0x160] sm:$0xf] %v1289_v52  ;;  %v1070_v59 = vor.u32 %v1069_v46, %v1066_v45  ;;  %v3229_v61 = vrot.slane %v3216_v42, 9 }
  0xb9   :  { %v3915_v16 = vld [vmem:[#allocation2 + $0x134] ss:$36 sps:$4 sm:$0xff]   ;;  %v1195_v62 = vrot.slane %v3217_v54, 5  ;;  %1240 = vst [vmem:[#allocation2 + $0x180] sm:$0xf] %v3236_v56  ;;  %v3322_v63 = vcombine.low %v1512_v44, %v1517_v58  ;;  %v1057_v0 = vrot.slane %v1056_v53, 4  ;;  %v1192_v3 = vsel %vm4095_vm4, %v3228_v55, %v1191_v60 }
  0xba   :  { %v3246_v31 = vld [vmem:[%s5394_s0 + $0x70] sm:$0xf]  ;;  %2787 = vmatprep.mubr.bf16.mxu0 %v3915_v16  ;;  %v1071_v2 = vrot.slane %v1070_v59, 4  ;;  %1241 = vst [vmem:[#allocation2 + $0x1a4] sm:$0xf] %v3237_v1 }
  0xbb   :  { %v1196_v4 = vsel %vm4095_vm4, %v3229_v61, %v1195_v62  ;;  %v3247_v39 = vld [vmem:[%s5394_s0 + $0x74] sm:$0x1]  ;;  %v3248_v5 = vld [vmem:[%s5394_s0 + $0x78] sm:$0xf]  ;;  %v1291_v6 = vshrl.u32 %v3246_v31, 16  ;;  %2788 = vmatmul.mubr.bf16.gmra.mxu0 %v3322_v63  ;;  %v1062_v8 = vsel %vm4104_vm5, %v1057_v0, %v1061_v50  ;;  %v1294_v10 = vshll.u32 %v3246_v31, 16 }
  0xbc   :  { %1223 = vst [vmem:[#allocation2 + $0x17c] sm:$0xf] %v1192_v3  ;;  %1224 = vst [vmem:[#allocation2 + $0x1a0] sm:$0xf] %v1196_v4  ;;  %v3249_v9 = vld [vmem:[%s5394_s0 + $0x7c] sm:$0x1]  ;;  %v1076_v14 = vsel %vm4104_vm5, %v1071_v2, %v1075_v47 }
  0xbd   :  { %v1300_v11 = vshll.u32 %v3247_v39, 16  ;;  %v1305_v13 = vshrl.u32 %v3248_v5, 16  ;;  %1143 = vst [vmem:[#allocation2 + $0x178] sm:$0xf] %v1062_v8  ;;  %v1293_v15 = vrot.slane %v1291_v6, 4  ;;  %v1308_v17 = vshll.u32 %v3248_v5, 16 }
  0xbe   :  { %v1314_v18 = vshll.u32 %v3249_v9, 16  ;;  %1144 = vst [vmem:[#allocation2 + $0x19c] sm:$0xf] %v1076_v14  ;;  %v1296_v19 = vrot.slane %v1294_v10, 5  ;;  %v3202_v22 = vld [vmem:[%s5394_s0 + $0x78] sm:$0xf] }
  0xbf   :  { %v1302_v43 = vrot.slane %v1300_v11, 5  ;;  %v1307_v49 = vrot.slane %v1305_v13, 4  ;;  %v1310_v20 = vrot.slane %v1308_v17, 5  ;;  %v3203_v23 = vld [vmem:[%s5394_s0 + $0x7c] sm:$0x1]  ;;  %v1078_v26 = vshrl.u32 %v3202_v22, 16 }
  0xc0   :  { %v1316_v21 = vrot.slane %v1314_v18, 5  ;;  %v3917_v24 = vld [vmem:[#allocation2 + $0x13c] ss:$36 sps:$4 sm:$0xff]   ;;  %v1297_v25 = vor.u32 %v1296_v19, %v1293_v15  ;;  %v1081_v27 = vshll.u32 %v3202_v22, 16  ;;  %v3205_v30 = vld [vmem:[%s5394_s0 + $0x84] sm:$0x1] }
  0xc1   :  { %v3919_v28 = vld [vmem:[#allocation2 + $0x138] ss:$36 sps:$4 sm:$0xff]   ;;  %v1311_v29 = vor.u32 %v1310_v20, %v1307_v49  ;;  %v3204_v7 = vld [vmem:[%s5394_s0 + $0x80] sm:$0xf]  ;;  %2884 = vmatprep.mubr.bf16.mxu1 %v3917_v24  ;;  %v1080_v33 = vrot.slane %v1078_v26, 4  ;;  %v1087_v35 = vshll.u32 %v3203_v23, 16 }
  0xc2   :  { %v1298_v32 = vrot.slane %v1297_v25, 4  ;;  %v1083_v34 = vrot.slane %v1081_v27, 5  ;;  %v3218_v36 = vld [vmem:[%s5394_s0 + $0x78] sm:$0xe]  ;;  %2885 = vmatmul.mubr.bf16.gmra.mxu1 %v3919_v28  ;;  %v1092_v38 = vshrl.u32 %v3204_v7, 16  ;;  %v1095_v12 = vshll.u32 %v3204_v7, 16 }
  0xc3   :  { %v1312_v37 = vrot.slane %v1311_v29, 4  ;;  %v1101_v40 = vshll.u32 %v3205_v30, 16  ;;  %v3219_v41 = vld [vmem:[%s5394_s0 + $0x7c] sm:$0x1]  ;;  %v1089_v45 = vrot.slane %v1087_v35, 5  ;;  %v3230_v59 = vrot.slane %v3218_v36, 9 }
  0xc4   :  { %v1522_v42 = vld [vmem:[#allocation2 + $0x178] sm:$0xff]  ;;  %v1303_v44 = vsel %vm4104_vm5, %v1298_v32, %v1302_v43  ;;  %v1084_v50 = vor.u32 %v1083_v34, %v1080_v33  ;;  %v3220_v46 = vld [vmem:[%s5394_s0 + $0x80] sm:$0xe]  ;;  %v3221_v47 = vld [vmem:[%s5394_s0 + $0x84] sm:$0x1]  ;;  %v1094_v54 = vrot.slane %v1092_v38, 4 }
  0xc5   :  { %v1527_v48 = vld [vmem:[#allocation2 + $0x19c] sm:$0xff]  ;;  %v1317_v53 = vsel %vm4104_vm5, %v1312_v37, %v1316_v21  ;;  %1384 = vst [vmem:[#allocation2 + $0x184] sm:$0xf] %v1303_v44  ;;  %v1097_v55 = vrot.slane %v1095_v12, 5  ;;  %v1103_v56 = vrot.slane %v1101_v40, 5  ;;  %v1199_v60 = vrot.slane %v3219_v41, 5 }
  0xc6   :  { %v3921_v52 = vld [vmem:[#allocation2 + $0x17c] ss:$36 sps:$4 sm:$0xff]   ;;  %1385 = vst [vmem:[#allocation2 + $0x1a8] sm:$0xf] %v1317_v53  ;;  %v3331_v58 = vcombine.low %v1522_v42, %v1527_v48  ;;  %v1085_v16 = vrot.slane %v1084_v50, 4  ;;  %v3231_v63 = vrot.slane %v3220_v46, 9 }
  0xc7   :  { %v3238_v61 = vld [vmem:[%s5394_s0 + $0x80] sm:$0xf]  ;;  %2795 = vmatprep.mubr.bf16.mxu0 %v3921_v52  ;;  %v1098_v62 = vor.u32 %v1097_v55, %v1094_v54  ;;  %v1203_v0 = vrot.slane %v3221_v47, 5  ;;  %v3239_v1 = vld [vmem:[%s5394_s0 + $0x88] sm:$0xf]  ;;  %v1200_v3 = vsel %vm4095_vm4, %v3230_v59, %v1199_v60 }
  0xc8   :  { %1242 = vst [vmem:[#allocation2 + $0x1c8] sm:$0xf] %v3238_v61  ;;  %v3250_v31 = vld [vmem:[%s5394_s0 + $0x80] sm:$0xf]  ;;  %2796 = vmatmul.mubr.bf16.gmra.mxu0 %v3331_v58  ;;  %v1090_v2 = vsel %vm4104_vm5, %v1085_v16, %v1089_v45  ;;  %1243 = vst [vmem:[#allocation2 + $0x1ec] sm:$0xf] %v3239_v1 }
  0xc9   :  { %v3251_v4 = vld [vmem:[%s5394_s0 + $0x84] sm:$0x1]  ;;  %v3252_v39 = vld [vmem:[%s5394_s0 + $0x88] sm:$0xf]  ;;  %v3253_v5 = vld [vmem:[%s5394_s0 + $0x8c] sm:$0x1]  ;;  %v1204_v8 = vsel %vm4095_vm4, %v3231_v63, %v1203_v0 }
  0xca   :  { %v1099_v6 = vrot.slane %v1098_v62, 4  ;;  %1145 = vst [vmem:[#allocation2 + $0x1c0] sm:$0xf] %v1090_v2  ;;  %1225 = vst [vmem:[#allocation2 + $0x1c4] sm:$0xf] %v1200_v3  ;;  %v1319_v9 = vshrl.u32 %v3250_v31, 16 }
  0xcb   :  { %v1322_v10 = vshll.u32 %v3250_v31, 16  ;;  %1226 = vst [vmem:[#allocation2 + $0x1e8] sm:$0xf] %v1204_v8  ;;  %v1328_v11 = vshll.u32 %v3251_v4, 16  ;;  %v1333_v13 = vshrl.u32 %v3252_v39, 16  ;;  %v1336_v14 = vshll.u32 %v3252_v39, 16 }
  0xcc   :  { %v1342_v15 = vshll.u32 %v3253_v5, 16  ;;  %v1104_v17 = vsel %vm4104_vm5, %v1099_v6, %v1103_v56  ;;  %v1321_v18 = vrot.slane %v1319_v9, 4  ;;  %v3206_v43 = vld [vmem:[%s5394_s0 + $0x88] sm:$0xf]  ;;  %v3207_v49 = vld [vmem:[%s5394_s0 + $0x8c] sm:$0x1] }
  0xcd   :  { %v1324_v19 = vrot.slane %v1322_v10, 5  ;;  %1146 = vst [vmem:[#allocation2 + $0x1e4] sm:$0xf] %v1104_v17  ;;  %v1330_v20 = vrot.slane %v1328_v11, 5  ;;  %v1335_v21 = vrot.slane %v1333_v13, 4  ;;  %v1338_v22 = vrot.slane %v1336_v14, 5 }
  0xce   :  { %v1344_v23 = vrot.slane %v1342_v15, 5  ;;  %v3923_v24 = vld [vmem:[#allocation2 + $0x184] ss:$36 sps:$4 sm:$0xff]   ;;  %v1106_v27 = vshrl.u32 %v3206_v43, 16  ;;  %v3208_v29 = vld [vmem:[%s5394_s0 + $0x90] sm:$0xf] }
  0xcf   :  { %v3925_v25 = vld [vmem:[#allocation2 + $0x180] ss:$36 sps:$4 sm:$0xff]   ;;  %v1325_v26 = vor.u32 %v1324_v19, %v1321_v18  ;;  %v1339_v28 = vor.u32 %v1338_v22, %v1335_v21  ;;  %v3209_v7 = vld [vmem:[%s5394_s0 + $0x94] sm:$0x1]  ;;  %v1109_v30 = vshll.u32 %v3206_v43, 16  ;;  %v1115_v32 = vshll.u32 %v3207_v49, 16  ;;  %2892 = vmatprep.mubr.bf16.mxu1 %v3923_v24 }
  0xd0   :  { %v1108_v34 = vrot.slane %v1106_v27, 4  ;;  %v1120_v35 = vshrl.u32 %v3208_v29, 16  ;;  %v1123_v36 = vshll.u32 %v3208_v29, 16  ;;  %v3222_v37 = vld [vmem:[%s5394_s0 + $0x88] sm:$0xe]  ;;  %2893 = vmatmul.mubr.bf16.gmra.mxu1 %v3925_v25  ;;  %v1129_v42 = vshll.u32 %v3209_v7, 16 }
  0xd1   :  { %v1326_v33 = vrot.slane %v1325_v26, 4  ;;  %v1532_v38 = vld [vmem:[#allocation2 + $0x1c0] sm:$0xff]  ;;  %v1340_v12 = vrot.slane %v1339_v28, 4  ;;  %v1111_v40 = vrot.slane %v1109_v30, 5  ;;  %v1117_v41 = vrot.slane %v1115_v32, 5 }
  0xd2   :  { %v1122_v50 = vrot.slane %v1120_v35, 4  ;;  %v1125_v45 = vrot.slane %v1123_v36, 5  ;;  %v3223_v46 = vld [vmem:[%s5394_s0 + $0x8c] sm:$0x1]  ;;  %v3224_v47 = vld [vmem:[%s5394_s0 + $0x90] sm:$0xe] }
  0xd3   :  { %v1331_v44 = vsel %vm4104_vm5, %v1326_v33, %v1330_v20  ;;  %v1345_v48 = vsel %vm4104_vm5, %v1340_v12, %v1344_v23  ;;  %v1112_v52 = vor.u32 %v1111_v40, %v1108_v34  ;;  %v1131_v53 = vrot.slane %v1129_v42, 5  ;;  %v3225_v54 = vld [vmem:[%s5394_s0 + $0x94] sm:$0x1]  ;;  %v3240_v56 = vld [vmem:[%s5394_s0 + $0x90] sm:$0xf] }
  0xd4   :  { %1386 = vst [vmem:[#allocation2 + $0x1cc] sm:$0xf] %v1331_v44  ;;  %v3232_v55 = vrot.slane %v3222_v37, 9  ;;  %v1537_v58 = vld [vmem:[#allocation2 + $0x1e4] sm:$0xff]  ;;  %1387 = vst [vmem:[#allocation2 + $0x1f0] sm:$0xf] %v1345_v48  ;;  %v1126_v59 = vor.u32 %v1125_v45, %v1122_v50 }
  0xd5   :  { %v3927_v16 = vld [vmem:[#allocation2 + $0x1c4] ss:$36 sps:$4 sm:$0xff]   ;;  %v1207_v60 = vrot.slane %v3223_v46, 5  ;;  %v3233_v61 = vrot.slane %v3224_v47, 9  ;;  %v1211_v62 = vrot.slane %v3225_v54, 5  ;;  %v3340_v63 = vcombine.low %v1532_v38, %v1537_v58 }
  0xd6   :  { %1244 = vst [vmem:[#allocation2 + $0x210] sm:$0xf] %v3240_v56  ;;  %v1113_v0 = vrot.slane %v1112_v52, 4  ;;  %v3241_v1 = vld [vmem:[%s5394_s0 + $0x98] sm:$0xf]  ;;  %2803 = vmatprep.mubr.bf16.mxu0 %v3927_v16  ;;  %v1127_v2 = vrot.slane %v1126_v59, 4 }
  0xd7   :  { %v3254_v31 = vld [vmem:[%s5394_s0 + $0x90] sm:$0xf]  ;;  %v1208_v3 = vsel %vm4095_vm4, %v3232_v55, %v1207_v60  ;;  %v1212_v4 = vsel %vm4095_vm4, %v3233_v61, %v1211_v62  ;;  %1245 = vst [vmem:[#allocation2 + $0x234] sm:$0xf] %v3241_v1  ;;  %v3255_v39 = vld [vmem:[%s5394_s0 + $0x94] sm:$0x1]  ;;  %2804 = vmatmul.mubr.bf16.gmra.mxu0 %v3340_v63 }
  0xd8   :  { %v3256_v5 = vld [vmem:[%s5394_s0 + $0x98] sm:$0xf]  ;;  %v1347_v6 = vshrl.u32 %v3254_v31, 16  ;;  %v1118_v8 = vsel %vm4104_vm5, %v1113_v0, %v1117_v41  ;;  %1227 = vst [vmem:[#allocation2 + $0x20c] sm:$0xf] %v1208_v3  ;;  %v1350_v10 = vshll.u32 %v3254_v31, 16  ;;  %v1132_v14 = vsel %vm4104_vm5, %v1127_v2, %v1131_v53 }
  0xd9   :  { %1228 = vst [vmem:[#allocation2 + $0x230] sm:$0xf] %v1212_v4  ;;  %v3257_v9 = vld [vmem:[%s5394_s0 + $0x9c] sm:$0x1]  ;;  %v1356_v11 = vshll.u32 %v3255_v39, 16  ;;  %v1361_v13 = vshrl.u32 %v3256_v5, 16 }
  0xda   :  { %1147 = vst [vmem:[#allocation2 + $0x208] sm:$0xf] %v1118_v8  ;;  %v1349_v15 = vrot.slane %v1347_v6, 4  ;;  %v1364_v17 = vshll.u32 %v3256_v5, 16  ;;  %v1370_v18 = vshll.u32 %v3257_v9, 16  ;;  %v1352_v19 = vrot.slane %v1350_v10, 5 }
  0xdb   :  { %1148 = vst [vmem:[#allocation2 + $0x22c] sm:$0xf] %v1132_v14  ;;  %v1363_v43 = vrot.slane %v1361_v13, 4  ;;  %v1358_v49 = vrot.slane %v1356_v11, 5  ;;  %v3114_v22 = vld [vmem:[%s5394_s0 + $0x10] sm:$0xe] }
  0xdc   :  { %v1366_v20 = vrot.slane %v1364_v17, 5  ;;  %v1372_v21 = vrot.slane %v1370_v18, 5  ;;  %v3929_v23 = vld [vmem:[#allocation2 + $0x1cc] ss:$36 sps:$4 sm:$0xff]   ;;  %v1353_v25 = vor.u32 %v1352_v19, %v1349_v15  ;;  %v3130_v26 = vrot.slane %v3114_v22, 9 }
  0xdd   :  { %v3931_v24 = vld [vmem:[#allocation2 + $0x1c8] ss:$36 sps:$4 sm:$0xff]   ;;  %v3115_v28 = vld [vmem:[%s5394_s0 + $0x14] sm:$0x1]  ;;  %v3116_v29 = vld [vmem:[%s5394_s0 + $0x18] sm:$0xe]  ;;  %2900 = vmatprep.mubr.bf16.mxu1 %v3929_v23 }
  0xde   :  { %v1367_v27 = vor.u32 %v1366_v20, %v1363_v43  ;;  %v3117_v7 = vld [vmem:[%s5394_s0 + $0x1c] sm:$0x1]  ;;  %v1354_v30 = vrot.slane %v1353_v25, 4  ;;  %v701_v32 = vrot.slane %v3115_v28, 5  ;;  %v3131_v33 = vrot.slane %v3116_v29, 9  ;;  %2901 = vmatmul.mubr.bf16.gmra.mxu1 %v3931_v24  ;;  %v5107_v43 = vld [vmem:[%s5395_s2] sm:$0xff]  }
  0xdf   :  { %v705_v34 = vrot.slane %v3117_v7, 5  ;;  %v3258_v35 = vld [vmem:[%s5394_s0 + $0x60] sm:$0xe]  ;;  %v3259_v37 = vld [vmem:[%s5394_s0 + $0x64] sm:$0x1] }
  0xe0   :  { %v1368_v36 = vrot.slane %v1367_v27, 4  ;;  %v3260_v38 = vld [vmem:[%s5394_s0 + $0x68] sm:$0xe]  ;;  %v3274_v12 = vrot.slane %v3258_v35, 9  ;;  %v1359_v41 = vsel %vm4104_vm5, %v1354_v30, %v1358_v49  ;;  %v702_v42 = vsel %vm4095_vm4, %v3130_v26, %v701_v32  ;;  %v3261_v50 = vld [vmem:[%s5394_s0 + $0x6c] sm:$0x1] }
  0xe1   :  { %v1542_v40 = vld [vmem:[#allocation2 + $0x208] sm:$0xff]  ;;  %v706_v44 = vsel %vm4095_vm4, %v3131_v33, %v705_v34  ;;  %v1424_v45 = vrot.slane %v3259_v37, 5  ;;  %v3118_v46 = vld [vmem:[%s5394_s0 + $0x20] sm:$0xe]  ;;  %1388 = vst [vmem:[#allocation2 + $0x214] sm:$0xf] %v1359_v41 }
  0xe2   :  { %v1547_v47 = vld [vmem:[#allocation2 + $0x22c] sm:$0xff]  ;;  %v1373_v52 = vsel %vm4104_vm5, %v1368_v36, %v1372_v21  ;;  %739 = vst [vmem:[#allocation2 + $0x20] sm:$0xf] %v702_v42  ;;  %740 = vst [vmem:[#allocation2 + $0x44] sm:$0xf] %v706_v44  ;;  %v3275_v53 = vrot.slane %v3260_v38, 9  ;;  %v3428_v38 = vunpack.c.l.bf16 %v5107_v43 }
  0xe3   :  { %v3933_v48 = vld [vmem:[#allocation2 + $0x20c] ss:$36 sps:$4 sm:$0xff]   ;;  %v1428_v54 = vrot.slane %v3261_v50, 5  ;;  %v3132_v55 = vrot.slane %v3118_v46, 9  ;;  %1389 = vst [vmem:[#allocation2 + $0x238] sm:$0xf] %v1373_v52  ;;  %v3349_v56 = vcombine.low %v1542_v40, %v1547_v47  ;;  %v1425_v58 = vsel %vm4095_vm4, %v3274_v12, %v1424_v45 }
  0xe4   :  { %v3119_v16 = vld [vmem:[%s5394_s0 + $0x24] sm:$0x1]  ;;  %v3120_v57 = vld [vmem:[%s5394_s0 + $0x28] sm:$0xe]  ;;  %v3121_v59 = vld [vmem:[%s5394_s0 + $0x2c] sm:$0x1]  ;;  %2811 = vmatprep.mubr.bf16.mxu0 %v3933_v48  ;;  %v3545_v21 = vpop.f32.mrf.mxu1  ;;  %v3481_v32 = vpop.f32.mrf.mxu0 }
  0xe5   :  { %v1429_v60 = vsel %vm4095_vm4, %v3275_v53, %v1428_v54  ;;  %1462 = vst [vmem:[#allocation2 + $0x140] sm:$0xf] %v1425_v58  ;;  %v709_v61 = vrot.slane %v3119_v16, 5  ;;  %v3133_v62 = vrot.slane %v3120_v57, 9  ;;  %v713_v63 = vrot.slane %v3121_v59, 5  ;;  %2812 = vmatmul.mubr.bf16.gmra.mxu0 %v3349_v56 }
  0xe6   :  { %v3262_v0 = vld [vmem:[%s5394_s0 + $0x70] sm:$0xe]  ;;  %1463 = vst [vmem:[#allocation2 + $0x164] sm:$0xf] %v1429_v60  ;;  %v3263_v1 = vld [vmem:[%s5394_s0 + $0x74] sm:$0x1]  ;;  %v3546_v29 = vpop.f32.mrf.mxu1  ;;  %v3482_v41 = vpop.f32.mrf.mxu0  ;;  %v3429_v60 = vunpack.c.h.bf16 %v5107_v43 }
  0xe7   :  { %v3264_v31 = vld [vmem:[%s5394_s0 + $0x78] sm:$0xe]  ;;  %v3265_v2 = vld [vmem:[%s5394_s0 + $0x7c] sm:$0x1]  ;;  %v710_v3 = vsel %vm4095_vm4, %v3132_v55, %v709_v61  ;;  %v714_v4 = vsel %vm4095_vm4, %v3133_v62, %v713_v63  ;;  %v3276_v39 = vrot.slane %v3262_v0, 9  ;;  %v1432_v5 = vrot.slane %v3263_v1, 5 }
  0xe8   :  { %v3122_v6 = vld [vmem:[%s5394_s0 + $0x30] sm:$0xe]  ;;  %v3123_v8 = vld [vmem:[%s5394_s0 + $0x34] sm:$0x1]  ;;  %741 = vst [vmem:[#allocation2 + $0x68] sm:$0xf] %v710_v3  ;;  %v3547_v33 = vadd.f32 %v3546_v29, %v3545_v21  ;;  %v3548_v12 = vpop.f32.mrf.mxu1  ;;  %v3483_v47 = vadd.f32 %v3482_v41, %v3481_v32  ;;  %v3484_v55 = vpop.f32.mrf.mxu0 }
  0xe9   :  { %742 = vst [vmem:[#allocation2 + $0x8c] sm:$0xf] %v714_v4  ;;  %v3277_v9 = vrot.slane %v3264_v31, 9  ;;  %v1436_v10 = vrot.slane %v3265_v2, 5  ;;  %v3124_v11 = vld [vmem:[%s5394_s0 + $0x38] sm:$0xe]  ;;  %v1433_v14 = vsel %vm4095_vm4, %v3276_v39, %v1432_v5 }
  0xea   :  { %v3125_v13 = vld [vmem:[%s5394_s0 + $0x3c] sm:$0x1]  ;;  %v3134_v15 = vrot.slane %v3122_v6, 9  ;;  %v717_v17 = vrot.slane %v3123_v8, 5  ;;  %v3135_v18 = vrot.slane %v3124_v11, 9  ;;  %v3549_v48 = vpop.f32.mrf.mxu1  ;;  %v2564_v59 = vadd.f32 %v3483_v47, %v3428_v38  ;;  %v3485_v0 = vpop.f32.mrf.mxu0 }
  0xeb   :  { %v3266_v19 = vld [vmem:[%s5394_s0 + $0x80] sm:$0xe]  ;;  %v1437_v49 = vsel %vm4095_vm4, %v3277_v9, %v1436_v10  ;;  %1464 = vst [vmem:[#allocation2 + $0x188] sm:$0xf] %v1433_v14  ;;  %v721_v20 = vrot.slane %v3125_v13, 5  ;;  %v3550_v56 = vadd.f32 %v3549_v48, %v3548_v12  ;;  %v3486_v4 = vadd.f32 %v3485_v0, %v3484_v55  ;;  %v3458_v9 = vld [vmem:[%s5395_s2 + $0x8] sm:$0xff]  }
  0xec   :  { %v3935_v22 = vld [vmem:[#allocation2 + $0x214] ss:$36 sps:$4 sm:$0xff]   ;;  %1465 = vst [vmem:[#allocation2 + $0x1ac] sm:$0xf] %v1437_v49  ;;  %v718_v24 = vsel %vm4095_vm4, %v3134_v15, %v717_v17  ;;  %v3278_v25 = vrot.slane %v3266_v19, 9  ;;  %v5155_v3 = vadd.f32 %v3547_v33, %v2564_v59  ;;  %v3551_v13 = vpop.f32.mrf.mxu1  ;;  %v3432_v19 = vunpack.c.l.bf16 %v3458_v9 }
  0xed   :  { %v3937_v23 = vld [vmem:[#allocation2 + $0x210] ss:$36 sps:$4 sm:$0xff]   ;;  %v3939_v26 = vld [vmem:[#allocation2 + $0x20] ss:$36 sps:$4 sm:$0xff]   ;;  %v722_v27 = vsel %vm4095_vm4, %v3135_v18, %v721_v20  ;;  %743 = vst [vmem:[#allocation2 + $0xb0] sm:$0xf] %v718_v24  ;;  %2908 = vmatprep.mubr.bf16.mxu1 %v3935_v22  ;;  %v2567_v11 = vadd.f32 %v3486_v4, %v3429_v60 }
  0xee   :  { %v3267_v28 = vld [vmem:[%s5394_s0 + $0x84] sm:$0x1]  ;;  %744 = vst [vmem:[#allocation2 + $0xd4] sm:$0xf] %v722_v27  ;;  %v3268_v30 = vld [vmem:[%s5394_s0 + $0x88] sm:$0xe]  ;;  %2909 = vmatmul.mubr.bf16.gmra.mxu1 %v3937_v23  ;;  %3753 = vmatprep.mubr.bf16.mxu0 %v3939_v26  ;;  %v3487_v15 = vpop.f32.mrf.mxu0  ;;  %v3552_v43 = vpop.f32.mrf.mxu1  ;;  %v3433_v27 = vunpack.c.h.bf16 %v3458_v9 }
  0xef   :  { %v3940_v7 = vld [vmem:[#allocation2 + $0x140] ss:$36 sps:$4 sm:$0xff]   ;;  %v3269_v34 = vld [vmem:[%s5394_s0 + $0x8c] sm:$0x1]  ;;  %v1440_v35 = vrot.slane %v3267_v28, 5  ;;  %v3279_v36 = vrot.slane %v3268_v30, 9  ;;  %v5167_v18 = vadd.f32 %v3550_v56, %v2567_v11  ;;  %v3553_v20 = vadd.f32 %v3552_v43, %v3551_v13 }
  0xf0   :  { %v3126_v37 = vld [vmem:[%s5394_s0 + $0x40] sm:$0xe]  ;;  %3761 = vmatprep.mubr.bf16.mxu1 %v3940_v7  ;;  %v3941_v40 = vld [vmem:[#allocation2 + $0x68] ss:$36 sps:$4 sm:$0xff]   ;;  %v1444_v44 = vrot.slane %v3269_v34, 5  ;;  %v3488_v49 = vpop.f32.mrf.mxu0  ;;  %v3554_v23 = vpop.f32.mrf.mxu1 }
  0xf1   :  { %v1441_v42 = vsel %vm4095_vm4, %v3278_v25, %v1440_v35  ;;  %v3127_v50 = vld [vmem:[%s5394_s0 + $0x44] sm:$0x1]  ;;  %v3128_v45 = vld [vmem:[%s5394_s0 + $0x48] sm:$0xe]  ;;  %v3136_v46 = vrot.slane %v3126_v37, 9  ;;  %3754 = vmatmul.mubr.bf16.vlgmr.msra.gmra.mxu0 %v3941_v40  ;;  %v3489_v22 = vadd.f32 %v3488_v49, %v3487_v15  ;;  %v3459_v35 = vld [vmem:[%s5395_s2 + $0x10] sm:$0xff]  }
  0xf2   :  { %1466 = vst [vmem:[#allocation2 + $0x1d0] sm:$0xf] %v1441_v42  ;;  %v3129_v52 = vld [vmem:[%s5394_s0 + $0x4c] sm:$0x1]  ;;  %v725_v53 = vrot.slane %v3127_v50, 5  ;;  %v3137_v54 = vrot.slane %v3128_v45, 9  ;;  %v1445_v16 = vsel %vm4095_vm4, %v3279_v36, %v1444_v44  ;;  %v3490_v24 = vpop.f32.mrf.mxu0  ;;  %v3555_v28 = vpop.f32.mrf.mxu1  ;;  %v3436_v38 = vunpack.c.l.bf16 %v3459_v35 }
  0xf3   :  { %v3942_v58 = vld [vmem:[#allocation2 + $0x188] ss:$36 sps:$4 sm:$0xff]   ;;  %v729_v57 = vrot.slane %v3129_v52, 5  ;;  %1467 = vst [vmem:[#allocation2 + $0x1f4] sm:$0xf] %v1445_v16  ;;  %v2572_v26 = vadd.f32 %v3489_v22, %v3432_v19  ;;  %v3556_v51 = vadd.f32 %v3555_v28, %v3554_v23  ;;  %v3461_v11 = vld [vmem:[%s5395_s2 + $0x20] sm:$0xff]  }
  0xf4   :  { %v726_v61 = vsel %vm4095_vm4, %v3136_v46, %v725_v53  ;;  %v3270_v62 = vld [vmem:[%s5394_s0 + $0x90] sm:$0xe]  ;;  %v3271_v63 = vld [vmem:[%s5394_s0 + $0x94] sm:$0x1]  ;;  %v3272_v2 = vld [vmem:[%s5394_s0 + $0x98] sm:$0xe]  ;;  %v3491_v29 = vpop.f32.mrf.mxu0  ;;  %v3437_v46 = vunpack.c.h.bf16 %v3459_v35  ;;  %v3444_v15 = vunpack.c.l.bf16 %v3461_v11  ;;  %v3445_v23 = vunpack.c.h.bf16 %v3461_v11 }
  0xf5   :  { %v3943_v1 = vld [vmem:[#allocation2 + $0xb0] ss:$36 sps:$4 sm:$0xff]   ;;  %v730_v31 = vsel %vm4095_vm4, %v3137_v54, %v729_v57  ;;  %745 = vst [vmem:[#allocation2 + $0xf8] sm:$0xf] %v726_v61  ;;  %v3273_v39 = vld [vmem:[%s5394_s0 + $0x9c] sm:$0x1]  ;;  %v5169_v7 = vadd.f32 %v3553_v20, %v2572_v26  ;;  %v3492_v30 = vadd.f32 %v3491_v29, %v3490_v24 }
  0xf6   :  { %746 = vst [vmem:[#allocation2 + $0x11c] sm:$0xf] %v730_v31  ;;  %v3280_v5 = vrot.slane %v3270_v62, 9  ;;  %v1448_v6 = vrot.slane %v3271_v63, 5  ;;  %v3281_v8 = vrot.slane %v3272_v2, 9  ;;  %3762 = vmatmul.mubr.bf16.vlgmr.msra.gmra.mxu1 %v3942_v58  ;;  %3757 = vmatprep.mubr.bf16.mxu0 %v3943_v1  ;;  %v1452_v10 = vrot.slane %v3273_v39, 5 }
  0xf7   :  { %v2575_v33 = vadd.f32 %v3492_v30, %v3433_v27  ;;  %v3460_v58 = vld [vmem:[%s5395_s2 + $0x18] sm:$0xff]   ;;  %v3462_v30 = vld [vmem:[%s5395_s2 + $0x28] sm:$0xff]  }
  0xf8   :  { %v1449_v14 = vsel %vm4095_vm4, %v3280_v5, %v1448_v6  ;;  %v1453_v17 = vsel %vm4095_vm4, %v3281_v8, %v1452_v10  ;;  %v3440_v60 = vunpack.c.l.bf16 %v3460_v58  ;;  %v3441_v4 = vunpack.c.h.bf16 %v3460_v58 }
  0xf9   :  { %1468 = vst [vmem:[#allocation2 + $0x218] sm:$0xf] %v1449_v14  ;;  %1469 = vst [vmem:[#allocation2 + $0x23c] sm:$0xf] %v1453_v17  ;;  %v5171_v34 = vadd.f32 %v3556_v51, %v2575_v33  ;;  %v3557_v36 = vpop.f32.mrf.mxu1  ;;  %v3493_v37 = vpop.f32.mrf.mxu0 }
  0xfa   :  { %v3944_v21 = vld [vmem:[#allocation2 + $0x1d0] ss:$36 sps:$4 sm:$0xff]  }
  0xfb   :  { %3765 = vmatprep.mubr.bf16.mxu1 %v3944_v21  ;;  %v3558_v12 = vpop.f32.mrf.mxu1  ;;  %v3494_v40 = vpop.f32.mrf.mxu0 }
  0xfc   :  { %v3559_v41 = vadd.f32 %v3558_v12, %v3557_v36  ;;  %v3495_v42 = vadd.f32 %v3494_v40, %v3493_v37  ;;  %v3448_v36 = vunpack.c.l.bf16 %v3462_v30 }
  0xfd   :  { %v3945_v25 = vld [vmem:[#allocation2 + $0xf8] ss:$36 sps:$4 sm:$0xff]   ;;  %v3560_v44 = vpop.f32.mrf.mxu1  ;;  %v3496_v50 = vpop.f32.mrf.mxu0 }
  0xfe   :  { %3758 = vmatmul.mubr.bf16.gmra.mxu0 %v3945_v25  ;;  %v2580_v45 = vadd.f32 %v3495_v42, %v3436_v38 }
  0xff   :  { %v3561_v47 = vpop.f32.mrf.mxu1  ;;  %v3497_v48 = vpop.f32.mrf.mxu0 }
 0x100   :  { %v3946_v32 = vld [vmem:[#allocation2 + $0x218] ss:$36 sps:$4 sm:$0xff]   ;;  %v3562_v52 = vadd.f32 %v3561_v47, %v3560_v44  ;;  %v5176_v53 = vadd.f32 %v3559_v41, %v2580_v45  ;;  %v3498_v54 = vadd.f32 %v3497_v48, %v3496_v50  ;;  %v3449_v50 = vunpack.c.h.bf16 %v3462_v30 }
 0x101   :  { %3766 = vmatmul.mubr.bf16.gmra.mxu1 %v3946_v32 }
 0x102   :  { %v2583_v55 = vadd.f32 %v3498_v54, %v3437_v46 }
 0x103   :  { %v3563_v56 = vpop.f32.mrf.mxu1 }
 0x104   :  { %v5181_v16 = vadd.f32 %v3562_v52, %v2583_v55  ;;  %v3463_v55 = vld [vmem:[%s5395_s2 + $0x30] sm:$0xff]  }
 0x105   :  { %v3499_v57 = vpop.f32.mrf.mxu0  ;;  %v3564_v59 = vpop.f32.mrf.mxu1 }
 0x106   :  { %5401 = vst [vmem:[#allocation3_spill] sm:$0xff] %v5181_v16  ;;  %v3565_v61 = vadd.f32 %v3564_v59, %v3563_v56  ;;  %v3452_v59 = vunpack.c.l.bf16 %v3463_v55 }
 0x107   :  { %v3500_v62 = vpop.f32.mrf.mxu0  ;;  %v3566_v63 = vpop.f32.mrf.mxu1 }
 0x108   :  { %v3501_v0 = vadd.f32 %v3500_v62, %v3499_v57 }
 0x109   :  { %v3502_v1 = vpop.f32.mrf.mxu0  ;;  %v3567_v31 = vpop.f32.mrf.mxu1 }
 0x10a   :  { %v2588_v2 = vadd.f32 %v3501_v0, %v3440_v60  ;;  %v3568_v39 = vadd.f32 %v3567_v31, %v3566_v63 }
 0x10b   :  { %v3503_v5 = vpop.f32.mrf.mxu0 }
 0x10c   :  { %v5183_v6 = vadd.f32 %v3565_v61, %v2588_v2  ;;  %v3504_v8 = vadd.f32 %v3503_v5, %v3502_v1  ;;  %v3453_v2 = vunpack.c.h.bf16 %v3463_v55 }
 0x10e   :  { %v2591_v9 = vadd.f32 %v3504_v8, %v3441_v4 }
 0x10f   :  { %v3569_v13 = vpop.f32.mrf.mxu1 }
 0x110   :  { %v5185_v10 = vadd.f32 %v3568_v39, %v2591_v9 }
 0x111   :  { %v3570_v17 = vpop.f32.mrf.mxu1 }
 0x112   :  { %5402 = vst [vmem:[#allocation4_spill] sm:$0xff] %v5185_v10  ;;  %v3505_v14 = vpop.f32.mrf.mxu0  ;;  %v3571_v43 = vadd.f32 %v3570_v17, %v3569_v13  ;;  %v3464_v13 = vld [vmem:[%s5395_s2 + $0x38] sm:$0xff]  }
 0x113   :  { %v3572_v20 = vpop.f32.mrf.mxu1 }
 0x114   :  { %v3506_v19 = vpop.f32.mrf.mxu0 }
 0x115   :  { %v3507_v49 = vadd.f32 %v3506_v19, %v3505_v14  ;;  %v3573_v24 = vpop.f32.mrf.mxu1  ;;  %v3456_v19 = vunpack.c.l.bf16 %v3464_v13 }
 0x116   :  { %v3508_v21 = vpop.f32.mrf.mxu0  ;;  %v3574_v26 = vadd.f32 %v3573_v24, %v3572_v20 }
 0x117   :  { %v2596_v22 = vadd.f32 %v3507_v49, %v3444_v15 }
 0x118   :  { %v3509_v25 = vpop.f32.mrf.mxu0 }
 0x119   :  { %v5190_v27 = vadd.f32 %v3571_v43, %v2596_v22  ;;  %v3510_v28 = vadd.f32 %v3509_v25, %v3508_v21  ;;  %v3457_v25 = vunpack.c.h.bf16 %v3464_v13 }
 0x11b   :  { %v2599_v29 = vadd.f32 %v3510_v28, %v3445_v23  ;;  %v3575_v51 = vpop.f32.mrf.mxu1 }
 0x11d   :  { %v5195_v32 = vadd.f32 %v3574_v26, %v2599_v29  ;;  %v3511_v33 = vpop.f32.mrf.mxu0  ;;  %v3576_v35 = vpop.f32.mrf.mxu1 }
 0x11e   :  { %v3577_v37 = vadd.f32 %v3576_v35, %v3575_v51 }
 0x11f   :  { %v3512_v38 = vpop.f32.mrf.mxu0  ;;  %v3578_v12 = vpop.f32.mrf.mxu1 }
 0x120   :  { %v3513_v40 = vadd.f32 %v3512_v38, %v3511_v33 }
 0x121   :  { %v3514_v41 = vpop.f32.mrf.mxu0  ;;  %v3579_v42 = vpop.f32.mrf.mxu1 }
 0x122   :  { %v2604_v44 = vadd.f32 %v3513_v40, %v3448_v36  ;;  %v3580_v45 = vadd.f32 %v3579_v42, %v3578_v12 }
 0x123   :  { %v3515_v46 = vpop.f32.mrf.mxu0 }
 0x124   :  { %v5197_v47 = vadd.f32 %v3577_v37, %v2604_v44  ;;  %v3516_v48 = vadd.f32 %v3515_v46, %v3514_v41 }
 0x125   :  { %v3581_v54 = vpop.f32.mrf.mxu1 }
 0x126   :  { %v2607_v52 = vadd.f32 %v3516_v48, %v3449_v50 }
 0x127   :  { %v3582_v57 = vpop.f32.mrf.mxu1 }
 0x128   :  { %v5202_v56 = vadd.f32 %v3580_v45, %v2607_v52  ;;  %v3517_v58 = vpop.f32.mrf.mxu0  ;;  %v3583_v60 = vadd.f32 %v3582_v57, %v3581_v54 }
 0x129   :  { %v3584_v62 = vpop.f32.mrf.mxu1 }
 0x12a   :  { %v3518_v61 = vpop.f32.mrf.mxu0 }
 0x12b   :  { %v3519_v63 = vadd.f32 %v3518_v61, %v3517_v58  ;;  %v3585_v1 = vpop.f32.mrf.mxu1 }
 0x12c   :  { %v3520_v0 = vpop.f32.mrf.mxu0  ;;  %v3586_v4 = vadd.f32 %v3585_v1, %v3584_v62 }
 0x12d   :  { %v2612_v31 = vadd.f32 %v3519_v63, %v3452_v59 }
 0x12e   :  { %v3521_v39 = vpop.f32.mrf.mxu0 }
 0x12f   :  { %v5204_v5 = vadd.f32 %v3583_v60, %v2612_v31  ;;  %v3522_v8 = vadd.f32 %v3521_v39, %v3520_v0 }
 0x131   :  { %5403 = vst [vmem:[#allocation5_spill] sm:$0xff] %v5204_v5  ;;  %v2615_v9 = vadd.f32 %v3522_v8, %v3453_v2  ;;  %v3587_v11 = vpop.f32.mrf.mxu1 }
 0x133   :  { %v5209_v14 = vadd.f32 %v3586_v4, %v2615_v9  ;;  %v3588_v17 = vpop.f32.mrf.mxu1 }
 0x134   :  { %v3589_v43 = vadd.f32 %v3588_v17, %v3587_v11 }
 0x135   :  { %5404 = vst [vmem:[#allocation6_spill] sm:$0xff] %v5209_v14  ;;  %v3523_v15 = vpop.f32.mrf.mxu0  ;;  %v3590_v20 = vpop.f32.mrf.mxu1 }
 0x137   :  { %v3524_v49 = vpop.f32.mrf.mxu0  ;;  %v3591_v23 = vpop.f32.mrf.mxu1 }
 0x138   :  { %v3525_v21 = vadd.f32 %v3524_v49, %v3523_v15  ;;  %v3592_v26 = vadd.f32 %v3591_v23, %v3590_v20 }
 0x139   :  { %v3526_v22 = vpop.f32.mrf.mxu0 }
 0x13a   :  { %v2620_v24 = vadd.f32 %v3525_v21, %v3456_v19 }
 0x13b   :  { %v3527_v28 = vpop.f32.mrf.mxu0 }
 0x13c   :  { %v5211_v29 = vadd.f32 %v3589_v43, %v2620_v24  ;;  %v3528_v51 = vadd.f32 %v3527_v28, %v3526_v22 }
 0x13e   :  { %5405 = vst [vmem:[#allocation7_spill] sm:$0xff] %v5211_v29  ;;  %v2623_v30 = vadd.f32 %v3528_v51, %v3457_v25 }
 0x13f   :  { %v3609_v35 = vpop.f32.mrf.mxu0 }
 0x140   :  { %v5213_v33 = vadd.f32 %v3592_v26, %v2623_v30 }
 0x141   :  { %v3610_v36 = vpop.f32.mrf.mxu0 }
 0x142   :  { %5406 = vst [vmem:[#allocation8_spill] sm:$0xff] %v5213_v33 }
 0x143   :  { %v5215_v37 = vpop.f32.mrf.mxu0 }
 0x145   :  { %v3613_v12 = vpop.f32.mrf.mxu0 }
 0x148   :  { %v5217_v38 = vpop.f32.mrf.mxu1 }
 0x14a   :  { %v5219_v40 = vpop.f32.mrf.mxu1 }
 0x14c   :  { %v5221_v41 = vpop.f32.mrf.mxu1 }
 0x14d   :  { %v3615_v42 = vpop.f32.mrf.mxu0 }
 0x14e   :  { %v5223_v50 = vpop.f32.mrf.mxu1 }
 0x14f   :  { %v3616_v44 = vpop.f32.mrf.mxu0 }
 0x150   :  { %v3617_v29 = vadd.f32 %v3616_v44, %v3615_v42 }
 0x151   :  { %v3618_v45 = vpop.f32.mrf.mxu0 }
 0x153   :  { %v3619_v48 = vpop.f32.mrf.mxu0 }
 0x157   :  { %v3679_v46 = vpop.f32.mrf.mxu1 }
 0x159   :  { %v3680_v52 = vpop.f32.mrf.mxu1 }
 0x15b   :  { %v5225_v54 = vpop.f32.mrf.mxu1 }
 0x15d   :  { %v3683_v57 = vpop.f32.mrf.mxu1 }
 0x15f   :  { %v5227_v55 = vpop.f32.mrf.mxu0 }
 0x161   :  { %v5229_v58 = vpop.f32.mrf.mxu0 }
 0x163   :  { %v5231_v59 = vpop.f32.mrf.mxu0 }
 0x165   :  { %v5235_v61 = vpop.f32.mrf.mxu0 }
 0x166   :  { %v5233_v60 = vpop.f32.mrf.mxu1 }
 0x167   :  { %5407 = vst [vmem:[#allocation9_spill] sm:$0xff] %v5233_v60 }
 0x168   :  { %v5237_v62 = vpop.f32.mrf.mxu1 }
 0x169   :  { %5408 = vst [vmem:[#allocation10_spill] sm:$0xff] %v5237_v62  ;;  %v3611_v62 = vadd.f32 %v3610_v36, %v3609_v35  ;;  %v3675_v35 = vadd.f32 %v5219_v40, %v5217_v38 }
 0x16a   :  { %v5239_v63 = vpop.f32.mrf.mxu1 }
 0x16b   :  { %5409 = vst [vmem:[#allocation11_spill] sm:$0xff] %v5239_v63 }
 0x16c   :  { %v5241_v0 = vpop.f32.mrf.mxu0  ;;  %v5245_v31 = vpop.f32.mrf.mxu1 }
 0x16d   :  { %5410 = vst [vmem:[#allocation12_spill] sm:$0xff] %v5245_v31 }
 0x16e   :  { %v5243_v1 = vpop.f32.mrf.mxu0 }
 0x170   :  { %v5247_v2 = vpop.f32.mrf.mxu0 }
 0x172   :  { %v5253_v8 = vpop.f32.mrf.mxu0 }
 0x174   :  { %v5249_v4 = vpop.f32.mrf.mxu1 }
 0x175   :  { %5411 = vst [vmem:[#allocation13_spill] sm:$0xff] %v5249_v4 }
 0x176   :  { %v5251_v39 = vpop.f32.mrf.mxu1 }
 0x177   :  { %5412 = vst [vmem:[#allocation14_spill] sm:$0xff] %v5251_v39  ;;  %v3620_v39 = vadd.f32 %v3619_v48, %v3618_v45 }
 0x178   :  { %v5255_v9 = vpop.f32.mrf.mxu1 }
 0x179   :  { %5413 = vst [vmem:[#allocation15_spill] sm:$0xff] %v5255_v9  ;;  %v2769_v36 = vadd.f32 %v3620_v39, %v5171_v34  ;;  %v3623_v39 = vadd.f32 %v5229_v58, %v5227_v55 }
 0x17a   :  { %v5257_v15 = vpop.f32.mrf.mxu1 }
 0x17b   :  { %v3633_v11 = vpop.f32.mrf.mxu0  ;;  %5414 = vst [vmem:[#allocation16_spill] sm:$0xff] %v5257_v15 }
 0x17d   :  { %v3634_v13 = vpop.f32.mrf.mxu0 }
 0x17e   :  { %v3635_v42 = vadd.f32 %v3634_v13, %v3633_v11 }
 0x17f   :  { %v3636_v17 = vpop.f32.mrf.mxu0 }
 0x181   :  { %v3637_v43 = vpop.f32.mrf.mxu0 }
 0x182   :  { %v3697_v19 = vpop.f32.mrf.mxu1  ;;  %v3638_v38 = vadd.f32 %v3637_v43, %v3636_v17 }
 0x184   :  { %v3698_v49 = vpop.f32.mrf.mxu1 }
 0x186   :  { %v5259_v20 = vpop.f32.mrf.mxu1 }
 0x188   :  { %v3639_v21 = vpop.f32.mrf.mxu0  ;;  %v5261_v23 = vpop.f32.mrf.mxu1 }
 0x189   :  { %v3702_v58 = vadd.f32 %v5261_v23, %v5259_v20 }
 0x18a   :  { %v3640_v22 = vpop.f32.mrf.mxu0 }
 0x18c   :  { %v3642_v24 = vpop.f32.mrf.mxu0 }
 0x18e   :  { %v3643_v28 = vpop.f32.mrf.mxu0 }
 0x18f   :  { %v3644_v45 = vadd.f32 %v3643_v28, %v3642_v24 }
 0x190   :  { %v3703_v25 = vpop.f32.mrf.mxu1 }
 0x192   :  { %v3704_v26 = vpop.f32.mrf.mxu1 }
 0x193   :  { %v3705_v40 = vadd.f32 %v3704_v26, %v3703_v25  ;;  %v5426_v25 = vld [vmem:[#allocation9_spill] sm:$0xff]  ;;  %v5427_v26 = vld [vmem:[#allocation10_spill] sm:$0xff] }
 0x194   :  { %v3706_v51 = vpop.f32.mrf.mxu1 }
 0x196   :  { %v3707_v33 = vpop.f32.mrf.mxu1 }
 0x197   :  { %v5263_v30 = vpop.f32.mrf.mxu0  ;;  %v3708_v11 = vadd.f32 %v3707_v33, %v3706_v51 }
 0x198   :  { %5415 = vst [vmem:[#allocation17_spill] sm:$0xff] %v5263_v30 }
 0x199   :  { %v5265_v14 = vpop.f32.mrf.mxu0 }
 0x19a   :  { %5416 = vst [vmem:[#allocation18_spill] sm:$0xff] %v5265_v14  ;;  %v2766_v14 = vadd.f32 %v3617_v29, %v5169_v7 }
 0x19b   :  { %v5267_v31 = vpop.f32.mrf.mxu0 }
 0x19c   :  { %5417 = vst [vmem:[#allocation19_spill] sm:$0xff] %v5267_v31  ;;  %v3641_v31 = vadd.f32 %v3640_v22, %v3639_v21  ;;  %v5422_v21 = vld [vmem:[#allocation13_spill] sm:$0xff]  ;;  %v5423_v22 = vld [vmem:[#allocation14_spill] sm:$0xff] }
 0x19d   :  { %v5271_v5 = vpop.f32.mrf.mxu0  ;;  %v3693_v20 = vadd.f32 %v5423_v22, %v5422_v21 }
 0x19e   :  { %v5269_v63 = vpop.f32.mrf.mxu1  ;;  %5419 = vst [vmem:[#allocation21_spill] sm:$0xff] %v5271_v5  ;;  %v3681_v5 = vadd.f32 %v3680_v52, %v3679_v46  ;;  %v2798_v29 = vadd.f32 %v3641_v31, %v5197_v47  ;;  %v3629_v47 = vadd.f32 %v5243_v1, %v5241_v0  ;;  %v2793_v1 = vadd.f32 %v3638_v38, %v5195_v32 }
 0x19f   :  { %5418 = vst [vmem:[#allocation20_spill] sm:$0xff] %v5269_v63  ;;  %v2758_v63 = vadd.f32 %v3611_v62, %v5155_v3  ;;  %v2790_v62 = vadd.f32 %v3635_v42, %v5190_v27  ;;  %v2801_v27 = vadd.f32 %v3644_v45, %v5202_v56  ;;  %v5429_v42 = vld [vmem:[#allocation7_spill] sm:$0xff] }
 0x1a0   :  { %v5273_v15 = vpop.f32.mrf.mxu1  ;;  %v2863_v7 = vadd.f32 %v3681_v5, %v2766_v14  ;;  %v3678_v5 = vadd.f32 %v5223_v50, %v5221_v41  ;;  %v2782_v56 = vadd.f32 %v3629_v47, %v5183_v6  ;;  %v2774_v6 = vadd.f32 %v3623_v39, %v5176_v53  ;;  %v5430_v45 = vld [vmem:[#allocation3_spill] sm:$0xff] }
 0x1a1   :  { %5420 = vst [vmem:[#allocation22_spill] sm:$0xff] %v5273_v15  ;;  %v3614_v15 = vadd.f32 %v3613_v12, %v5215_v37  ;;  %v3684_v37 = vadd.f32 %v3683_v57, %v5225_v54  ;;  %v2855_v52 = vadd.f32 %v3675_v35, %v2758_v63  ;;  %v3699_v57 = vadd.f32 %v3698_v49, %v3697_v19 }
 0x1a2   :  { %v5275_v9 = vpop.f32.mrf.mxu1  ;;  %v2895_v63 = vadd.f32 %v3705_v40, %v2798_v29  ;;  %v3632_v19 = vadd.f32 %v5253_v8, %v5247_v2  ;;  %v2898_v33 = vadd.f32 %v3708_v11, %v2801_v27  ;;  %v3626_v2 = vadd.f32 %v5235_v61, %v5231_v59  ;;  %v5428_v61 = vld [vmem:[#allocation4_spill] sm:$0xff] }
 0x1a3   :  { %5421 = vst [vmem:[#allocation23_spill] sm:$0xff] %v5275_v9  ;;  %v2761_v3 = vadd.f32 %v3614_v15, %v5167_v18  ;;  %v2866_v54 = vadd.f32 %v3684_v37, %v2769_v36  ;;  %v2887_v15 = vadd.f32 %v3699_v57, %v2790_v62  ;;  %v2890_v53 = vadd.f32 %v3702_v58, %v2793_v1  ;;  %v5432_v37 = vld [vmem:[#allocation16_spill] sm:$0xff]  ;;  %v5441_v1 = vld [vmem:[#allocation6_spill] sm:$0xff] }
 0x1a4   :  { %v5277_v60 = vpop.f32.mrf.mxu1  ;;  %v3687_v59 = vadd.f32 %v5427_v26, %v5426_v25  ;;  %v2785_v28 = vadd.f32 %v3632_v19, %v5428_v61  ;;  %v2879_v29 = vadd.f32 %v3693_v20, %v2782_v56 }
 0x1a5   :  { %v3651_v16 = vpop.f32.mrf.mxu0  ;;  %v2858_v0 = vadd.f32 %v3678_v5, %v2761_v3  ;;  %v5431_v3 = vld [vmem:[#allocation15_spill] sm:$0xff]  ;;  %v5434_v62 = vld [vmem:[#allocation21_spill] sm:$0xff] }
 0x1a6   :  { %v2871_v47 = vadd.f32 %v3687_v59, %v2774_v6 }
 0x1a7   :  { %v3652_v10 = vpop.f32.mrf.mxu0 }
 0x1a8   :  { %v3653_v49 = vadd.f32 %v3652_v10, %v3651_v16  ;;  %v5424_v16 = vld [vmem:[#allocation17_spill] sm:$0xff]  ;;  %v5425_v10 = vld [vmem:[#allocation18_spill] sm:$0xff] }
 0x1a9   :  { %v5279_v30 = vpop.f32.mrf.mxu0  ;;  %v3647_v23 = vadd.f32 %v5425_v10, %v5424_v16  ;;  %v5439_v39 = vld [vmem:[#allocation22_spill] sm:$0xff] }
 0x1aa   :  { %v2814_v35 = vadd.f32 %v3653_v49, %v5429_v42 }
 0x1ab   :  { %v5282_v4 = vpop.f32.mrf.mxu0 }
 0x1ac   :  { %v3656_v36 = vadd.f32 %v5282_v4, %v5279_v30 }
 0x1ae   :  { %v5286_v9 = vpop.f32.mrf.mxu1 }
 0x1b0   :  { %v5291_v44 = vpop.f32.mrf.mxu1 }
 0x1b1   :  { %v3755_v48 = vpop.f32.mrf.mxu0  ;;  %v3717_v4 = vadd.f32 %v5291_v44, %v5286_v9 }
 0x1b2   :  { %v5296_v12 = vpop.f32.mrf.mxu1  ;;  %v2960_v46 = vadd.f32 %v3755_v48, %v2863_v7  ;;  %v2777_v48 = vadd.f32 %v3626_v2, %v5430_v45 }
 0x1b3   :  { %v2951_v34 = vpop.f32.mrf.mxu0  ;;  %v2911_v9 = vadd.f32 %v3717_v4, %v2814_v35 }
 0x1b4   :  { %v5303_v14 = vpop.f32.mrf.mxu1  ;;  %3016 = vst [vmem:[%s5396_s3 + $0x10] sm:$0xff] %v2960_v46  ;;  %v2952_v18 = vadd.f32 %v2951_v34, %v2855_v52  ;;  %v3696_v46 = vadd.f32 %v5432_v37, %v5431_v3  ;;  %v5433_v52 = vld [vmem:[#allocation19_spill] sm:$0xff]  ;;  %v5435_v34 = vld [vmem:[#allocation5_spill] sm:$0xff] }
 0x1b5   :  { %v3756_v31 = vpop.f32.mrf.mxu0  ;;  %v3650_v38 = vadd.f32 %v5434_v62, %v5433_v52  ;;  %v2806_v5 = vadd.f32 %v3647_v23, %v5435_v34  ;;  %v3720_v56 = vadd.f32 %v5303_v14, %v5296_v12 }
 0x1b6   :  { %v3763_v41 = vpop.f32.mrf.mxu1  ;;  %3014 = vst [vmem:[%s5396_s3] sm:$0xff] %v2952_v18  ;;  %v2963_v50 = vadd.f32 %v3756_v31, %v2866_v54  ;;  %v5436_v18 = vld [vmem:[#allocation11_spill] sm:$0xff]  ;;  %v5437_v54 = vld [vmem:[#allocation12_spill] sm:$0xff] }
 0x1b7   :  { %v2992_v13 = vadd.f32 %v3763_v41, %v2895_v63  ;;  %v2954_v17 = vpop.f32.mrf.mxu0  ;;  %v3690_v57 = vadd.f32 %v5437_v54, %v5436_v18  ;;  %v2882_v63 = vadd.f32 %v3696_v46, %v2785_v28  ;;  %v5438_v31 = vld [vmem:[#allocation20_spill] sm:$0xff]  ;;  %v2809_v11 = vadd.f32 %v3650_v38, %v5441_v1 }
 0x1b8   :  { %v2983_v43 = vpop.f32.mrf.mxu1  ;;  %3017 = vst [vmem:[%s5396_s3 + $0x18] sm:$0xff] %v2963_v50  ;;  %v2955_v55 = vadd.f32 %v2954_v17, %v2858_v0  ;;  %v3711_v41 = vadd.f32 %v5439_v39, %v5438_v31  ;;  %v5440_v50 = vld [vmem:[#allocation8_spill] sm:$0xff] }
 0x1b9   :  { %3024 = vst [vmem:[%s5396_s3 + $0x50] sm:$0xff] %v2992_v13  ;;  %v2984_v32 = vadd.f32 %v2983_v43, %v2887_v15  ;;  %v2817_v0 = vadd.f32 %v3656_v36, %v5440_v50  ;;  %v2874_v17 = vadd.f32 %v3690_v57, %v2777_v48 }
 0x1ba   :  { %v3764_v8 = vpop.f32.mrf.mxu1  ;;  %3015 = vst [vmem:[%s5396_s3 + $0x8] sm:$0xff] %v2955_v55  ;;  %v2903_v43 = vadd.f32 %v3711_v41, %v2806_v5 }
 0x1bb   :  { %3022 = vst [vmem:[%s5396_s3 + $0x40] sm:$0xff] %v2984_v32  ;;  %v2995_v24 = vadd.f32 %v3764_v8, %v2898_v33  ;;  %v5442_v32 = vld [vmem:[#allocation23_spill] sm:$0xff]  ;;  %v2914_v12 = vadd.f32 %v3720_v56, %v2817_v0 }
 0x1bc   :  { %v2986_v51 = vpop.f32.mrf.mxu1  ;;  %v3714_v33 = vadd.f32 %v5277_v60, %v5442_v32 }
 0x1bd   :  { %3025 = vst [vmem:[%s5396_s3 + $0x58] sm:$0xff] %v2995_v24  ;;  %v2987_v7 = vadd.f32 %v2986_v51, %v2890_v53 }
 0x1be   :  { %v3759_v40 = vpop.f32.mrf.mxu0  ;;  %v2906_v60 = vadd.f32 %v3714_v33, %v2809_v11 }
 0x1bf   :  { %3023 = vst [vmem:[%s5396_s3 + $0x48] sm:$0xff] %v2987_v7  ;;  %v2976_v30 = vadd.f32 %v3759_v40, %v2879_v29 }
 0x1c0   :  { %v2967_v27 = vpop.f32.mrf.mxu0 }
 0x1c1   :  { %3020 = vst [vmem:[%s5396_s3 + $0x30] sm:$0xff] %v2976_v30  ;;  %v2968_v44 = vadd.f32 %v2967_v27, %v2871_v47  ;;  %v3767_v13 = vpop.f32.mrf.mxu1 }
 0x1c2   :  { %v3760_v15 = vpop.f32.mrf.mxu0  ;;  %v3008_v19 = vadd.f32 %v3767_v13, %v2911_v9 }
 0x1c3   :  { %3018 = vst [vmem:[%s5396_s3 + $0x20] sm:$0xff] %v2968_v44  ;;  %v2979_v55 = vadd.f32 %v3760_v15, %v2882_v63  ;;  %v2999_v58 = vpop.f32.mrf.mxu1 }
 0x1c4   :  { %v2970_v49 = vpop.f32.mrf.mxu0  ;;  %3028 = vst [vmem:[%s5396_s3 + $0x70] sm:$0xff] %v3008_v19  ;;  %v3000_v6 = vadd.f32 %v2999_v58, %v2903_v43 }
 0x1c5   :  { %3021 = vst [vmem:[%s5396_s3 + $0x38] sm:$0xff] %v2979_v55  ;;  %v2971_v14 = vadd.f32 %v2970_v49, %v2874_v17  ;;  %v3768_v2 = vpop.f32.mrf.mxu1 }
 0x1c6   :  { %3026 = vst [vmem:[%s5396_s3 + $0x60] sm:$0xff] %v3000_v6  ;;  %v3011_v8 = vadd.f32 %v3768_v2, %v2914_v12 }
 0x1c7   :  { %3019 = vst [vmem:[%s5396_s3 + $0x28] sm:$0xff] %v2971_v14  ;;  %v3002_v21 = vpop.f32.mrf.mxu1 }
 0x1c8   :  { %3029 = vst [vmem:[%s5396_s3 + $0x78] sm:$0xff] %v3011_v8  ;;  %v3003_v22 = vadd.f32 %v3002_v21, %v2906_v60 }
 0x1ca   :  { %3027 = vst [vmem:[%s5396_s3 + $0x68] sm:$0xff] %v3003_v22 }

</bundles_post_ra>
